<compile_context>
chip_gen: v6e
topology: v6e:2x2x1
jax: 0.10.0
libtpu: 0.0.40
codegen_flags: <defaults>
</compile_context>

<pallas_src>
import jax
import jax.numpy as jnp
from jax.experimental import pallas as pl
from jax.experimental.pallas import tpu as pltpu


# ----------------------------------------------------------------------------
# Fused Pallas kernel (built per static configuration)
# ----------------------------------------------------------------------------
def _build_fused_ae_kernel(T, in_size, layer_hiddens):
    """Returns a kernel computing all LSTM layers + the output Linear.

    Kernel ref order:
      x_ref(B, T*in_size),
      [w_cat_l (in_l+hid_l, 4*hid_l), bias_l (1, 4*hid_l)] for each layer,
      w_out (last_hid, out), b_out (1, out),
      y_ref (B, T*out)
    """
    n_layers = len(layer_hiddens)

    def kernel(*refs):
        x_ref = refs[0]
        layer_refs = refs[1:1 + 2 * n_layers]
        wo_ref, bo_ref, y_ref = refs[1 + 2 * n_layers:]

        B = x_ref.shape[0]

        # Per-step (B, in_size) input slices, static lane offsets.
        feats = [x_ref[:, t * in_size:(t + 1) * in_size] for t in range(T)]

        def run_lstm_layer(xs, w_ref, b_ref, hid):
            w = w_ref[...]          # (in + hid, 4*hid)  == concat(W_ih, W_hh).T
            b = b_ref[...]          # (1, 4*hid)         == bias_ih + bias_hh
            h = jnp.zeros((B, hid), jnp.float32)
            c = jnp.zeros((B, hid), jnp.float32)
            ys = []
            for t in range(T):      # fully unrolled, static trip count
                xh = jnp.concatenate([xs[t], h], axis=-1)          # (B, in+hid)
                gates = jnp.dot(xh, w,
                                preferred_element_type=jnp.float32) + b
                i_g = jax.nn.sigmoid(gates[:, 0 * hid:1 * hid])
                f_g = jax.nn.sigmoid(gates[:, 1 * hid:2 * hid])
                g_g = jnp.tanh(gates[:, 2 * hid:3 * hid])
                o_g = jax.nn.sigmoid(gates[:, 3 * hid:4 * hid])
                c = f_g * c + i_g * g_g
                h = o_g * jnp.tanh(c)
                ys.append(h)
            return ys

        for l in range(n_layers):
            feats = run_lstm_layer(feats, layer_refs[2 * l],
                                   layer_refs[2 * l + 1], layer_hiddens[l])

        # Output Linear applied per step; stores are static lane slices into
        # the lane-dense (B, T*out) VMEM output block.
        wo = wo_ref[...]            # (last_hid, out)
        bo = bo_ref[...]            # (1, out)
        out = wo.shape[1]
        for t in range(T):
            y_t = jnp.dot(feats[t], wo,
                          preferred_element_type=jnp.float32) + bo
            y_ref[:, t * out:(t + 1) * out] = y_t.astype(y_ref.dtype)

    return kernel


# ----------------------------------------------------------------------------
# Wrapper
# ----------------------------------------------------------------------------
@jax.jit
def lstm_autoencoder_forward(x, enc_params, dec_params, out_w, out_b):
    """x: (B, T, I) float32 (batch_first). params: tuples of
    (w_ih, w_hh, b_ih, b_hh) with PyTorch nn.LSTM shapes."""
    B, T, I = x.shape

    layer_params = list(enc_params) + list(dec_params)
    layer_hiddens = []
    weight_args = []
    for (w_ih, w_hh, b_ih, b_hh) in layer_params:
        hid = w_hh.shape[1]
        layer_hiddens.append(hid)
        # gates = x @ W_ih.T + h @ W_hh.T = [x, h] @ concat(W_ih, W_hh, axis=1).T
        w_cat = jnp.concatenate([w_ih, w_hh], axis=1).T      # (in + hid, 4*hid)
        bias = (b_ih + b_hh).reshape(1, 4 * hid)
        weight_args += [w_cat, bias]

    O = out_w.shape[0]
    wo_t = jnp.transpose(out_w)                              # (I, O)
    bo = out_b.reshape(1, O)

    x_flat = x.reshape(B, T * I)                             # lane-dense input

    kernel = _build_fused_ae_kernel(T, I, tuple(layer_hiddens))

    in_arrays = [x_flat] + weight_args + [wo_t, bo]
    in_specs = [pl.BlockSpec(a.shape, lambda: (0, 0)) for a in in_arrays]

    y_flat = pl.pallas_call(
        kernel,
        out_shape=jax.ShapeDtypeStruct((B, T * O), x.dtype),
        grid=(),
        in_specs=in_specs,
        out_specs=pl.BlockSpec((B, T * O), lambda: (0, 0)),
        compiler_params=pltpu.CompilerParams(
            vmem_limit_bytes=32 * 1024 * 1024),
    )(*in_arrays)

    return y_flat.reshape(B, T, O)


# ----------------------------------------------------------------------------
# Parameter init (deterministic, mirrors nn.LSTM / nn.Linear shapes)
# ----------------------------------------------------------------------------
def init_lstm_params(key, input_size, hidden_size, num_layers):
    params = []
    bound = 1.0 / jnp.sqrt(hidden_size)
    for layer in range(num_layers):
        in_sz = input_size if layer == 0 else hidden_size
        key, k1, k2, k3, k4 = jax.random.split(key, 5)
        w_ih = jax.random.uniform(k1, (4 * hidden_size, in_sz),
                                  jnp.float32, -bound, bound)
        w_hh = jax.random.uniform(k2, (4 * hidden_size, hidden_size),
                                  jnp.float32, -bound, bound)
        b_ih = jax.random.uniform(k3, (4 * hidden_size,),
                                  jnp.float32, -bound, bound)
        b_hh = jax.random.uniform(k4, (4 * hidden_size,),
                                  jnp.float32, -bound, bound)
        params.append((w_ih, w_hh, b_ih, b_hh))
    return key, params


# ----------------------------------------------------------------------------
# Pure-JAX reference for verification
# ----------------------------------------------------------------------------
def ref_lstm_layer(x_tbi, w_ih, w_hh, b_ih, b_hh):
    T, B, _ = x_tbi.shape
    H = w_hh.shape[1]

    def step(carry, x_t):
        h, c = carry
        gates = x_t @ w_ih.T + h @ w_hh.T + b_ih + b_hh
        i_g = jax.nn.sigmoid(gates[:, 0 * H:1 * H])
        f_g = jax.nn.sigmoid(gates[:, 1 * H:2 * H])
        g_g = jnp.tanh(gates[:, 2 * H:3 * H])
        o_g = jax.nn.sigmoid(gates[:, 3 * H:4 * H])
        c_new = f_g * c + i_g * g_g
        h_new = o_g * jnp.tanh(c_new)
        return (h_new, c_new), h_new

    init = (jnp.zeros((B, H), jnp.float32), jnp.zeros((B, H), jnp.float32))
    _, ys = jax.lax.scan(step, init, x_tbi)
    return ys


def ref_forward(x, enc_params, dec_params, out_w, out_b):
    h = jnp.transpose(x, (1, 0, 2))
    for p in enc_params:
        h = ref_lstm_layer(h, *p)
    for p in dec_params:
        h = ref_lstm_layer(h, *p)
    h = jnp.transpose(h, (1, 0, 2))
    return h @ out_w.T + out_b


# ----------------------------------------------------------------------------
if __name__ == "__main__":
    input_size = 16
    hidden_size = 32
    num_layers = 2
    B, T = 2, 8

    key = jax.random.PRNGKey(0)
    key, kx = jax.random.split(key)
    x = jax.random.normal(kx, (B, T, input_size), jnp.float32)

    # encoder: input_size -> hidden_size ; decoder: hidden_size -> input_size
    key, enc_params = init_lstm_params(key, input_size, hidden_size, num_layers)
    key, dec_params = init_lstm_params(key, hidden_size, input_size, num_layers)

    lin_bound = 1.0 / jnp.sqrt(input_size)
    key, kw, kb = jax.random.split(key, 3)
    out_w = jax.random.uniform(kw, (input_size, input_size),
                               jnp.float32, -lin_bound, lin_bound)
    out_b = jax.random.uniform(kb, (input_size,),
                               jnp.float32, -lin_bound, lin_bound)

    out = lstm_autoencoder_forward(x, tuple(enc_params), tuple(dec_params),
                                   out_w, out_b)
    out = jax.block_until_ready(out)

    ref = ref_forward(x, enc_params, dec_params, out_w, out_b)
    assert out.shape == (B, T, input_size)
    assert jnp.allclose(out, ref, atol=1e-4, rtol=1e-4), "mismatch vs reference"

    print("KERNEL_OK")
</pallas_src>

<mosaic_0001>
module attributes {stable_mosaic.version = 11 : i64} {
  func.func @kernel(%arg0: memref<2x128xf32, #tpu.memory_space<vmem>>, %arg1: memref<48x128xf32, #tpu.memory_space<vmem>>, %arg2: memref<1x128xf32, #tpu.memory_space<vmem>>, %arg3: memref<64x128xf32, #tpu.memory_space<vmem>>, %arg4: memref<1x128xf32, #tpu.memory_space<vmem>>, %arg5: memref<48x64xf32, #tpu.memory_space<vmem>>, %arg6: memref<1x64xf32, #tpu.memory_space<vmem>>, %arg7: memref<32x64xf32, #tpu.memory_space<vmem>>, %arg8: memref<1x64xf32, #tpu.memory_space<vmem>>, %arg9: memref<16x16xf32, #tpu.memory_space<vmem>>, %arg10: memref<1x16xf32, #tpu.memory_space<vmem>>, %arg11: memref<2x128xf32, #tpu.memory_space<vmem>>) attributes {dimension_semantics = [], scalar_prefetch = 0 : i64, scratch_operands = 0 : i64, tpu.core_type = #tpu.core_type<tc>} {
    %c0 = arith.constant 0 : index
    %c0_0 = arith.constant 0 : index
    %0 = vector.load %arg0[%c0, %c0_0] : memref<2x128xf32, #tpu.memory_space<vmem>>, vector<2x16xf32>
    %c0_1 = arith.constant 0 : index
    %c16 = arith.constant 16 : index
    %1 = vector.load %arg0[%c0_1, %c16] : memref<2x128xf32, #tpu.memory_space<vmem>>, vector<2x16xf32>
    %c0_2 = arith.constant 0 : index
    %c32 = arith.constant 32 : index
    %2 = vector.load %arg0[%c0_2, %c32] : memref<2x128xf32, #tpu.memory_space<vmem>>, vector<2x16xf32>
    %c0_3 = arith.constant 0 : index
    %c48 = arith.constant 48 : index
    %3 = vector.load %arg0[%c0_3, %c48] : memref<2x128xf32, #tpu.memory_space<vmem>>, vector<2x16xf32>
    %c0_4 = arith.constant 0 : index
    %c64 = arith.constant 64 : index
    %4 = vector.load %arg0[%c0_4, %c64] : memref<2x128xf32, #tpu.memory_space<vmem>>, vector<2x16xf32>
    %c0_5 = arith.constant 0 : index
    %c80 = arith.constant 80 : index
    %5 = vector.load %arg0[%c0_5, %c80] : memref<2x128xf32, #tpu.memory_space<vmem>>, vector<2x16xf32>
    %c0_6 = arith.constant 0 : index
    %c96 = arith.constant 96 : index
    %6 = vector.load %arg0[%c0_6, %c96] : memref<2x128xf32, #tpu.memory_space<vmem>>, vector<2x16xf32>
    %c0_7 = arith.constant 0 : index
    %c112 = arith.constant 112 : index
    %7 = vector.load %arg0[%c0_7, %c112] : memref<2x128xf32, #tpu.memory_space<vmem>>, vector<2x16xf32>
    %c0_8 = arith.constant 0 : index
    %c0_9 = arith.constant 0 : index
    %8 = vector.load %arg1[%c0_8, %c0_9] : memref<48x128xf32, #tpu.memory_space<vmem>>, vector<48x128xf32>
    %c0_10 = arith.constant 0 : index
    %c0_11 = arith.constant 0 : index
    %9 = vector.load %arg2[%c0_10, %c0_11] : memref<1x128xf32, #tpu.memory_space<vmem>>, vector<1x128xf32>
    %cst = arith.constant 0.000000e+00 : f32
    %10 = vector.broadcast %cst : f32 to vector<2x32xf32>
    %cst_12 = arith.constant 0.000000e+00 : f32
    %11 = vector.broadcast %cst_12 : f32 to vector<2x32xf32>
    %12 = tpu.concatenate %0, %10 in 1 : vector<2x16xf32>, vector<2x32xf32> -> vector<2x48xf32>
    %cst_13 = arith.constant dense<0.000000e+00> : vector<2x128xf32>
    %13 = tpu.matmul %12, %8, %cst_13 {dimension_numbers = #tpu.dot_dimension_numbers<[1], [0], [0], [1], [0, 0, 1, 1], [], []>} : vector<2x48xf32>, vector<48x128xf32>, vector<2x128xf32> -> vector<2x128xf32>
    %14 = vector.broadcast %9 : vector<1x128xf32> to vector<2x128xf32>
    %15 = arith.addf %13, %14 : vector<2x128xf32>
    %16 = vector.extract_strided_slice %15 {offsets = [0, 0], sizes = [2, 32], strides = [1, 1]} : vector<2x128xf32> to vector<2x32xf32>
    %17 = arith.negf %16 : vector<2x32xf32>
    %18 = math.exp %17 : vector<2x32xf32>
    %cst_14 = arith.constant 1.000000e+00 : f32
    %19 = vector.broadcast %cst_14 : f32 to vector<2x32xf32>
    %20 = arith.addf %19, %18 : vector<2x32xf32>
    %21 = arith.divf %19, %20 : vector<2x32xf32>
    %22 = vector.extract_strided_slice %15 {offsets = [0, 32], sizes = [2, 32], strides = [1, 1]} : vector<2x128xf32> to vector<2x32xf32>
    %23 = arith.negf %22 : vector<2x32xf32>
    %24 = math.exp %23 : vector<2x32xf32>
    %cst_15 = arith.constant 1.000000e+00 : f32
    %25 = vector.broadcast %cst_15 : f32 to vector<2x32xf32>
    %26 = arith.addf %25, %24 : vector<2x32xf32>
    %27 = arith.divf %25, %26 : vector<2x32xf32>
    %28 = vector.extract_strided_slice %15 {offsets = [0, 64], sizes = [2, 32], strides = [1, 1]} : vector<2x128xf32> to vector<2x32xf32>
    %29 = math.tanh %28 : vector<2x32xf32>
    %30 = vector.extract_strided_slice %15 {offsets = [0, 96], sizes = [2, 32], strides = [1, 1]} : vector<2x128xf32> to vector<2x32xf32>
    %31 = arith.negf %30 : vector<2x32xf32>
    %32 = math.exp %31 : vector<2x32xf32>
    %cst_16 = arith.constant 1.000000e+00 : f32
    %33 = vector.broadcast %cst_16 : f32 to vector<2x32xf32>
    %34 = arith.addf %33, %32 : vector<2x32xf32>
    %35 = arith.divf %33, %34 : vector<2x32xf32>
    %36 = arith.mulf %27, %11 : vector<2x32xf32>
    %37 = arith.mulf %21, %29 : vector<2x32xf32>
    %38 = arith.addf %36, %37 : vector<2x32xf32>
    %39 = math.tanh %38 : vector<2x32xf32>
    %40 = arith.mulf %35, %39 : vector<2x32xf32>
    %41 = tpu.concatenate %1, %40 in 1 : vector<2x16xf32>, vector<2x32xf32> -> vector<2x48xf32>
    %cst_17 = arith.constant dense<0.000000e+00> : vector<2x128xf32>
    %42 = tpu.matmul %41, %8, %cst_17 {dimension_numbers = #tpu.dot_dimension_numbers<[1], [0], [0], [1], [0, 0, 1, 1], [], []>} : vector<2x48xf32>, vector<48x128xf32>, vector<2x128xf32> -> vector<2x128xf32>
    %43 = vector.broadcast %9 : vector<1x128xf32> to vector<2x128xf32>
    %44 = arith.addf %42, %43 : vector<2x128xf32>
    %45 = vector.extract_strided_slice %44 {offsets = [0, 0], sizes = [2, 32], strides = [1, 1]} : vector<2x128xf32> to vector<2x32xf32>
    %46 = arith.negf %45 : vector<2x32xf32>
    %47 = math.exp %46 : vector<2x32xf32>
    %cst_18 = arith.constant 1.000000e+00 : f32
    %48 = vector.broadcast %cst_18 : f32 to vector<2x32xf32>
    %49 = arith.addf %48, %47 : vector<2x32xf32>
    %50 = arith.divf %48, %49 : vector<2x32xf32>
    %51 = vector.extract_strided_slice %44 {offsets = [0, 32], sizes = [2, 32], strides = [1, 1]} : vector<2x128xf32> to vector<2x32xf32>
    %52 = arith.negf %51 : vector<2x32xf32>
    %53 = math.exp %52 : vector<2x32xf32>
    %cst_19 = arith.constant 1.000000e+00 : f32
    %54 = vector.broadcast %cst_19 : f32 to vector<2x32xf32>
    %55 = arith.addf %54, %53 : vector<2x32xf32>
    %56 = arith.divf %54, %55 : vector<2x32xf32>
    %57 = vector.extract_strided_slice %44 {offsets = [0, 64], sizes = [2, 32], strides = [1, 1]} : vector<2x128xf32> to vector<2x32xf32>
    %58 = math.tanh %57 : vector<2x32xf32>
    %59 = vector.extract_strided_slice %44 {offsets = [0, 96], sizes = [2, 32], strides = [1, 1]} : vector<2x128xf32> to vector<2x32xf32>
    %60 = arith.negf %59 : vector<2x32xf32>
    %61 = math.exp %60 : vector<2x32xf32>
    %cst_20 = arith.constant 1.000000e+00 : f32
    %62 = vector.broadcast %cst_20 : f32 to vector<2x32xf32>
    %63 = arith.addf %62, %61 : vector<2x32xf32>
    %64 = arith.divf %62, %63 : vector<2x32xf32>
    %65 = arith.mulf %56, %38 : vector<2x32xf32>
    %66 = arith.mulf %50, %58 : vector<2x32xf32>
    %67 = arith.addf %65, %66 : vector<2x32xf32>
    %68 = math.tanh %67 : vector<2x32xf32>
    %69 = arith.mulf %64, %68 : vector<2x32xf32>
    %70 = tpu.concatenate %2, %69 in 1 : vector<2x16xf32>, vector<2x32xf32> -> vector<2x48xf32>
    %cst_21 = arith.constant dense<0.000000e+00> : vector<2x128xf32>
    %71 = tpu.matmul %70, %8, %cst_21 {dimension_numbers = #tpu.dot_dimension_numbers<[1], [0], [0], [1], [0, 0, 1, 1], [], []>} : vector<2x48xf32>, vector<48x128xf32>, vector<2x128xf32> -> vector<2x128xf32>
    %72 = vector.broadcast %9 : vector<1x128xf32> to vector<2x128xf32>
    %73 = arith.addf %71, %72 : vector<2x128xf32>
    %74 = vector.extract_strided_slice %73 {offsets = [0, 0], sizes = [2, 32], strides = [1, 1]} : vector<2x128xf32> to vector<2x32xf32>
    %75 = arith.negf %74 : vector<2x32xf32>
    %76 = math.exp %75 : vector<2x32xf32>
    %cst_22 = arith.constant 1.000000e+00 : f32
    %77 = vector.broadcast %cst_22 : f32 to vector<2x32xf32>
    %78 = arith.addf %77, %76 : vector<2x32xf32>
    %79 = arith.divf %77, %78 : vector<2x32xf32>
    %80 = vector.extract_strided_slice %73 {offsets = [0, 32], sizes = [2, 32], strides = [1, 1]} : vector<2x128xf32> to vector<2x32xf32>
    %81 = arith.negf %80 : vector<2x32xf32>
    %82 = math.exp %81 : vector<2x32xf32>
    %cst_23 = arith.constant 1.000000e+00 : f32
    %83 = vector.broadcast %cst_23 : f32 to vector<2x32xf32>
    %84 = arith.addf %83, %82 : vector<2x32xf32>
    %85 = arith.divf %83, %84 : vector<2x32xf32>
    %86 = vector.extract_strided_slice %73 {offsets = [0, 64], sizes = [2, 32], strides = [1, 1]} : vector<2x128xf32> to vector<2x32xf32>
    %87 = math.tanh %86 : vector<2x32xf32>
    %88 = vector.extract_strided_slice %73 {offsets = [0, 96], sizes = [2, 32], strides = [1, 1]} : vector<2x128xf32> to vector<2x32xf32>
    %89 = arith.negf %88 : vector<2x32xf32>
    %90 = math.exp %89 : vector<2x32xf32>
    %cst_24 = arith.constant 1.000000e+00 : f32
    %91 = vector.broadcast %cst_24 : f32 to vector<2x32xf32>
    %92 = arith.addf %91, %90 : vector<2x32xf32>
    %93 = arith.divf %91, %92 : vector<2x32xf32>
    %94 = arith.mulf %85, %67 : vector<2x32xf32>
    %95 = arith.mulf %79, %87 : vector<2x32xf32>
    %96 = arith.addf %94, %95 : vector<2x32xf32>
    %97 = math.tanh %96 : vector<2x32xf32>
    %98 = arith.mulf %93, %97 : vector<2x32xf32>
    %99 = tpu.concatenate %3, %98 in 1 : vector<2x16xf32>, vector<2x32xf32> -> vector<2x48xf32>
    %cst_25 = arith.constant dense<0.000000e+00> : vector<2x128xf32>
    %100 = tpu.matmul %99, %8, %cst_25 {dimension_numbers = #tpu.dot_dimension_numbers<[1], [0], [0], [1], [0, 0, 1, 1], [], []>} : vector<2x48xf32>, vector<48x128xf32>, vector<2x128xf32> -> vector<2x128xf32>
    %101 = vector.broadcast %9 : vector<1x128xf32> to vector<2x128xf32>
    %102 = arith.addf %100, %101 : vector<2x128xf32>
    %103 = vector.extract_strided_slice %102 {offsets = [0, 0], sizes = [2, 32], strides = [1, 1]} : vector<2x128xf32> to vector<2x32xf32>
    %104 = arith.negf %103 : vector<2x32xf32>
    %105 = math.exp %104 : vector<2x32xf32>
    %cst_26 = arith.constant 1.000000e+00 : f32
    %106 = vector.broadcast %cst_26 : f32 to vector<2x32xf32>
    %107 = arith.addf %106, %105 : vector<2x32xf32>
    %108 = arith.divf %106, %107 : vector<2x32xf32>
    %109 = vector.extract_strided_slice %102 {offsets = [0, 32], sizes = [2, 32], strides = [1, 1]} : vector<2x128xf32> to vector<2x32xf32>
    %110 = arith.negf %109 : vector<2x32xf32>
    %111 = math.exp %110 : vector<2x32xf32>
    %cst_27 = arith.constant 1.000000e+00 : f32
    %112 = vector.broadcast %cst_27 : f32 to vector<2x32xf32>
    %113 = arith.addf %112, %111 : vector<2x32xf32>
    %114 = arith.divf %112, %113 : vector<2x32xf32>
    %115 = vector.extract_strided_slice %102 {offsets = [0, 64], sizes = [2, 32], strides = [1, 1]} : vector<2x128xf32> to vector<2x32xf32>
    %116 = math.tanh %115 : vector<2x32xf32>
    %117 = vector.extract_strided_slice %102 {offsets = [0, 96], sizes = [2, 32], strides = [1, 1]} : vector<2x128xf32> to vector<2x32xf32>
    %118 = arith.negf %117 : vector<2x32xf32>
    %119 = math.exp %118 : vector<2x32xf32>
    %cst_28 = arith.constant 1.000000e+00 : f32
    %120 = vector.broadcast %cst_28 : f32 to vector<2x32xf32>
    %121 = arith.addf %120, %119 : vector<2x32xf32>
    %122 = arith.divf %120, %121 : vector<2x32xf32>
    %123 = arith.mulf %114, %96 : vector<2x32xf32>
    %124 = arith.mulf %108, %116 : vector<2x32xf32>
    %125 = arith.addf %123, %124 : vector<2x32xf32>
    %126 = math.tanh %125 : vector<2x32xf32>
    %127 = arith.mulf %122, %126 : vector<2x32xf32>
    %128 = tpu.concatenate %4, %127 in 1 : vector<2x16xf32>, vector<2x32xf32> -> vector<2x48xf32>
    %cst_29 = arith.constant dense<0.000000e+00> : vector<2x128xf32>
    %129 = tpu.matmul %128, %8, %cst_29 {dimension_numbers = #tpu.dot_dimension_numbers<[1], [0], [0], [1], [0, 0, 1, 1], [], []>} : vector<2x48xf32>, vector<48x128xf32>, vector<2x128xf32> -> vector<2x128xf32>
    %130 = vector.broadcast %9 : vector<1x128xf32> to vector<2x128xf32>
    %131 = arith.addf %129, %130 : vector<2x128xf32>
    %132 = vector.extract_strided_slice %131 {offsets = [0, 0], sizes = [2, 32], strides = [1, 1]} : vector<2x128xf32> to vector<2x32xf32>
    %133 = arith.negf %132 : vector<2x32xf32>
    %134 = math.exp %133 : vector<2x32xf32>
    %cst_30 = arith.constant 1.000000e+00 : f32
    %135 = vector.broadcast %cst_30 : f32 to vector<2x32xf32>
    %136 = arith.addf %135, %134 : vector<2x32xf32>
    %137 = arith.divf %135, %136 : vector<2x32xf32>
    %138 = vector.extract_strided_slice %131 {offsets = [0, 32], sizes = [2, 32], strides = [1, 1]} : vector<2x128xf32> to vector<2x32xf32>
    %139 = arith.negf %138 : vector<2x32xf32>
    %140 = math.exp %139 : vector<2x32xf32>
    %cst_31 = arith.constant 1.000000e+00 : f32
    %141 = vector.broadcast %cst_31 : f32 to vector<2x32xf32>
    %142 = arith.addf %141, %140 : vector<2x32xf32>
    %143 = arith.divf %141, %142 : vector<2x32xf32>
    %144 = vector.extract_strided_slice %131 {offsets = [0, 64], sizes = [2, 32], strides = [1, 1]} : vector<2x128xf32> to vector<2x32xf32>
    %145 = math.tanh %144 : vector<2x32xf32>
    %146 = vector.extract_strided_slice %131 {offsets = [0, 96], sizes = [2, 32], strides = [1, 1]} : vector<2x128xf32> to vector<2x32xf32>
    %147 = arith.negf %146 : vector<2x32xf32>
    %148 = math.exp %147 : vector<2x32xf32>
    %cst_32 = arith.constant 1.000000e+00 : f32
    %149 = vector.broadcast %cst_32 : f32 to vector<2x32xf32>
    %150 = arith.addf %149, %148 : vector<2x32xf32>
    %151 = arith.divf %149, %150 : vector<2x32xf32>
    %152 = arith.mulf %143, %125 : vector<2x32xf32>
    %153 = arith.mulf %137, %145 : vector<2x32xf32>
    %154 = arith.addf %152, %153 : vector<2x32xf32>
    %155 = math.tanh %154 : vector<2x32xf32>
    %156 = arith.mulf %151, %155 : vector<2x32xf32>
    %157 = tpu.concatenate %5, %156 in 1 : vector<2x16xf32>, vector<2x32xf32> -> vector<2x48xf32>
    %cst_33 = arith.constant dense<0.000000e+00> : vector<2x128xf32>
    %158 = tpu.matmul %157, %8, %cst_33 {dimension_numbers = #tpu.dot_dimension_numbers<[1], [0], [0], [1], [0, 0, 1, 1], [], []>} : vector<2x48xf32>, vector<48x128xf32>, vector<2x128xf32> -> vector<2x128xf32>
    %159 = vector.broadcast %9 : vector<1x128xf32> to vector<2x128xf32>
    %160 = arith.addf %158, %159 : vector<2x128xf32>
    %161 = vector.extract_strided_slice %160 {offsets = [0, 0], sizes = [2, 32], strides = [1, 1]} : vector<2x128xf32> to vector<2x32xf32>
    %162 = arith.negf %161 : vector<2x32xf32>
    %163 = math.exp %162 : vector<2x32xf32>
    %cst_34 = arith.constant 1.000000e+00 : f32
    %164 = vector.broadcast %cst_34 : f32 to vector<2x32xf32>
    %165 = arith.addf %164, %163 : vector<2x32xf32>
    %166 = arith.divf %164, %165 : vector<2x32xf32>
    %167 = vector.extract_strided_slice %160 {offsets = [0, 32], sizes = [2, 32], strides = [1, 1]} : vector<2x128xf32> to vector<2x32xf32>
    %168 = arith.negf %167 : vector<2x32xf32>
    %169 = math.exp %168 : vector<2x32xf32>
    %cst_35 = arith.constant 1.000000e+00 : f32
    %170 = vector.broadcast %cst_35 : f32 to vector<2x32xf32>
    %171 = arith.addf %170, %169 : vector<2x32xf32>
    %172 = arith.divf %170, %171 : vector<2x32xf32>
    %173 = vector.extract_strided_slice %160 {offsets = [0, 64], sizes = [2, 32], strides = [1, 1]} : vector<2x128xf32> to vector<2x32xf32>
    %174 = math.tanh %173 : vector<2x32xf32>
    %175 = vector.extract_strided_slice %160 {offsets = [0, 96], sizes = [2, 32], strides = [1, 1]} : vector<2x128xf32> to vector<2x32xf32>
    %176 = arith.negf %175 : vector<2x32xf32>
    %177 = math.exp %176 : vector<2x32xf32>
    %cst_36 = arith.constant 1.000000e+00 : f32
    %178 = vector.broadcast %cst_36 : f32 to vector<2x32xf32>
    %179 = arith.addf %178, %177 : vector<2x32xf32>
    %180 = arith.divf %178, %179 : vector<2x32xf32>
    %181 = arith.mulf %172, %154 : vector<2x32xf32>
    %182 = arith.mulf %166, %174 : vector<2x32xf32>
    %183 = arith.addf %181, %182 : vector<2x32xf32>
    %184 = math.tanh %183 : vector<2x32xf32>
    %185 = arith.mulf %180, %184 : vector<2x32xf32>
    %186 = tpu.concatenate %6, %185 in 1 : vector<2x16xf32>, vector<2x32xf32> -> vector<2x48xf32>
    %cst_37 = arith.constant dense<0.000000e+00> : vector<2x128xf32>
    %187 = tpu.matmul %186, %8, %cst_37 {dimension_numbers = #tpu.dot_dimension_numbers<[1], [0], [0], [1], [0, 0, 1, 1], [], []>} : vector<2x48xf32>, vector<48x128xf32>, vector<2x128xf32> -> vector<2x128xf32>
    %188 = vector.broadcast %9 : vector<1x128xf32> to vector<2x128xf32>
    %189 = arith.addf %187, %188 : vector<2x128xf32>
    %190 = vector.extract_strided_slice %189 {offsets = [0, 0], sizes = [2, 32], strides = [1, 1]} : vector<2x128xf32> to vector<2x32xf32>
    %191 = arith.negf %190 : vector<2x32xf32>
    %192 = math.exp %191 : vector<2x32xf32>
    %cst_38 = arith.constant 1.000000e+00 : f32
    %193 = vector.broadcast %cst_38 : f32 to vector<2x32xf32>
    %194 = arith.addf %193, %192 : vector<2x32xf32>
    %195 = arith.divf %193, %194 : vector<2x32xf32>
    %196 = vector.extract_strided_slice %189 {offsets = [0, 32], sizes = [2, 32], strides = [1, 1]} : vector<2x128xf32> to vector<2x32xf32>
    %197 = arith.negf %196 : vector<2x32xf32>
    %198 = math.exp %197 : vector<2x32xf32>
    %cst_39 = arith.constant 1.000000e+00 : f32
    %199 = vector.broadcast %cst_39 : f32 to vector<2x32xf32>
    %200 = arith.addf %199, %198 : vector<2x32xf32>
    %201 = arith.divf %199, %200 : vector<2x32xf32>
    %202 = vector.extract_strided_slice %189 {offsets = [0, 64], sizes = [2, 32], strides = [1, 1]} : vector<2x128xf32> to vector<2x32xf32>
    %203 = math.tanh %202 : vector<2x32xf32>
    %204 = vector.extract_strided_slice %189 {offsets = [0, 96], sizes = [2, 32], strides = [1, 1]} : vector<2x128xf32> to vector<2x32xf32>
    %205 = arith.negf %204 : vector<2x32xf32>
    %206 = math.exp %205 : vector<2x32xf32>
    %cst_40 = arith.constant 1.000000e+00 : f32
    %207 = vector.broadcast %cst_40 : f32 to vector<2x32xf32>
    %208 = arith.addf %207, %206 : vector<2x32xf32>
    %209 = arith.divf %207, %208 : vector<2x32xf32>
    %210 = arith.mulf %201, %183 : vector<2x32xf32>
    %211 = arith.mulf %195, %203 : vector<2x32xf32>
    %212 = arith.addf %210, %211 : vector<2x32xf32>
    %213 = math.tanh %212 : vector<2x32xf32>
    %214 = arith.mulf %209, %213 : vector<2x32xf32>
    %215 = tpu.concatenate %7, %214 in 1 : vector<2x16xf32>, vector<2x32xf32> -> vector<2x48xf32>
    %cst_41 = arith.constant dense<0.000000e+00> : vector<2x128xf32>
    %216 = tpu.matmul %215, %8, %cst_41 {dimension_numbers = #tpu.dot_dimension_numbers<[1], [0], [0], [1], [0, 0, 1, 1], [], []>} : vector<2x48xf32>, vector<48x128xf32>, vector<2x128xf32> -> vector<2x128xf32>
    %217 = vector.broadcast %9 : vector<1x128xf32> to vector<2x128xf32>
    %218 = arith.addf %216, %217 : vector<2x128xf32>
    %219 = vector.extract_strided_slice %218 {offsets = [0, 0], sizes = [2, 32], strides = [1, 1]} : vector<2x128xf32> to vector<2x32xf32>
    %220 = arith.negf %219 : vector<2x32xf32>
    %221 = math.exp %220 : vector<2x32xf32>
    %cst_42 = arith.constant 1.000000e+00 : f32
    %222 = vector.broadcast %cst_42 : f32 to vector<2x32xf32>
    %223 = arith.addf %222, %221 : vector<2x32xf32>
    %224 = arith.divf %222, %223 : vector<2x32xf32>
    %225 = vector.extract_strided_slice %218 {offsets = [0, 32], sizes = [2, 32], strides = [1, 1]} : vector<2x128xf32> to vector<2x32xf32>
    %226 = arith.negf %225 : vector<2x32xf32>
    %227 = math.exp %226 : vector<2x32xf32>
    %cst_43 = arith.constant 1.000000e+00 : f32
    %228 = vector.broadcast %cst_43 : f32 to vector<2x32xf32>
    %229 = arith.addf %228, %227 : vector<2x32xf32>
    %230 = arith.divf %228, %229 : vector<2x32xf32>
    %231 = vector.extract_strided_slice %218 {offsets = [0, 64], sizes = [2, 32], strides = [1, 1]} : vector<2x128xf32> to vector<2x32xf32>
    %232 = math.tanh %231 : vector<2x32xf32>
    %233 = vector.extract_strided_slice %218 {offsets = [0, 96], sizes = [2, 32], strides = [1, 1]} : vector<2x128xf32> to vector<2x32xf32>
    %234 = arith.negf %233 : vector<2x32xf32>
    %235 = math.exp %234 : vector<2x32xf32>
    %cst_44 = arith.constant 1.000000e+00 : f32
    %236 = vector.broadcast %cst_44 : f32 to vector<2x32xf32>
    %237 = arith.addf %236, %235 : vector<2x32xf32>
    %238 = arith.divf %236, %237 : vector<2x32xf32>
    %239 = arith.mulf %230, %212 : vector<2x32xf32>
    %240 = arith.mulf %224, %232 : vector<2x32xf32>
    %241 = arith.addf %239, %240 : vector<2x32xf32>
    %242 = math.tanh %241 : vector<2x32xf32>
    %243 = arith.mulf %238, %242 : vector<2x32xf32>
    %c0_45 = arith.constant 0 : index
    %c0_46 = arith.constant 0 : index
    %244 = vector.load %arg3[%c0_45, %c0_46] : memref<64x128xf32, #tpu.memory_space<vmem>>, vector<64x128xf32>
    %c0_47 = arith.constant 0 : index
    %c0_48 = arith.constant 0 : index
    %245 = vector.load %arg4[%c0_47, %c0_48] : memref<1x128xf32, #tpu.memory_space<vmem>>, vector<1x128xf32>
    %cst_49 = arith.constant 0.000000e+00 : f32
    %246 = vector.broadcast %cst_49 : f32 to vector<2x32xf32>
    %cst_50 = arith.constant 0.000000e+00 : f32
    %247 = vector.broadcast %cst_50 : f32 to vector<2x32xf32>
    %248 = tpu.concatenate %40, %246 in 1 : vector<2x32xf32>, vector<2x32xf32> -> vector<2x64xf32>
    %cst_51 = arith.constant dense<0.000000e+00> : vector<2x128xf32>
    %249 = tpu.matmul %248, %244, %cst_51 {dimension_numbers = #tpu.dot_dimension_numbers<[1], [0], [0], [1], [0, 0, 1, 1], [], []>} : vector<2x64xf32>, vector<64x128xf32>, vector<2x128xf32> -> vector<2x128xf32>
    %250 = vector.broadcast %245 : vector<1x128xf32> to vector<2x128xf32>
    %251 = arith.addf %249, %250 : vector<2x128xf32>
    %252 = vector.extract_strided_slice %251 {offsets = [0, 0], sizes = [2, 32], strides = [1, 1]} : vector<2x128xf32> to vector<2x32xf32>
    %253 = arith.negf %252 : vector<2x32xf32>
    %254 = math.exp %253 : vector<2x32xf32>
    %cst_52 = arith.constant 1.000000e+00 : f32
    %255 = vector.broadcast %cst_52 : f32 to vector<2x32xf32>
    %256 = arith.addf %255, %254 : vector<2x32xf32>
    %257 = arith.divf %255, %256 : vector<2x32xf32>
    %258 = vector.extract_strided_slice %251 {offsets = [0, 32], sizes = [2, 32], strides = [1, 1]} : vector<2x128xf32> to vector<2x32xf32>
    %259 = arith.negf %258 : vector<2x32xf32>
    %260 = math.exp %259 : vector<2x32xf32>
    %cst_53 = arith.constant 1.000000e+00 : f32
    %261 = vector.broadcast %cst_53 : f32 to vector<2x32xf32>
    %262 = arith.addf %261, %260 : vector<2x32xf32>
    %263 = arith.divf %261, %262 : vector<2x32xf32>
    %264 = vector.extract_strided_slice %251 {offsets = [0, 64], sizes = [2, 32], strides = [1, 1]} : vector<2x128xf32> to vector<2x32xf32>
    %265 = math.tanh %264 : vector<2x32xf32>
    %266 = vector.extract_strided_slice %251 {offsets = [0, 96], sizes = [2, 32], strides = [1, 1]} : vector<2x128xf32> to vector<2x32xf32>
    %267 = arith.negf %266 : vector<2x32xf32>
    %268 = math.exp %267 : vector<2x32xf32>
    %cst_54 = arith.constant 1.000000e+00 : f32
    %269 = vector.broadcast %cst_54 : f32 to vector<2x32xf32>
    %270 = arith.addf %269, %268 : vector<2x32xf32>
    %271 = arith.divf %269, %270 : vector<2x32xf32>
    %272 = arith.mulf %263, %247 : vector<2x32xf32>
    %273 = arith.mulf %257, %265 : vector<2x32xf32>
    %274 = arith.addf %272, %273 : vector<2x32xf32>
    %275 = math.tanh %274 : vector<2x32xf32>
    %276 = arith.mulf %271, %275 : vector<2x32xf32>
    %277 = tpu.concatenate %69, %276 in 1 : vector<2x32xf32>, vector<2x32xf32> -> vector<2x64xf32>
    %cst_55 = arith.constant dense<0.000000e+00> : vector<2x128xf32>
    %278 = tpu.matmul %277, %244, %cst_55 {dimension_numbers = #tpu.dot_dimension_numbers<[1], [0], [0], [1], [0, 0, 1, 1], [], []>} : vector<2x64xf32>, vector<64x128xf32>, vector<2x128xf32> -> vector<2x128xf32>
    %279 = vector.broadcast %245 : vector<1x128xf32> to vector<2x128xf32>
    %280 = arith.addf %278, %279 : vector<2x128xf32>
    %281 = vector.extract_strided_slice %280 {offsets = [0, 0], sizes = [2, 32], strides = [1, 1]} : vector<2x128xf32> to vector<2x32xf32>
    %282 = arith.negf %281 : vector<2x32xf32>
    %283 = math.exp %282 : vector<2x32xf32>
    %cst_56 = arith.constant 1.000000e+00 : f32
    %284 = vector.broadcast %cst_56 : f32 to vector<2x32xf32>
    %285 = arith.addf %284, %283 : vector<2x32xf32>
    %286 = arith.divf %284, %285 : vector<2x32xf32>
    %287 = vector.extract_strided_slice %280 {offsets = [0, 32], sizes = [2, 32], strides = [1, 1]} : vector<2x128xf32> to vector<2x32xf32>
    %288 = arith.negf %287 : vector<2x32xf32>
    %289 = math.exp %288 : vector<2x32xf32>
    %cst_57 = arith.constant 1.000000e+00 : f32
    %290 = vector.broadcast %cst_57 : f32 to vector<2x32xf32>
    %291 = arith.addf %290, %289 : vector<2x32xf32>
    %292 = arith.divf %290, %291 : vector<2x32xf32>
    %293 = vector.extract_strided_slice %280 {offsets = [0, 64], sizes = [2, 32], strides = [1, 1]} : vector<2x128xf32> to vector<2x32xf32>
    %294 = math.tanh %293 : vector<2x32xf32>
    %295 = vector.extract_strided_slice %280 {offsets = [0, 96], sizes = [2, 32], strides = [1, 1]} : vector<2x128xf32> to vector<2x32xf32>
    %296 = arith.negf %295 : vector<2x32xf32>
    %297 = math.exp %296 : vector<2x32xf32>
    %cst_58 = arith.constant 1.000000e+00 : f32
    %298 = vector.broadcast %cst_58 : f32 to vector<2x32xf32>
    %299 = arith.addf %298, %297 : vector<2x32xf32>
    %300 = arith.divf %298, %299 : vector<2x32xf32>
    %301 = arith.mulf %292, %274 : vector<2x32xf32>
    %302 = arith.mulf %286, %294 : vector<2x32xf32>
    %303 = arith.addf %301, %302 : vector<2x32xf32>
    %304 = math.tanh %303 : vector<2x32xf32>
    %305 = arith.mulf %300, %304 : vector<2x32xf32>
    %306 = tpu.concatenate %98, %305 in 1 : vector<2x32xf32>, vector<2x32xf32> -> vector<2x64xf32>
    %cst_59 = arith.constant dense<0.000000e+00> : vector<2x128xf32>
    %307 = tpu.matmul %306, %244, %cst_59 {dimension_numbers = #tpu.dot_dimension_numbers<[1], [0], [0], [1], [0, 0, 1, 1], [], []>} : vector<2x64xf32>, vector<64x128xf32>, vector<2x128xf32> -> vector<2x128xf32>
    %308 = vector.broadcast %245 : vector<1x128xf32> to vector<2x128xf32>
    %309 = arith.addf %307, %308 : vector<2x128xf32>
    %310 = vector.extract_strided_slice %309 {offsets = [0, 0], sizes = [2, 32], strides = [1, 1]} : vector<2x128xf32> to vector<2x32xf32>
    %311 = arith.negf %310 : vector<2x32xf32>
    %312 = math.exp %311 : vector<2x32xf32>
    %cst_60 = arith.constant 1.000000e+00 : f32
    %313 = vector.broadcast %cst_60 : f32 to vector<2x32xf32>
    %314 = arith.addf %313, %312 : vector<2x32xf32>
    %315 = arith.divf %313, %314 : vector<2x32xf32>
    %316 = vector.extract_strided_slice %309 {offsets = [0, 32], sizes = [2, 32], strides = [1, 1]} : vector<2x128xf32> to vector<2x32xf32>
    %317 = arith.negf %316 : vector<2x32xf32>
    %318 = math.exp %317 : vector<2x32xf32>
    %cst_61 = arith.constant 1.000000e+00 : f32
    %319 = vector.broadcast %cst_61 : f32 to vector<2x32xf32>
    %320 = arith.addf %319, %318 : vector<2x32xf32>
    %321 = arith.divf %319, %320 : vector<2x32xf32>
    %322 = vector.extract_strided_slice %309 {offsets = [0, 64], sizes = [2, 32], strides = [1, 1]} : vector<2x128xf32> to vector<2x32xf32>
    %323 = math.tanh %322 : vector<2x32xf32>
    %324 = vector.extract_strided_slice %309 {offsets = [0, 96], sizes = [2, 32], strides = [1, 1]} : vector<2x128xf32> to vector<2x32xf32>
    %325 = arith.negf %324 : vector<2x32xf32>
    %326 = math.exp %325 : vector<2x32xf32>
    %cst_62 = arith.constant 1.000000e+00 : f32
    %327 = vector.broadcast %cst_62 : f32 to vector<2x32xf32>
    %328 = arith.addf %327, %326 : vector<2x32xf32>
    %329 = arith.divf %327, %328 : vector<2x32xf32>
    %330 = arith.mulf %321, %303 : vector<2x32xf32>
    %331 = arith.mulf %315, %323 : vector<2x32xf32>
    %332 = arith.addf %330, %331 : vector<2x32xf32>
    %333 = math.tanh %332 : vector<2x32xf32>
    %334 = arith.mulf %329, %333 : vector<2x32xf32>
    %335 = tpu.concatenate %127, %334 in 1 : vector<2x32xf32>, vector<2x32xf32> -> vector<2x64xf32>
    %cst_63 = arith.constant dense<0.000000e+00> : vector<2x128xf32>
    %336 = tpu.matmul %335, %244, %cst_63 {dimension_numbers = #tpu.dot_dimension_numbers<[1], [0], [0], [1], [0, 0, 1, 1], [], []>} : vector<2x64xf32>, vector<64x128xf32>, vector<2x128xf32> -> vector<2x128xf32>
    %337 = vector.broadcast %245 : vector<1x128xf32> to vector<2x128xf32>
    %338 = arith.addf %336, %337 : vector<2x128xf32>
    %339 = vector.extract_strided_slice %338 {offsets = [0, 0], sizes = [2, 32], strides = [1, 1]} : vector<2x128xf32> to vector<2x32xf32>
    %340 = arith.negf %339 : vector<2x32xf32>
    %341 = math.exp %340 : vector<2x32xf32>
    %cst_64 = arith.constant 1.000000e+00 : f32
    %342 = vector.broadcast %cst_64 : f32 to vector<2x32xf32>
    %343 = arith.addf %342, %341 : vector<2x32xf32>
    %344 = arith.divf %342, %343 : vector<2x32xf32>
    %345 = vector.extract_strided_slice %338 {offsets = [0, 32], sizes = [2, 32], strides = [1, 1]} : vector<2x128xf32> to vector<2x32xf32>
    %346 = arith.negf %345 : vector<2x32xf32>
    %347 = math.exp %346 : vector<2x32xf32>
    %cst_65 = arith.constant 1.000000e+00 : f32
    %348 = vector.broadcast %cst_65 : f32 to vector<2x32xf32>
    %349 = arith.addf %348, %347 : vector<2x32xf32>
    %350 = arith.divf %348, %349 : vector<2x32xf32>
    %351 = vector.extract_strided_slice %338 {offsets = [0, 64], sizes = [2, 32], strides = [1, 1]} : vector<2x128xf32> to vector<2x32xf32>
    %352 = math.tanh %351 : vector<2x32xf32>
    %353 = vector.extract_strided_slice %338 {offsets = [0, 96], sizes = [2, 32], strides = [1, 1]} : vector<2x128xf32> to vector<2x32xf32>
    %354 = arith.negf %353 : vector<2x32xf32>
    %355 = math.exp %354 : vector<2x32xf32>
    %cst_66 = arith.constant 1.000000e+00 : f32
    %356 = vector.broadcast %cst_66 : f32 to vector<2x32xf32>
    %357 = arith.addf %356, %355 : vector<2x32xf32>
    %358 = arith.divf %356, %357 : vector<2x32xf32>
    %359 = arith.mulf %350, %332 : vector<2x32xf32>
    %360 = arith.mulf %344, %352 : vector<2x32xf32>
    %361 = arith.addf %359, %360 : vector<2x32xf32>
    %362 = math.tanh %361 : vector<2x32xf32>
    %363 = arith.mulf %358, %362 : vector<2x32xf32>
    %364 = tpu.concatenate %156, %363 in 1 : vector<2x32xf32>, vector<2x32xf32> -> vector<2x64xf32>
    %cst_67 = arith.constant dense<0.000000e+00> : vector<2x128xf32>
    %365 = tpu.matmul %364, %244, %cst_67 {dimension_numbers = #tpu.dot_dimension_numbers<[1], [0], [0], [1], [0, 0, 1, 1], [], []>} : vector<2x64xf32>, vector<64x128xf32>, vector<2x128xf32> -> vector<2x128xf32>
    %366 = vector.broadcast %245 : vector<1x128xf32> to vector<2x128xf32>
    %367 = arith.addf %365, %366 : vector<2x128xf32>
    %368 = vector.extract_strided_slice %367 {offsets = [0, 0], sizes = [2, 32], strides = [1, 1]} : vector<2x128xf32> to vector<2x32xf32>
    %369 = arith.negf %368 : vector<2x32xf32>
    %370 = math.exp %369 : vector<2x32xf32>
    %cst_68 = arith.constant 1.000000e+00 : f32
    %371 = vector.broadcast %cst_68 : f32 to vector<2x32xf32>
    %372 = arith.addf %371, %370 : vector<2x32xf32>
    %373 = arith.divf %371, %372 : vector<2x32xf32>
    %374 = vector.extract_strided_slice %367 {offsets = [0, 32], sizes = [2, 32], strides = [1, 1]} : vector<2x128xf32> to vector<2x32xf32>
    %375 = arith.negf %374 : vector<2x32xf32>
    %376 = math.exp %375 : vector<2x32xf32>
    %cst_69 = arith.constant 1.000000e+00 : f32
    %377 = vector.broadcast %cst_69 : f32 to vector<2x32xf32>
    %378 = arith.addf %377, %376 : vector<2x32xf32>
    %379 = arith.divf %377, %378 : vector<2x32xf32>
    %380 = vector.extract_strided_slice %367 {offsets = [0, 64], sizes = [2, 32], strides = [1, 1]} : vector<2x128xf32> to vector<2x32xf32>
    %381 = math.tanh %380 : vector<2x32xf32>
    %382 = vector.extract_strided_slice %367 {offsets = [0, 96], sizes = [2, 32], strides = [1, 1]} : vector<2x128xf32> to vector<2x32xf32>
    %383 = arith.negf %382 : vector<2x32xf32>
    %384 = math.exp %383 : vector<2x32xf32>
    %cst_70 = arith.constant 1.000000e+00 : f32
    %385 = vector.broadcast %cst_70 : f32 to vector<2x32xf32>
    %386 = arith.addf %385, %384 : vector<2x32xf32>
    %387 = arith.divf %385, %386 : vector<2x32xf32>
    %388 = arith.mulf %379, %361 : vector<2x32xf32>
    %389 = arith.mulf %373, %381 : vector<2x32xf32>
    %390 = arith.addf %388, %389 : vector<2x32xf32>
    %391 = math.tanh %390 : vector<2x32xf32>
    %392 = arith.mulf %387, %391 : vector<2x32xf32>
    %393 = tpu.concatenate %185, %392 in 1 : vector<2x32xf32>, vector<2x32xf32> -> vector<2x64xf32>
    %cst_71 = arith.constant dense<0.000000e+00> : vector<2x128xf32>
    %394 = tpu.matmul %393, %244, %cst_71 {dimension_numbers = #tpu.dot_dimension_numbers<[1], [0], [0], [1], [0, 0, 1, 1], [], []>} : vector<2x64xf32>, vector<64x128xf32>, vector<2x128xf32> -> vector<2x128xf32>
    %395 = vector.broadcast %245 : vector<1x128xf32> to vector<2x128xf32>
    %396 = arith.addf %394, %395 : vector<2x128xf32>
    %397 = vector.extract_strided_slice %396 {offsets = [0, 0], sizes = [2, 32], strides = [1, 1]} : vector<2x128xf32> to vector<2x32xf32>
    %398 = arith.negf %397 : vector<2x32xf32>
    %399 = math.exp %398 : vector<2x32xf32>
    %cst_72 = arith.constant 1.000000e+00 : f32
    %400 = vector.broadcast %cst_72 : f32 to vector<2x32xf32>
    %401 = arith.addf %400, %399 : vector<2x32xf32>
    %402 = arith.divf %400, %401 : vector<2x32xf32>
    %403 = vector.extract_strided_slice %396 {offsets = [0, 32], sizes = [2, 32], strides = [1, 1]} : vector<2x128xf32> to vector<2x32xf32>
    %404 = arith.negf %403 : vector<2x32xf32>
    %405 = math.exp %404 : vector<2x32xf32>
    %cst_73 = arith.constant 1.000000e+00 : f32
    %406 = vector.broadcast %cst_73 : f32 to vector<2x32xf32>
    %407 = arith.addf %406, %405 : vector<2x32xf32>
    %408 = arith.divf %406, %407 : vector<2x32xf32>
    %409 = vector.extract_strided_slice %396 {offsets = [0, 64], sizes = [2, 32], strides = [1, 1]} : vector<2x128xf32> to vector<2x32xf32>
    %410 = math.tanh %409 : vector<2x32xf32>
    %411 = vector.extract_strided_slice %396 {offsets = [0, 96], sizes = [2, 32], strides = [1, 1]} : vector<2x128xf32> to vector<2x32xf32>
    %412 = arith.negf %411 : vector<2x32xf32>
    %413 = math.exp %412 : vector<2x32xf32>
    %cst_74 = arith.constant 1.000000e+00 : f32
    %414 = vector.broadcast %cst_74 : f32 to vector<2x32xf32>
    %415 = arith.addf %414, %413 : vector<2x32xf32>
    %416 = arith.divf %414, %415 : vector<2x32xf32>
    %417 = arith.mulf %408, %390 : vector<2x32xf32>
    %418 = arith.mulf %402, %410 : vector<2x32xf32>
    %419 = arith.addf %417, %418 : vector<2x32xf32>
    %420 = math.tanh %419 : vector<2x32xf32>
    %421 = arith.mulf %416, %420 : vector<2x32xf32>
    %422 = tpu.concatenate %214, %421 in 1 : vector<2x32xf32>, vector<2x32xf32> -> vector<2x64xf32>
    %cst_75 = arith.constant dense<0.000000e+00> : vector<2x128xf32>
    %423 = tpu.matmul %422, %244, %cst_75 {dimension_numbers = #tpu.dot_dimension_numbers<[1], [0], [0], [1], [0, 0, 1, 1], [], []>} : vector<2x64xf32>, vector<64x128xf32>, vector<2x128xf32> -> vector<2x128xf32>
    %424 = vector.broadcast %245 : vector<1x128xf32> to vector<2x128xf32>
    %425 = arith.addf %423, %424 : vector<2x128xf32>
    %426 = vector.extract_strided_slice %425 {offsets = [0, 0], sizes = [2, 32], strides = [1, 1]} : vector<2x128xf32> to vector<2x32xf32>
    %427 = arith.negf %426 : vector<2x32xf32>
    %428 = math.exp %427 : vector<2x32xf32>
    %cst_76 = arith.constant 1.000000e+00 : f32
    %429 = vector.broadcast %cst_76 : f32 to vector<2x32xf32>
    %430 = arith.addf %429, %428 : vector<2x32xf32>
    %431 = arith.divf %429, %430 : vector<2x32xf32>
    %432 = vector.extract_strided_slice %425 {offsets = [0, 32], sizes = [2, 32], strides = [1, 1]} : vector<2x128xf32> to vector<2x32xf32>
    %433 = arith.negf %432 : vector<2x32xf32>
    %434 = math.exp %433 : vector<2x32xf32>
    %cst_77 = arith.constant 1.000000e+00 : f32
    %435 = vector.broadcast %cst_77 : f32 to vector<2x32xf32>
    %436 = arith.addf %435, %434 : vector<2x32xf32>
    %437 = arith.divf %435, %436 : vector<2x32xf32>
    %438 = vector.extract_strided_slice %425 {offsets = [0, 64], sizes = [2, 32], strides = [1, 1]} : vector<2x128xf32> to vector<2x32xf32>
    %439 = math.tanh %438 : vector<2x32xf32>
    %440 = vector.extract_strided_slice %425 {offsets = [0, 96], sizes = [2, 32], strides = [1, 1]} : vector<2x128xf32> to vector<2x32xf32>
    %441 = arith.negf %440 : vector<2x32xf32>
    %442 = math.exp %441 : vector<2x32xf32>
    %cst_78 = arith.constant 1.000000e+00 : f32
    %443 = vector.broadcast %cst_78 : f32 to vector<2x32xf32>
    %444 = arith.addf %443, %442 : vector<2x32xf32>
    %445 = arith.divf %443, %444 : vector<2x32xf32>
    %446 = arith.mulf %437, %419 : vector<2x32xf32>
    %447 = arith.mulf %431, %439 : vector<2x32xf32>
    %448 = arith.addf %446, %447 : vector<2x32xf32>
    %449 = math.tanh %448 : vector<2x32xf32>
    %450 = arith.mulf %445, %449 : vector<2x32xf32>
    %451 = tpu.concatenate %243, %450 in 1 : vector<2x32xf32>, vector<2x32xf32> -> vector<2x64xf32>
    %cst_79 = arith.constant dense<0.000000e+00> : vector<2x128xf32>
    %452 = tpu.matmul %451, %244, %cst_79 {dimension_numbers = #tpu.dot_dimension_numbers<[1], [0], [0], [1], [0, 0, 1, 1], [], []>} : vector<2x64xf32>, vector<64x128xf32>, vector<2x128xf32> -> vector<2x128xf32>
    %453 = vector.broadcast %245 : vector<1x128xf32> to vector<2x128xf32>
    %454 = arith.addf %452, %453 : vector<2x128xf32>
    %455 = vector.extract_strided_slice %454 {offsets = [0, 0], sizes = [2, 32], strides = [1, 1]} : vector<2x128xf32> to vector<2x32xf32>
    %456 = arith.negf %455 : vector<2x32xf32>
    %457 = math.exp %456 : vector<2x32xf32>
    %cst_80 = arith.constant 1.000000e+00 : f32
    %458 = vector.broadcast %cst_80 : f32 to vector<2x32xf32>
    %459 = arith.addf %458, %457 : vector<2x32xf32>
    %460 = arith.divf %458, %459 : vector<2x32xf32>
    %461 = vector.extract_strided_slice %454 {offsets = [0, 32], sizes = [2, 32], strides = [1, 1]} : vector<2x128xf32> to vector<2x32xf32>
    %462 = arith.negf %461 : vector<2x32xf32>
    %463 = math.exp %462 : vector<2x32xf32>
    %cst_81 = arith.constant 1.000000e+00 : f32
    %464 = vector.broadcast %cst_81 : f32 to vector<2x32xf32>
    %465 = arith.addf %464, %463 : vector<2x32xf32>
    %466 = arith.divf %464, %465 : vector<2x32xf32>
    %467 = vector.extract_strided_slice %454 {offsets = [0, 64], sizes = [2, 32], strides = [1, 1]} : vector<2x128xf32> to vector<2x32xf32>
    %468 = math.tanh %467 : vector<2x32xf32>
    %469 = vector.extract_strided_slice %454 {offsets = [0, 96], sizes = [2, 32], strides = [1, 1]} : vector<2x128xf32> to vector<2x32xf32>
    %470 = arith.negf %469 : vector<2x32xf32>
    %471 = math.exp %470 : vector<2x32xf32>
    %cst_82 = arith.constant 1.000000e+00 : f32
    %472 = vector.broadcast %cst_82 : f32 to vector<2x32xf32>
    %473 = arith.addf %472, %471 : vector<2x32xf32>
    %474 = arith.divf %472, %473 : vector<2x32xf32>
    %475 = arith.mulf %466, %448 : vector<2x32xf32>
    %476 = arith.mulf %460, %468 : vector<2x32xf32>
    %477 = arith.addf %475, %476 : vector<2x32xf32>
    %478 = math.tanh %477 : vector<2x32xf32>
    %479 = arith.mulf %474, %478 : vector<2x32xf32>
    %c0_83 = arith.constant 0 : index
    %c0_84 = arith.constant 0 : index
    %480 = vector.load %arg5[%c0_83, %c0_84] : memref<48x64xf32, #tpu.memory_space<vmem>>, vector<48x64xf32>
    %c0_85 = arith.constant 0 : index
    %c0_86 = arith.constant 0 : index
    %481 = vector.load %arg6[%c0_85, %c0_86] : memref<1x64xf32, #tpu.memory_space<vmem>>, vector<1x64xf32>
    %cst_87 = arith.constant 0.000000e+00 : f32
    %482 = vector.broadcast %cst_87 : f32 to vector<2x16xf32>
    %cst_88 = arith.constant 0.000000e+00 : f32
    %483 = vector.broadcast %cst_88 : f32 to vector<2x16xf32>
    %484 = tpu.concatenate %276, %482 in 1 : vector<2x32xf32>, vector<2x16xf32> -> vector<2x48xf32>
    %cst_89 = arith.constant dense<0.000000e+00> : vector<2x64xf32>
    %485 = tpu.matmul %484, %480, %cst_89 {dimension_numbers = #tpu.dot_dimension_numbers<[1], [0], [0], [1], [0, 0, 1, 1], [], []>} : vector<2x48xf32>, vector<48x64xf32>, vector<2x64xf32> -> vector<2x64xf32>
    %486 = vector.broadcast %481 : vector<1x64xf32> to vector<2x64xf32>
    %487 = arith.addf %485, %486 : vector<2x64xf32>
    %488 = vector.extract_strided_slice %487 {offsets = [0, 0], sizes = [2, 16], strides = [1, 1]} : vector<2x64xf32> to vector<2x16xf32>
    %489 = arith.negf %488 : vector<2x16xf32>
    %490 = math.exp %489 : vector<2x16xf32>
    %cst_90 = arith.constant 1.000000e+00 : f32
    %491 = vector.broadcast %cst_90 : f32 to vector<2x16xf32>
    %492 = arith.addf %491, %490 : vector<2x16xf32>
    %493 = arith.divf %491, %492 : vector<2x16xf32>
    %494 = vector.extract_strided_slice %487 {offsets = [0, 16], sizes = [2, 16], strides = [1, 1]} : vector<2x64xf32> to vector<2x16xf32>
    %495 = arith.negf %494 : vector<2x16xf32>
    %496 = math.exp %495 : vector<2x16xf32>
    %cst_91 = arith.constant 1.000000e+00 : f32
    %497 = vector.broadcast %cst_91 : f32 to vector<2x16xf32>
    %498 = arith.addf %497, %496 : vector<2x16xf32>
    %499 = arith.divf %497, %498 : vector<2x16xf32>
    %500 = vector.extract_strided_slice %487 {offsets = [0, 32], sizes = [2, 16], strides = [1, 1]} : vector<2x64xf32> to vector<2x16xf32>
    %501 = math.tanh %500 : vector<2x16xf32>
    %502 = vector.extract_strided_slice %487 {offsets = [0, 48], sizes = [2, 16], strides = [1, 1]} : vector<2x64xf32> to vector<2x16xf32>
    %503 = arith.negf %502 : vector<2x16xf32>
    %504 = math.exp %503 : vector<2x16xf32>
    %cst_92 = arith.constant 1.000000e+00 : f32
    %505 = vector.broadcast %cst_92 : f32 to vector<2x16xf32>
    %506 = arith.addf %505, %504 : vector<2x16xf32>
    %507 = arith.divf %505, %506 : vector<2x16xf32>
    %508 = arith.mulf %499, %483 : vector<2x16xf32>
    %509 = arith.mulf %493, %501 : vector<2x16xf32>
    %510 = arith.addf %508, %509 : vector<2x16xf32>
    %511 = math.tanh %510 : vector<2x16xf32>
    %512 = arith.mulf %507, %511 : vector<2x16xf32>
    %513 = tpu.concatenate %305, %512 in 1 : vector<2x32xf32>, vector<2x16xf32> -> vector<2x48xf32>
    %cst_93 = arith.constant dense<0.000000e+00> : vector<2x64xf32>
    %514 = tpu.matmul %513, %480, %cst_93 {dimension_numbers = #tpu.dot_dimension_numbers<[1], [0], [0], [1], [0, 0, 1, 1], [], []>} : vector<2x48xf32>, vector<48x64xf32>, vector<2x64xf32> -> vector<2x64xf32>
    %515 = vector.broadcast %481 : vector<1x64xf32> to vector<2x64xf32>
    %516 = arith.addf %514, %515 : vector<2x64xf32>
    %517 = vector.extract_strided_slice %516 {offsets = [0, 0], sizes = [2, 16], strides = [1, 1]} : vector<2x64xf32> to vector<2x16xf32>
    %518 = arith.negf %517 : vector<2x16xf32>
    %519 = math.exp %518 : vector<2x16xf32>
    %cst_94 = arith.constant 1.000000e+00 : f32
    %520 = vector.broadcast %cst_94 : f32 to vector<2x16xf32>
    %521 = arith.addf %520, %519 : vector<2x16xf32>
    %522 = arith.divf %520, %521 : vector<2x16xf32>
    %523 = vector.extract_strided_slice %516 {offsets = [0, 16], sizes = [2, 16], strides = [1, 1]} : vector<2x64xf32> to vector<2x16xf32>
    %524 = arith.negf %523 : vector<2x16xf32>
    %525 = math.exp %524 : vector<2x16xf32>
    %cst_95 = arith.constant 1.000000e+00 : f32
    %526 = vector.broadcast %cst_95 : f32 to vector<2x16xf32>
    %527 = arith.addf %526, %525 : vector<2x16xf32>
    %528 = arith.divf %526, %527 : vector<2x16xf32>
    %529 = vector.extract_strided_slice %516 {offsets = [0, 32], sizes = [2, 16], strides = [1, 1]} : vector<2x64xf32> to vector<2x16xf32>
    %530 = math.tanh %529 : vector<2x16xf32>
    %531 = vector.extract_strided_slice %516 {offsets = [0, 48], sizes = [2, 16], strides = [1, 1]} : vector<2x64xf32> to vector<2x16xf32>
    %532 = arith.negf %531 : vector<2x16xf32>
    %533 = math.exp %532 : vector<2x16xf32>
    %cst_96 = arith.constant 1.000000e+00 : f32
    %534 = vector.broadcast %cst_96 : f32 to vector<2x16xf32>
    %535 = arith.addf %534, %533 : vector<2x16xf32>
    %536 = arith.divf %534, %535 : vector<2x16xf32>
    %537 = arith.mulf %528, %510 : vector<2x16xf32>
    %538 = arith.mulf %522, %530 : vector<2x16xf32>
    %539 = arith.addf %537, %538 : vector<2x16xf32>
    %540 = math.tanh %539 : vector<2x16xf32>
    %541 = arith.mulf %536, %540 : vector<2x16xf32>
    %542 = tpu.concatenate %334, %541 in 1 : vector<2x32xf32>, vector<2x16xf32> -> vector<2x48xf32>
    %cst_97 = arith.constant dense<0.000000e+00> : vector<2x64xf32>
    %543 = tpu.matmul %542, %480, %cst_97 {dimension_numbers = #tpu.dot_dimension_numbers<[1], [0], [0], [1], [0, 0, 1, 1], [], []>} : vector<2x48xf32>, vector<48x64xf32>, vector<2x64xf32> -> vector<2x64xf32>
    %544 = vector.broadcast %481 : vector<1x64xf32> to vector<2x64xf32>
    %545 = arith.addf %543, %544 : vector<2x64xf32>
    %546 = vector.extract_strided_slice %545 {offsets = [0, 0], sizes = [2, 16], strides = [1, 1]} : vector<2x64xf32> to vector<2x16xf32>
    %547 = arith.negf %546 : vector<2x16xf32>
    %548 = math.exp %547 : vector<2x16xf32>
    %cst_98 = arith.constant 1.000000e+00 : f32
    %549 = vector.broadcast %cst_98 : f32 to vector<2x16xf32>
    %550 = arith.addf %549, %548 : vector<2x16xf32>
    %551 = arith.divf %549, %550 : vector<2x16xf32>
    %552 = vector.extract_strided_slice %545 {offsets = [0, 16], sizes = [2, 16], strides = [1, 1]} : vector<2x64xf32> to vector<2x16xf32>
    %553 = arith.negf %552 : vector<2x16xf32>
    %554 = math.exp %553 : vector<2x16xf32>
    %cst_99 = arith.constant 1.000000e+00 : f32
    %555 = vector.broadcast %cst_99 : f32 to vector<2x16xf32>
    %556 = arith.addf %555, %554 : vector<2x16xf32>
    %557 = arith.divf %555, %556 : vector<2x16xf32>
    %558 = vector.extract_strided_slice %545 {offsets = [0, 32], sizes = [2, 16], strides = [1, 1]} : vector<2x64xf32> to vector<2x16xf32>
    %559 = math.tanh %558 : vector<2x16xf32>
    %560 = vector.extract_strided_slice %545 {offsets = [0, 48], sizes = [2, 16], strides = [1, 1]} : vector<2x64xf32> to vector<2x16xf32>
    %561 = arith.negf %560 : vector<2x16xf32>
    %562 = math.exp %561 : vector<2x16xf32>
    %cst_100 = arith.constant 1.000000e+00 : f32
    %563 = vector.broadcast %cst_100 : f32 to vector<2x16xf32>
    %564 = arith.addf %563, %562 : vector<2x16xf32>
    %565 = arith.divf %563, %564 : vector<2x16xf32>
    %566 = arith.mulf %557, %539 : vector<2x16xf32>
    %567 = arith.mulf %551, %559 : vector<2x16xf32>
    %568 = arith.addf %566, %567 : vector<2x16xf32>
    %569 = math.tanh %568 : vector<2x16xf32>
    %570 = arith.mulf %565, %569 : vector<2x16xf32>
    %571 = tpu.concatenate %363, %570 in 1 : vector<2x32xf32>, vector<2x16xf32> -> vector<2x48xf32>
    %cst_101 = arith.constant dense<0.000000e+00> : vector<2x64xf32>
    %572 = tpu.matmul %571, %480, %cst_101 {dimension_numbers = #tpu.dot_dimension_numbers<[1], [0], [0], [1], [0, 0, 1, 1], [], []>} : vector<2x48xf32>, vector<48x64xf32>, vector<2x64xf32> -> vector<2x64xf32>
    %573 = vector.broadcast %481 : vector<1x64xf32> to vector<2x64xf32>
    %574 = arith.addf %572, %573 : vector<2x64xf32>
    %575 = vector.extract_strided_slice %574 {offsets = [0, 0], sizes = [2, 16], strides = [1, 1]} : vector<2x64xf32> to vector<2x16xf32>
    %576 = arith.negf %575 : vector<2x16xf32>
    %577 = math.exp %576 : vector<2x16xf32>
    %cst_102 = arith.constant 1.000000e+00 : f32
    %578 = vector.broadcast %cst_102 : f32 to vector<2x16xf32>
    %579 = arith.addf %578, %577 : vector<2x16xf32>
    %580 = arith.divf %578, %579 : vector<2x16xf32>
    %581 = vector.extract_strided_slice %574 {offsets = [0, 16], sizes = [2, 16], strides = [1, 1]} : vector<2x64xf32> to vector<2x16xf32>
    %582 = arith.negf %581 : vector<2x16xf32>
    %583 = math.exp %582 : vector<2x16xf32>
    %cst_103 = arith.constant 1.000000e+00 : f32
    %584 = vector.broadcast %cst_103 : f32 to vector<2x16xf32>
    %585 = arith.addf %584, %583 : vector<2x16xf32>
    %586 = arith.divf %584, %585 : vector<2x16xf32>
    %587 = vector.extract_strided_slice %574 {offsets = [0, 32], sizes = [2, 16], strides = [1, 1]} : vector<2x64xf32> to vector<2x16xf32>
    %588 = math.tanh %587 : vector<2x16xf32>
    %589 = vector.extract_strided_slice %574 {offsets = [0, 48], sizes = [2, 16], strides = [1, 1]} : vector<2x64xf32> to vector<2x16xf32>
    %590 = arith.negf %589 : vector<2x16xf32>
    %591 = math.exp %590 : vector<2x16xf32>
    %cst_104 = arith.constant 1.000000e+00 : f32
    %592 = vector.broadcast %cst_104 : f32 to vector<2x16xf32>
    %593 = arith.addf %592, %591 : vector<2x16xf32>
    %594 = arith.divf %592, %593 : vector<2x16xf32>
    %595 = arith.mulf %586, %568 : vector<2x16xf32>
    %596 = arith.mulf %580, %588 : vector<2x16xf32>
    %597 = arith.addf %595, %596 : vector<2x16xf32>
    %598 = math.tanh %597 : vector<2x16xf32>
    %599 = arith.mulf %594, %598 : vector<2x16xf32>
    %600 = tpu.concatenate %392, %599 in 1 : vector<2x32xf32>, vector<2x16xf32> -> vector<2x48xf32>
    %cst_105 = arith.constant dense<0.000000e+00> : vector<2x64xf32>
    %601 = tpu.matmul %600, %480, %cst_105 {dimension_numbers = #tpu.dot_dimension_numbers<[1], [0], [0], [1], [0, 0, 1, 1], [], []>} : vector<2x48xf32>, vector<48x64xf32>, vector<2x64xf32> -> vector<2x64xf32>
    %602 = vector.broadcast %481 : vector<1x64xf32> to vector<2x64xf32>
    %603 = arith.addf %601, %602 : vector<2x64xf32>
    %604 = vector.extract_strided_slice %603 {offsets = [0, 0], sizes = [2, 16], strides = [1, 1]} : vector<2x64xf32> to vector<2x16xf32>
    %605 = arith.negf %604 : vector<2x16xf32>
    %606 = math.exp %605 : vector<2x16xf32>
    %cst_106 = arith.constant 1.000000e+00 : f32
    %607 = vector.broadcast %cst_106 : f32 to vector<2x16xf32>
    %608 = arith.addf %607, %606 : vector<2x16xf32>
    %609 = arith.divf %607, %608 : vector<2x16xf32>
    %610 = vector.extract_strided_slice %603 {offsets = [0, 16], sizes = [2, 16], strides = [1, 1]} : vector<2x64xf32> to vector<2x16xf32>
    %611 = arith.negf %610 : vector<2x16xf32>
    %612 = math.exp %611 : vector<2x16xf32>
    %cst_107 = arith.constant 1.000000e+00 : f32
    %613 = vector.broadcast %cst_107 : f32 to vector<2x16xf32>
    %614 = arith.addf %613, %612 : vector<2x16xf32>
    %615 = arith.divf %613, %614 : vector<2x16xf32>
    %616 = vector.extract_strided_slice %603 {offsets = [0, 32], sizes = [2, 16], strides = [1, 1]} : vector<2x64xf32> to vector<2x16xf32>
    %617 = math.tanh %616 : vector<2x16xf32>
    %618 = vector.extract_strided_slice %603 {offsets = [0, 48], sizes = [2, 16], strides = [1, 1]} : vector<2x64xf32> to vector<2x16xf32>
    %619 = arith.negf %618 : vector<2x16xf32>
    %620 = math.exp %619 : vector<2x16xf32>
    %cst_108 = arith.constant 1.000000e+00 : f32
    %621 = vector.broadcast %cst_108 : f32 to vector<2x16xf32>
    %622 = arith.addf %621, %620 : vector<2x16xf32>
    %623 = arith.divf %621, %622 : vector<2x16xf32>
    %624 = arith.mulf %615, %597 : vector<2x16xf32>
    %625 = arith.mulf %609, %617 : vector<2x16xf32>
    %626 = arith.addf %624, %625 : vector<2x16xf32>
    %627 = math.tanh %626 : vector<2x16xf32>
    %628 = arith.mulf %623, %627 : vector<2x16xf32>
    %629 = tpu.concatenate %421, %628 in 1 : vector<2x32xf32>, vector<2x16xf32> -> vector<2x48xf32>
    %cst_109 = arith.constant dense<0.000000e+00> : vector<2x64xf32>
    %630 = tpu.matmul %629, %480, %cst_109 {dimension_numbers = #tpu.dot_dimension_numbers<[1], [0], [0], [1], [0, 0, 1, 1], [], []>} : vector<2x48xf32>, vector<48x64xf32>, vector<2x64xf32> -> vector<2x64xf32>
    %631 = vector.broadcast %481 : vector<1x64xf32> to vector<2x64xf32>
    %632 = arith.addf %630, %631 : vector<2x64xf32>
    %633 = vector.extract_strided_slice %632 {offsets = [0, 0], sizes = [2, 16], strides = [1, 1]} : vector<2x64xf32> to vector<2x16xf32>
    %634 = arith.negf %633 : vector<2x16xf32>
    %635 = math.exp %634 : vector<2x16xf32>
    %cst_110 = arith.constant 1.000000e+00 : f32
    %636 = vector.broadcast %cst_110 : f32 to vector<2x16xf32>
    %637 = arith.addf %636, %635 : vector<2x16xf32>
    %638 = arith.divf %636, %637 : vector<2x16xf32>
    %639 = vector.extract_strided_slice %632 {offsets = [0, 16], sizes = [2, 16], strides = [1, 1]} : vector<2x64xf32> to vector<2x16xf32>
    %640 = arith.negf %639 : vector<2x16xf32>
    %641 = math.exp %640 : vector<2x16xf32>
    %cst_111 = arith.constant 1.000000e+00 : f32
    %642 = vector.broadcast %cst_111 : f32 to vector<2x16xf32>
    %643 = arith.addf %642, %641 : vector<2x16xf32>
    %644 = arith.divf %642, %643 : vector<2x16xf32>
    %645 = vector.extract_strided_slice %632 {offsets = [0, 32], sizes = [2, 16], strides = [1, 1]} : vector<2x64xf32> to vector<2x16xf32>
    %646 = math.tanh %645 : vector<2x16xf32>
    %647 = vector.extract_strided_slice %632 {offsets = [0, 48], sizes = [2, 16], strides = [1, 1]} : vector<2x64xf32> to vector<2x16xf32>
    %648 = arith.negf %647 : vector<2x16xf32>
    %649 = math.exp %648 : vector<2x16xf32>
    %cst_112 = arith.constant 1.000000e+00 : f32
    %650 = vector.broadcast %cst_112 : f32 to vector<2x16xf32>
    %651 = arith.addf %650, %649 : vector<2x16xf32>
    %652 = arith.divf %650, %651 : vector<2x16xf32>
    %653 = arith.mulf %644, %626 : vector<2x16xf32>
    %654 = arith.mulf %638, %646 : vector<2x16xf32>
    %655 = arith.addf %653, %654 : vector<2x16xf32>
    %656 = math.tanh %655 : vector<2x16xf32>
    %657 = arith.mulf %652, %656 : vector<2x16xf32>
    %658 = tpu.concatenate %450, %657 in 1 : vector<2x32xf32>, vector<2x16xf32> -> vector<2x48xf32>
    %cst_113 = arith.constant dense<0.000000e+00> : vector<2x64xf32>
    %659 = tpu.matmul %658, %480, %cst_113 {dimension_numbers = #tpu.dot_dimension_numbers<[1], [0], [0], [1], [0, 0, 1, 1], [], []>} : vector<2x48xf32>, vector<48x64xf32>, vector<2x64xf32> -> vector<2x64xf32>
    %660 = vector.broadcast %481 : vector<1x64xf32> to vector<2x64xf32>
    %661 = arith.addf %659, %660 : vector<2x64xf32>
    %662 = vector.extract_strided_slice %661 {offsets = [0, 0], sizes = [2, 16], strides = [1, 1]} : vector<2x64xf32> to vector<2x16xf32>
    %663 = arith.negf %662 : vector<2x16xf32>
    %664 = math.exp %663 : vector<2x16xf32>
    %cst_114 = arith.constant 1.000000e+00 : f32
    %665 = vector.broadcast %cst_114 : f32 to vector<2x16xf32>
    %666 = arith.addf %665, %664 : vector<2x16xf32>
    %667 = arith.divf %665, %666 : vector<2x16xf32>
    %668 = vector.extract_strided_slice %661 {offsets = [0, 16], sizes = [2, 16], strides = [1, 1]} : vector<2x64xf32> to vector<2x16xf32>
    %669 = arith.negf %668 : vector<2x16xf32>
    %670 = math.exp %669 : vector<2x16xf32>
    %cst_115 = arith.constant 1.000000e+00 : f32
    %671 = vector.broadcast %cst_115 : f32 to vector<2x16xf32>
    %672 = arith.addf %671, %670 : vector<2x16xf32>
    %673 = arith.divf %671, %672 : vector<2x16xf32>
    %674 = vector.extract_strided_slice %661 {offsets = [0, 32], sizes = [2, 16], strides = [1, 1]} : vector<2x64xf32> to vector<2x16xf32>
    %675 = math.tanh %674 : vector<2x16xf32>
    %676 = vector.extract_strided_slice %661 {offsets = [0, 48], sizes = [2, 16], strides = [1, 1]} : vector<2x64xf32> to vector<2x16xf32>
    %677 = arith.negf %676 : vector<2x16xf32>
    %678 = math.exp %677 : vector<2x16xf32>
    %cst_116 = arith.constant 1.000000e+00 : f32
    %679 = vector.broadcast %cst_116 : f32 to vector<2x16xf32>
    %680 = arith.addf %679, %678 : vector<2x16xf32>
    %681 = arith.divf %679, %680 : vector<2x16xf32>
    %682 = arith.mulf %673, %655 : vector<2x16xf32>
    %683 = arith.mulf %667, %675 : vector<2x16xf32>
    %684 = arith.addf %682, %683 : vector<2x16xf32>
    %685 = math.tanh %684 : vector<2x16xf32>
    %686 = arith.mulf %681, %685 : vector<2x16xf32>
    %687 = tpu.concatenate %479, %686 in 1 : vector<2x32xf32>, vector<2x16xf32> -> vector<2x48xf32>
    %cst_117 = arith.constant dense<0.000000e+00> : vector<2x64xf32>
    %688 = tpu.matmul %687, %480, %cst_117 {dimension_numbers = #tpu.dot_dimension_numbers<[1], [0], [0], [1], [0, 0, 1, 1], [], []>} : vector<2x48xf32>, vector<48x64xf32>, vector<2x64xf32> -> vector<2x64xf32>
    %689 = vector.broadcast %481 : vector<1x64xf32> to vector<2x64xf32>
    %690 = arith.addf %688, %689 : vector<2x64xf32>
    %691 = vector.extract_strided_slice %690 {offsets = [0, 0], sizes = [2, 16], strides = [1, 1]} : vector<2x64xf32> to vector<2x16xf32>
    %692 = arith.negf %691 : vector<2x16xf32>
    %693 = math.exp %692 : vector<2x16xf32>
    %cst_118 = arith.constant 1.000000e+00 : f32
    %694 = vector.broadcast %cst_118 : f32 to vector<2x16xf32>
    %695 = arith.addf %694, %693 : vector<2x16xf32>
    %696 = arith.divf %694, %695 : vector<2x16xf32>
    %697 = vector.extract_strided_slice %690 {offsets = [0, 16], sizes = [2, 16], strides = [1, 1]} : vector<2x64xf32> to vector<2x16xf32>
    %698 = arith.negf %697 : vector<2x16xf32>
    %699 = math.exp %698 : vector<2x16xf32>
    %cst_119 = arith.constant 1.000000e+00 : f32
    %700 = vector.broadcast %cst_119 : f32 to vector<2x16xf32>
    %701 = arith.addf %700, %699 : vector<2x16xf32>
    %702 = arith.divf %700, %701 : vector<2x16xf32>
    %703 = vector.extract_strided_slice %690 {offsets = [0, 32], sizes = [2, 16], strides = [1, 1]} : vector<2x64xf32> to vector<2x16xf32>
    %704 = math.tanh %703 : vector<2x16xf32>
    %705 = vector.extract_strided_slice %690 {offsets = [0, 48], sizes = [2, 16], strides = [1, 1]} : vector<2x64xf32> to vector<2x16xf32>
    %706 = arith.negf %705 : vector<2x16xf32>
    %707 = math.exp %706 : vector<2x16xf32>
    %cst_120 = arith.constant 1.000000e+00 : f32
    %708 = vector.broadcast %cst_120 : f32 to vector<2x16xf32>
    %709 = arith.addf %708, %707 : vector<2x16xf32>
    %710 = arith.divf %708, %709 : vector<2x16xf32>
    %711 = arith.mulf %702, %684 : vector<2x16xf32>
    %712 = arith.mulf %696, %704 : vector<2x16xf32>
    %713 = arith.addf %711, %712 : vector<2x16xf32>
    %714 = math.tanh %713 : vector<2x16xf32>
    %715 = arith.mulf %710, %714 : vector<2x16xf32>
    %c0_121 = arith.constant 0 : index
    %c0_122 = arith.constant 0 : index
    %716 = vector.load %arg7[%c0_121, %c0_122] : memref<32x64xf32, #tpu.memory_space<vmem>>, vector<32x64xf32>
    %c0_123 = arith.constant 0 : index
    %c0_124 = arith.constant 0 : index
    %717 = vector.load %arg8[%c0_123, %c0_124] : memref<1x64xf32, #tpu.memory_space<vmem>>, vector<1x64xf32>
    %cst_125 = arith.constant 0.000000e+00 : f32
    %718 = vector.broadcast %cst_125 : f32 to vector<2x16xf32>
    %cst_126 = arith.constant 0.000000e+00 : f32
    %719 = vector.broadcast %cst_126 : f32 to vector<2x16xf32>
    %720 = tpu.concatenate %512, %718 in 1 : vector<2x16xf32>, vector<2x16xf32> -> vector<2x32xf32>
    %cst_127 = arith.constant dense<0.000000e+00> : vector<2x64xf32>
    %721 = tpu.matmul %720, %716, %cst_127 {dimension_numbers = #tpu.dot_dimension_numbers<[1], [0], [0], [1], [0, 0, 1, 1], [], []>} : vector<2x32xf32>, vector<32x64xf32>, vector<2x64xf32> -> vector<2x64xf32>
    %722 = vector.broadcast %717 : vector<1x64xf32> to vector<2x64xf32>
    %723 = arith.addf %721, %722 : vector<2x64xf32>
    %724 = vector.extract_strided_slice %723 {offsets = [0, 0], sizes = [2, 16], strides = [1, 1]} : vector<2x64xf32> to vector<2x16xf32>
    %725 = arith.negf %724 : vector<2x16xf32>
    %726 = math.exp %725 : vector<2x16xf32>
    %cst_128 = arith.constant 1.000000e+00 : f32
    %727 = vector.broadcast %cst_128 : f32 to vector<2x16xf32>
    %728 = arith.addf %727, %726 : vector<2x16xf32>
    %729 = arith.divf %727, %728 : vector<2x16xf32>
    %730 = vector.extract_strided_slice %723 {offsets = [0, 16], sizes = [2, 16], strides = [1, 1]} : vector<2x64xf32> to vector<2x16xf32>
    %731 = arith.negf %730 : vector<2x16xf32>
    %732 = math.exp %731 : vector<2x16xf32>
    %cst_129 = arith.constant 1.000000e+00 : f32
    %733 = vector.broadcast %cst_129 : f32 to vector<2x16xf32>
    %734 = arith.addf %733, %732 : vector<2x16xf32>
    %735 = arith.divf %733, %734 : vector<2x16xf32>
    %736 = vector.extract_strided_slice %723 {offsets = [0, 32], sizes = [2, 16], strides = [1, 1]} : vector<2x64xf32> to vector<2x16xf32>
    %737 = math.tanh %736 : vector<2x16xf32>
    %738 = vector.extract_strided_slice %723 {offsets = [0, 48], sizes = [2, 16], strides = [1, 1]} : vector<2x64xf32> to vector<2x16xf32>
    %739 = arith.negf %738 : vector<2x16xf32>
    %740 = math.exp %739 : vector<2x16xf32>
    %cst_130 = arith.constant 1.000000e+00 : f32
    %741 = vector.broadcast %cst_130 : f32 to vector<2x16xf32>
    %742 = arith.addf %741, %740 : vector<2x16xf32>
    %743 = arith.divf %741, %742 : vector<2x16xf32>
    %744 = arith.mulf %735, %719 : vector<2x16xf32>
    %745 = arith.mulf %729, %737 : vector<2x16xf32>
    %746 = arith.addf %744, %745 : vector<2x16xf32>
    %747 = math.tanh %746 : vector<2x16xf32>
    %748 = arith.mulf %743, %747 : vector<2x16xf32>
    %749 = tpu.concatenate %541, %748 in 1 : vector<2x16xf32>, vector<2x16xf32> -> vector<2x32xf32>
    %cst_131 = arith.constant dense<0.000000e+00> : vector<2x64xf32>
    %750 = tpu.matmul %749, %716, %cst_131 {dimension_numbers = #tpu.dot_dimension_numbers<[1], [0], [0], [1], [0, 0, 1, 1], [], []>} : vector<2x32xf32>, vector<32x64xf32>, vector<2x64xf32> -> vector<2x64xf32>
    %751 = vector.broadcast %717 : vector<1x64xf32> to vector<2x64xf32>
    %752 = arith.addf %750, %751 : vector<2x64xf32>
    %753 = vector.extract_strided_slice %752 {offsets = [0, 0], sizes = [2, 16], strides = [1, 1]} : vector<2x64xf32> to vector<2x16xf32>
    %754 = arith.negf %753 : vector<2x16xf32>
    %755 = math.exp %754 : vector<2x16xf32>
    %cst_132 = arith.constant 1.000000e+00 : f32
    %756 = vector.broadcast %cst_132 : f32 to vector<2x16xf32>
    %757 = arith.addf %756, %755 : vector<2x16xf32>
    %758 = arith.divf %756, %757 : vector<2x16xf32>
    %759 = vector.extract_strided_slice %752 {offsets = [0, 16], sizes = [2, 16], strides = [1, 1]} : vector<2x64xf32> to vector<2x16xf32>
    %760 = arith.negf %759 : vector<2x16xf32>
    %761 = math.exp %760 : vector<2x16xf32>
    %cst_133 = arith.constant 1.000000e+00 : f32
    %762 = vector.broadcast %cst_133 : f32 to vector<2x16xf32>
    %763 = arith.addf %762, %761 : vector<2x16xf32>
    %764 = arith.divf %762, %763 : vector<2x16xf32>
    %765 = vector.extract_strided_slice %752 {offsets = [0, 32], sizes = [2, 16], strides = [1, 1]} : vector<2x64xf32> to vector<2x16xf32>
    %766 = math.tanh %765 : vector<2x16xf32>
    %767 = vector.extract_strided_slice %752 {offsets = [0, 48], sizes = [2, 16], strides = [1, 1]} : vector<2x64xf32> to vector<2x16xf32>
    %768 = arith.negf %767 : vector<2x16xf32>
    %769 = math.exp %768 : vector<2x16xf32>
    %cst_134 = arith.constant 1.000000e+00 : f32
    %770 = vector.broadcast %cst_134 : f32 to vector<2x16xf32>
    %771 = arith.addf %770, %769 : vector<2x16xf32>
    %772 = arith.divf %770, %771 : vector<2x16xf32>
    %773 = arith.mulf %764, %746 : vector<2x16xf32>
    %774 = arith.mulf %758, %766 : vector<2x16xf32>
    %775 = arith.addf %773, %774 : vector<2x16xf32>
    %776 = math.tanh %775 : vector<2x16xf32>
    %777 = arith.mulf %772, %776 : vector<2x16xf32>
    %778 = tpu.concatenate %570, %777 in 1 : vector<2x16xf32>, vector<2x16xf32> -> vector<2x32xf32>
    %cst_135 = arith.constant dense<0.000000e+00> : vector<2x64xf32>
    %779 = tpu.matmul %778, %716, %cst_135 {dimension_numbers = #tpu.dot_dimension_numbers<[1], [0], [0], [1], [0, 0, 1, 1], [], []>} : vector<2x32xf32>, vector<32x64xf32>, vector<2x64xf32> -> vector<2x64xf32>
    %780 = vector.broadcast %717 : vector<1x64xf32> to vector<2x64xf32>
    %781 = arith.addf %779, %780 : vector<2x64xf32>
    %782 = vector.extract_strided_slice %781 {offsets = [0, 0], sizes = [2, 16], strides = [1, 1]} : vector<2x64xf32> to vector<2x16xf32>
    %783 = arith.negf %782 : vector<2x16xf32>
    %784 = math.exp %783 : vector<2x16xf32>
    %cst_136 = arith.constant 1.000000e+00 : f32
    %785 = vector.broadcast %cst_136 : f32 to vector<2x16xf32>
    %786 = arith.addf %785, %784 : vector<2x16xf32>
    %787 = arith.divf %785, %786 : vector<2x16xf32>
    %788 = vector.extract_strided_slice %781 {offsets = [0, 16], sizes = [2, 16], strides = [1, 1]} : vector<2x64xf32> to vector<2x16xf32>
    %789 = arith.negf %788 : vector<2x16xf32>
    %790 = math.exp %789 : vector<2x16xf32>
    %cst_137 = arith.constant 1.000000e+00 : f32
    %791 = vector.broadcast %cst_137 : f32 to vector<2x16xf32>
    %792 = arith.addf %791, %790 : vector<2x16xf32>
    %793 = arith.divf %791, %792 : vector<2x16xf32>
    %794 = vector.extract_strided_slice %781 {offsets = [0, 32], sizes = [2, 16], strides = [1, 1]} : vector<2x64xf32> to vector<2x16xf32>
    %795 = math.tanh %794 : vector<2x16xf32>
    %796 = vector.extract_strided_slice %781 {offsets = [0, 48], sizes = [2, 16], strides = [1, 1]} : vector<2x64xf32> to vector<2x16xf32>
    %797 = arith.negf %796 : vector<2x16xf32>
    %798 = math.exp %797 : vector<2x16xf32>
    %cst_138 = arith.constant 1.000000e+00 : f32
    %799 = vector.broadcast %cst_138 : f32 to vector<2x16xf32>
    %800 = arith.addf %799, %798 : vector<2x16xf32>
    %801 = arith.divf %799, %800 : vector<2x16xf32>
    %802 = arith.mulf %793, %775 : vector<2x16xf32>
    %803 = arith.mulf %787, %795 : vector<2x16xf32>
    %804 = arith.addf %802, %803 : vector<2x16xf32>
    %805 = math.tanh %804 : vector<2x16xf32>
    %806 = arith.mulf %801, %805 : vector<2x16xf32>
    %807 = tpu.concatenate %599, %806 in 1 : vector<2x16xf32>, vector<2x16xf32> -> vector<2x32xf32>
    %cst_139 = arith.constant dense<0.000000e+00> : vector<2x64xf32>
    %808 = tpu.matmul %807, %716, %cst_139 {dimension_numbers = #tpu.dot_dimension_numbers<[1], [0], [0], [1], [0, 0, 1, 1], [], []>} : vector<2x32xf32>, vector<32x64xf32>, vector<2x64xf32> -> vector<2x64xf32>
    %809 = vector.broadcast %717 : vector<1x64xf32> to vector<2x64xf32>
    %810 = arith.addf %808, %809 : vector<2x64xf32>
    %811 = vector.extract_strided_slice %810 {offsets = [0, 0], sizes = [2, 16], strides = [1, 1]} : vector<2x64xf32> to vector<2x16xf32>
    %812 = arith.negf %811 : vector<2x16xf32>
    %813 = math.exp %812 : vector<2x16xf32>
    %cst_140 = arith.constant 1.000000e+00 : f32
    %814 = vector.broadcast %cst_140 : f32 to vector<2x16xf32>
    %815 = arith.addf %814, %813 : vector<2x16xf32>
    %816 = arith.divf %814, %815 : vector<2x16xf32>
    %817 = vector.extract_strided_slice %810 {offsets = [0, 16], sizes = [2, 16], strides = [1, 1]} : vector<2x64xf32> to vector<2x16xf32>
    %818 = arith.negf %817 : vector<2x16xf32>
    %819 = math.exp %818 : vector<2x16xf32>
    %cst_141 = arith.constant 1.000000e+00 : f32
    %820 = vector.broadcast %cst_141 : f32 to vector<2x16xf32>
    %821 = arith.addf %820, %819 : vector<2x16xf32>
    %822 = arith.divf %820, %821 : vector<2x16xf32>
    %823 = vector.extract_strided_slice %810 {offsets = [0, 32], sizes = [2, 16], strides = [1, 1]} : vector<2x64xf32> to vector<2x16xf32>
    %824 = math.tanh %823 : vector<2x16xf32>
    %825 = vector.extract_strided_slice %810 {offsets = [0, 48], sizes = [2, 16], strides = [1, 1]} : vector<2x64xf32> to vector<2x16xf32>
    %826 = arith.negf %825 : vector<2x16xf32>
    %827 = math.exp %826 : vector<2x16xf32>
    %cst_142 = arith.constant 1.000000e+00 : f32
    %828 = vector.broadcast %cst_142 : f32 to vector<2x16xf32>
    %829 = arith.addf %828, %827 : vector<2x16xf32>
    %830 = arith.divf %828, %829 : vector<2x16xf32>
    %831 = arith.mulf %822, %804 : vector<2x16xf32>
    %832 = arith.mulf %816, %824 : vector<2x16xf32>
    %833 = arith.addf %831, %832 : vector<2x16xf32>
    %834 = math.tanh %833 : vector<2x16xf32>
    %835 = arith.mulf %830, %834 : vector<2x16xf32>
    %836 = tpu.concatenate %628, %835 in 1 : vector<2x16xf32>, vector<2x16xf32> -> vector<2x32xf32>
    %cst_143 = arith.constant dense<0.000000e+00> : vector<2x64xf32>
    %837 = tpu.matmul %836, %716, %cst_143 {dimension_numbers = #tpu.dot_dimension_numbers<[1], [0], [0], [1], [0, 0, 1, 1], [], []>} : vector<2x32xf32>, vector<32x64xf32>, vector<2x64xf32> -> vector<2x64xf32>
    %838 = vector.broadcast %717 : vector<1x64xf32> to vector<2x64xf32>
    %839 = arith.addf %837, %838 : vector<2x64xf32>
    %840 = vector.extract_strided_slice %839 {offsets = [0, 0], sizes = [2, 16], strides = [1, 1]} : vector<2x64xf32> to vector<2x16xf32>
    %841 = arith.negf %840 : vector<2x16xf32>
    %842 = math.exp %841 : vector<2x16xf32>
    %cst_144 = arith.constant 1.000000e+00 : f32
    %843 = vector.broadcast %cst_144 : f32 to vector<2x16xf32>
    %844 = arith.addf %843, %842 : vector<2x16xf32>
    %845 = arith.divf %843, %844 : vector<2x16xf32>
    %846 = vector.extract_strided_slice %839 {offsets = [0, 16], sizes = [2, 16], strides = [1, 1]} : vector<2x64xf32> to vector<2x16xf32>
    %847 = arith.negf %846 : vector<2x16xf32>
    %848 = math.exp %847 : vector<2x16xf32>
    %cst_145 = arith.constant 1.000000e+00 : f32
    %849 = vector.broadcast %cst_145 : f32 to vector<2x16xf32>
    %850 = arith.addf %849, %848 : vector<2x16xf32>
    %851 = arith.divf %849, %850 : vector<2x16xf32>
    %852 = vector.extract_strided_slice %839 {offsets = [0, 32], sizes = [2, 16], strides = [1, 1]} : vector<2x64xf32> to vector<2x16xf32>
    %853 = math.tanh %852 : vector<2x16xf32>
    %854 = vector.extract_strided_slice %839 {offsets = [0, 48], sizes = [2, 16], strides = [1, 1]} : vector<2x64xf32> to vector<2x16xf32>
    %855 = arith.negf %854 : vector<2x16xf32>
    %856 = math.exp %855 : vector<2x16xf32>
    %cst_146 = arith.constant 1.000000e+00 : f32
    %857 = vector.broadcast %cst_146 : f32 to vector<2x16xf32>
    %858 = arith.addf %857, %856 : vector<2x16xf32>
    %859 = arith.divf %857, %858 : vector<2x16xf32>
    %860 = arith.mulf %851, %833 : vector<2x16xf32>
    %861 = arith.mulf %845, %853 : vector<2x16xf32>
    %862 = arith.addf %860, %861 : vector<2x16xf32>
    %863 = math.tanh %862 : vector<2x16xf32>
    %864 = arith.mulf %859, %863 : vector<2x16xf32>
    %865 = tpu.concatenate %657, %864 in 1 : vector<2x16xf32>, vector<2x16xf32> -> vector<2x32xf32>
    %cst_147 = arith.constant dense<0.000000e+00> : vector<2x64xf32>
    %866 = tpu.matmul %865, %716, %cst_147 {dimension_numbers = #tpu.dot_dimension_numbers<[1], [0], [0], [1], [0, 0, 1, 1], [], []>} : vector<2x32xf32>, vector<32x64xf32>, vector<2x64xf32> -> vector<2x64xf32>
    %867 = vector.broadcast %717 : vector<1x64xf32> to vector<2x64xf32>
    %868 = arith.addf %866, %867 : vector<2x64xf32>
    %869 = vector.extract_strided_slice %868 {offsets = [0, 0], sizes = [2, 16], strides = [1, 1]} : vector<2x64xf32> to vector<2x16xf32>
    %870 = arith.negf %869 : vector<2x16xf32>
    %871 = math.exp %870 : vector<2x16xf32>
    %cst_148 = arith.constant 1.000000e+00 : f32
    %872 = vector.broadcast %cst_148 : f32 to vector<2x16xf32>
    %873 = arith.addf %872, %871 : vector<2x16xf32>
    %874 = arith.divf %872, %873 : vector<2x16xf32>
    %875 = vector.extract_strided_slice %868 {offsets = [0, 16], sizes = [2, 16], strides = [1, 1]} : vector<2x64xf32> to vector<2x16xf32>
    %876 = arith.negf %875 : vector<2x16xf32>
    %877 = math.exp %876 : vector<2x16xf32>
    %cst_149 = arith.constant 1.000000e+00 : f32
    %878 = vector.broadcast %cst_149 : f32 to vector<2x16xf32>
    %879 = arith.addf %878, %877 : vector<2x16xf32>
    %880 = arith.divf %878, %879 : vector<2x16xf32>
    %881 = vector.extract_strided_slice %868 {offsets = [0, 32], sizes = [2, 16], strides = [1, 1]} : vector<2x64xf32> to vector<2x16xf32>
    %882 = math.tanh %881 : vector<2x16xf32>
    %883 = vector.extract_strided_slice %868 {offsets = [0, 48], sizes = [2, 16], strides = [1, 1]} : vector<2x64xf32> to vector<2x16xf32>
    %884 = arith.negf %883 : vector<2x16xf32>
    %885 = math.exp %884 : vector<2x16xf32>
    %cst_150 = arith.constant 1.000000e+00 : f32
    %886 = vector.broadcast %cst_150 : f32 to vector<2x16xf32>
    %887 = arith.addf %886, %885 : vector<2x16xf32>
    %888 = arith.divf %886, %887 : vector<2x16xf32>
    %889 = arith.mulf %880, %862 : vector<2x16xf32>
    %890 = arith.mulf %874, %882 : vector<2x16xf32>
    %891 = arith.addf %889, %890 : vector<2x16xf32>
    %892 = math.tanh %891 : vector<2x16xf32>
    %893 = arith.mulf %888, %892 : vector<2x16xf32>
    %894 = tpu.concatenate %686, %893 in 1 : vector<2x16xf32>, vector<2x16xf32> -> vector<2x32xf32>
    %cst_151 = arith.constant dense<0.000000e+00> : vector<2x64xf32>
    %895 = tpu.matmul %894, %716, %cst_151 {dimension_numbers = #tpu.dot_dimension_numbers<[1], [0], [0], [1], [0, 0, 1, 1], [], []>} : vector<2x32xf32>, vector<32x64xf32>, vector<2x64xf32> -> vector<2x64xf32>
    %896 = vector.broadcast %717 : vector<1x64xf32> to vector<2x64xf32>
    %897 = arith.addf %895, %896 : vector<2x64xf32>
    %898 = vector.extract_strided_slice %897 {offsets = [0, 0], sizes = [2, 16], strides = [1, 1]} : vector<2x64xf32> to vector<2x16xf32>
    %899 = arith.negf %898 : vector<2x16xf32>
    %900 = math.exp %899 : vector<2x16xf32>
    %cst_152 = arith.constant 1.000000e+00 : f32
    %901 = vector.broadcast %cst_152 : f32 to vector<2x16xf32>
    %902 = arith.addf %901, %900 : vector<2x16xf32>
    %903 = arith.divf %901, %902 : vector<2x16xf32>
    %904 = vector.extract_strided_slice %897 {offsets = [0, 16], sizes = [2, 16], strides = [1, 1]} : vector<2x64xf32> to vector<2x16xf32>
    %905 = arith.negf %904 : vector<2x16xf32>
    %906 = math.exp %905 : vector<2x16xf32>
    %cst_153 = arith.constant 1.000000e+00 : f32
    %907 = vector.broadcast %cst_153 : f32 to vector<2x16xf32>
    %908 = arith.addf %907, %906 : vector<2x16xf32>
    %909 = arith.divf %907, %908 : vector<2x16xf32>
    %910 = vector.extract_strided_slice %897 {offsets = [0, 32], sizes = [2, 16], strides = [1, 1]} : vector<2x64xf32> to vector<2x16xf32>
    %911 = math.tanh %910 : vector<2x16xf32>
    %912 = vector.extract_strided_slice %897 {offsets = [0, 48], sizes = [2, 16], strides = [1, 1]} : vector<2x64xf32> to vector<2x16xf32>
    %913 = arith.negf %912 : vector<2x16xf32>
    %914 = math.exp %913 : vector<2x16xf32>
    %cst_154 = arith.constant 1.000000e+00 : f32
    %915 = vector.broadcast %cst_154 : f32 to vector<2x16xf32>
    %916 = arith.addf %915, %914 : vector<2x16xf32>
    %917 = arith.divf %915, %916 : vector<2x16xf32>
    %918 = arith.mulf %909, %891 : vector<2x16xf32>
    %919 = arith.mulf %903, %911 : vector<2x16xf32>
    %920 = arith.addf %918, %919 : vector<2x16xf32>
    %921 = math.tanh %920 : vector<2x16xf32>
    %922 = arith.mulf %917, %921 : vector<2x16xf32>
    %923 = tpu.concatenate %715, %922 in 1 : vector<2x16xf32>, vector<2x16xf32> -> vector<2x32xf32>
    %cst_155 = arith.constant dense<0.000000e+00> : vector<2x64xf32>
    %924 = tpu.matmul %923, %716, %cst_155 {dimension_numbers = #tpu.dot_dimension_numbers<[1], [0], [0], [1], [0, 0, 1, 1], [], []>} : vector<2x32xf32>, vector<32x64xf32>, vector<2x64xf32> -> vector<2x64xf32>
    %925 = vector.broadcast %717 : vector<1x64xf32> to vector<2x64xf32>
    %926 = arith.addf %924, %925 : vector<2x64xf32>
    %927 = vector.extract_strided_slice %926 {offsets = [0, 0], sizes = [2, 16], strides = [1, 1]} : vector<2x64xf32> to vector<2x16xf32>
    %928 = arith.negf %927 : vector<2x16xf32>
    %929 = math.exp %928 : vector<2x16xf32>
    %cst_156 = arith.constant 1.000000e+00 : f32
    %930 = vector.broadcast %cst_156 : f32 to vector<2x16xf32>
    %931 = arith.addf %930, %929 : vector<2x16xf32>
    %932 = arith.divf %930, %931 : vector<2x16xf32>
    %933 = vector.extract_strided_slice %926 {offsets = [0, 16], sizes = [2, 16], strides = [1, 1]} : vector<2x64xf32> to vector<2x16xf32>
    %934 = arith.negf %933 : vector<2x16xf32>
    %935 = math.exp %934 : vector<2x16xf32>
    %cst_157 = arith.constant 1.000000e+00 : f32
    %936 = vector.broadcast %cst_157 : f32 to vector<2x16xf32>
    %937 = arith.addf %936, %935 : vector<2x16xf32>
    %938 = arith.divf %936, %937 : vector<2x16xf32>
    %939 = vector.extract_strided_slice %926 {offsets = [0, 32], sizes = [2, 16], strides = [1, 1]} : vector<2x64xf32> to vector<2x16xf32>
    %940 = math.tanh %939 : vector<2x16xf32>
    %941 = vector.extract_strided_slice %926 {offsets = [0, 48], sizes = [2, 16], strides = [1, 1]} : vector<2x64xf32> to vector<2x16xf32>
    %942 = arith.negf %941 : vector<2x16xf32>
    %943 = math.exp %942 : vector<2x16xf32>
    %cst_158 = arith.constant 1.000000e+00 : f32
    %944 = vector.broadcast %cst_158 : f32 to vector<2x16xf32>
    %945 = arith.addf %944, %943 : vector<2x16xf32>
    %946 = arith.divf %944, %945 : vector<2x16xf32>
    %947 = arith.mulf %938, %920 : vector<2x16xf32>
    %948 = arith.mulf %932, %940 : vector<2x16xf32>
    %949 = arith.addf %947, %948 : vector<2x16xf32>
    %950 = math.tanh %949 : vector<2x16xf32>
    %951 = arith.mulf %946, %950 : vector<2x16xf32>
    %c0_159 = arith.constant 0 : index
    %c0_160 = arith.constant 0 : index
    %952 = vector.load %arg9[%c0_159, %c0_160] : memref<16x16xf32, #tpu.memory_space<vmem>>, vector<16x16xf32>
    %c0_161 = arith.constant 0 : index
    %c0_162 = arith.constant 0 : index
    %953 = vector.load %arg10[%c0_161, %c0_162] : memref<1x16xf32, #tpu.memory_space<vmem>>, vector<1x16xf32>
    %cst_163 = arith.constant dense<0.000000e+00> : vector<2x16xf32>
    %954 = tpu.matmul %748, %952, %cst_163 {dimension_numbers = #tpu.dot_dimension_numbers<[1], [0], [0], [1], [0, 0, 1, 1], [], []>} : vector<2x16xf32>, vector<16x16xf32>, vector<2x16xf32> -> vector<2x16xf32>
    %955 = vector.broadcast %953 : vector<1x16xf32> to vector<2x16xf32>
    %956 = arith.addf %954, %955 : vector<2x16xf32>
    %c0_164 = arith.constant 0 : index
    %c0_165 = arith.constant 0 : index
    %957 = vector.load %arg11[%c0_164, %c0_165] : memref<2x128xf32, #tpu.memory_space<vmem>>, vector<2x16xf32>
    tpu.vector_store %arg11[%c0_164, %c0_165], %956 {strides = array<i32>} : memref<2x128xf32, #tpu.memory_space<vmem>>, vector<2x16xf32>,
    %cst_166 = arith.constant dense<0.000000e+00> : vector<2x16xf32>
    %958 = tpu.matmul %777, %952, %cst_166 {dimension_numbers = #tpu.dot_dimension_numbers<[1], [0], [0], [1], [0, 0, 1, 1], [], []>} : vector<2x16xf32>, vector<16x16xf32>, vector<2x16xf32> -> vector<2x16xf32>
    %959 = vector.broadcast %953 : vector<1x16xf32> to vector<2x16xf32>
    %960 = arith.addf %958, %959 : vector<2x16xf32>
    %c0_167 = arith.constant 0 : index
    %c16_168 = arith.constant 16 : index
    %961 = vector.load %arg11[%c0_167, %c16_168] : memref<2x128xf32, #tpu.memory_space<vmem>>, vector<2x16xf32>
    tpu.vector_store %arg11[%c0_167, %c16_168], %960 {strides = array<i32>} : memref<2x128xf32, #tpu.memory_space<vmem>>, vector<2x16xf32>,
    %cst_169 = arith.constant dense<0.000000e+00> : vector<2x16xf32>
    %962 = tpu.matmul %806, %952, %cst_169 {dimension_numbers = #tpu.dot_dimension_numbers<[1], [0], [0], [1], [0, 0, 1, 1], [], []>} : vector<2x16xf32>, vector<16x16xf32>, vector<2x16xf32> -> vector<2x16xf32>
    %963 = vector.broadcast %953 : vector<1x16xf32> to vector<2x16xf32>
    %964 = arith.addf %962, %963 : vector<2x16xf32>
    %c0_170 = arith.constant 0 : index
    %c32_171 = arith.constant 32 : index
    %965 = vector.load %arg11[%c0_170, %c32_171] : memref<2x128xf32, #tpu.memory_space<vmem>>, vector<2x16xf32>
    tpu.vector_store %arg11[%c0_170, %c32_171], %964 {strides = array<i32>} : memref<2x128xf32, #tpu.memory_space<vmem>>, vector<2x16xf32>,
    %cst_172 = arith.constant dense<0.000000e+00> : vector<2x16xf32>
    %966 = tpu.matmul %835, %952, %cst_172 {dimension_numbers = #tpu.dot_dimension_numbers<[1], [0], [0], [1], [0, 0, 1, 1], [], []>} : vector<2x16xf32>, vector<16x16xf32>, vector<2x16xf32> -> vector<2x16xf32>
    %967 = vector.broadcast %953 : vector<1x16xf32> to vector<2x16xf32>
    %968 = arith.addf %966, %967 : vector<2x16xf32>
    %c0_173 = arith.constant 0 : index
    %c48_174 = arith.constant 48 : index
    %969 = vector.load %arg11[%c0_173, %c48_174] : memref<2x128xf32, #tpu.memory_space<vmem>>, vector<2x16xf32>
    tpu.vector_store %arg11[%c0_173, %c48_174], %968 {strides = array<i32>} : memref<2x128xf32, #tpu.memory_space<vmem>>, vector<2x16xf32>,
    %cst_175 = arith.constant dense<0.000000e+00> : vector<2x16xf32>
    %970 = tpu.matmul %864, %952, %cst_175 {dimension_numbers = #tpu.dot_dimension_numbers<[1], [0], [0], [1], [0, 0, 1, 1], [], []>} : vector<2x16xf32>, vector<16x16xf32>, vector<2x16xf32> -> vector<2x16xf32>
    %971 = vector.broadcast %953 : vector<1x16xf32> to vector<2x16xf32>
    %972 = arith.addf %970, %971 : vector<2x16xf32>
    %c0_176 = arith.constant 0 : index
    %c64_177 = arith.constant 64 : index
    %973 = vector.load %arg11[%c0_176, %c64_177] : memref<2x128xf32, #tpu.memory_space<vmem>>, vector<2x16xf32>
    tpu.vector_store %arg11[%c0_176, %c64_177], %972 {strides = array<i32>} : memref<2x128xf32, #tpu.memory_space<vmem>>, vector<2x16xf32>,
    %cst_178 = arith.constant dense<0.000000e+00> : vector<2x16xf32>
    %974 = tpu.matmul %893, %952, %cst_178 {dimension_numbers = #tpu.dot_dimension_numbers<[1], [0], [0], [1], [0, 0, 1, 1], [], []>} : vector<2x16xf32>, vector<16x16xf32>, vector<2x16xf32> -> vector<2x16xf32>
    %975 = vector.broadcast %953 : vector<1x16xf32> to vector<2x16xf32>
    %976 = arith.addf %974, %975 : vector<2x16xf32>
    %c0_179 = arith.constant 0 : index
    %c80_180 = arith.constant 80 : index
    %977 = vector.load %arg11[%c0_179, %c80_180] : memref<2x128xf32, #tpu.memory_space<vmem>>, vector<2x16xf32>
    tpu.vector_store %arg11[%c0_179, %c80_180], %976 {strides = array<i32>} : memref<2x128xf32, #tpu.memory_space<vmem>>, vector<2x16xf32>,
    %cst_181 = arith.constant dense<0.000000e+00> : vector<2x16xf32>
    %978 = tpu.matmul %922, %952, %cst_181 {dimension_numbers = #tpu.dot_dimension_numbers<[1], [0], [0], [1], [0, 0, 1, 1], [], []>} : vector<2x16xf32>, vector<16x16xf32>, vector<2x16xf32> -> vector<2x16xf32>
    %979 = vector.broadcast %953 : vector<1x16xf32> to vector<2x16xf32>
    %980 = arith.addf %978, %979 : vector<2x16xf32>
    %c0_182 = arith.constant 0 : index
    %c96_183 = arith.constant 96 : index
    %981 = vector.load %arg11[%c0_182, %c96_183] : memref<2x128xf32, #tpu.memory_space<vmem>>, vector<2x16xf32>
    tpu.vector_store %arg11[%c0_182, %c96_183], %980 {strides = array<i32>} : memref<2x128xf32, #tpu.memory_space<vmem>>, vector<2x16xf32>,
    %cst_184 = arith.constant dense<0.000000e+00> : vector<2x16xf32>
    %982 = tpu.matmul %951, %952, %cst_184 {dimension_numbers = #tpu.dot_dimension_numbers<[1], [0], [0], [1], [0, 0, 1, 1], [], []>} : vector<2x16xf32>, vector<16x16xf32>, vector<2x16xf32> -> vector<2x16xf32>
    %983 = vector.broadcast %953 : vector<1x16xf32> to vector<2x16xf32>
    %984 = arith.addf %982, %983 : vector<2x16xf32>
    %c0_185 = arith.constant 0 : index
    %c112_186 = arith.constant 112 : index
    %985 = vector.load %arg11[%c0_185, %c112_186] : memref<2x128xf32, #tpu.memory_space<vmem>>, vector<2x16xf32>
    tpu.vector_store %arg11[%c0_185, %c112_186], %984 {strides = array<i32>} : memref<2x128xf32, #tpu.memory_space<vmem>>, vector<2x16xf32>,
    return
  }
}

</mosaic_0001>

<bundles_post_ra>
// kernel: lstm_autoencoder_forward.1
= control target key start
LH: loop header
LB: loop body
LE: loop exit
PB: predicated region body
PF: predicated region fallthrough
CT: control target
= control target key end

     0   :  { %v5219_v0 = vmov 0.0   ;;  %vm5220_vm0 = vmmov 0   ;;  %vm46_vm1 = vcmask 130048   ;;  %vm54_vm2 = vcmask 392192   ;;  %s5221_s12 = smov 64   ;;  %s5222_s13 = smov 32   ;;  %s6403_s1 = inlined_call_operand.vmem [shape: f32[48,128], index: 1, kind: input, shape index: {}]   ;;  %s6404_s0 = inlined_call_operand.vmem [shape: f32[2,128], index: 0, kind: input, shape index: {}]   ;;  %s6405_s2 = inlined_call_operand.vmem [shape: f32[1,128], index: 2, kind: input, shape index: {}]   ;;  %s6406_s3 = inlined_call_operand.vmem [shape: f32[64,128], index: 3, kind: input, shape index: {}]   ;;  %s6407_s4 = inlined_call_operand.vmem [shape: f32[1,128], index: 4, kind: input, shape index: {}]   ;;  %s6408_s5 = inlined_call_operand.vmem [shape: f32[48,64], index: 5, kind: input, shape index: {}]   ;;  %s6409_s6 = inlined_call_operand.vmem [shape: f32[1,64], index: 6, kind: input, shape index: {}]   ;;  %s6410_s7 = inlined_call_operand.vmem [shape: f32[32,64], index: 7, kind: input, shape index: {}]   ;;  %s6411_s8 = inlined_call_operand.vmem [shape: f32[1,64], index: 8, kind: input, shape index: {}]   ;;  %s6412_s9 = inlined_call_operand.vmem [shape: f32[16,16], index: 9, kind: input, shape index: {}]   ;;  %s6413_s10 = inlined_call_operand.vmem [shape: f32[1,16], index: 10, kind: input, shape index: {}]   ;;  %s6414_s11 = inlined_call_operand.vmem [shape: f32[2,128], index: 11, kind: output, shape index: {}]  }
   0x1   :  { %4415 = vmatprep.subr.mxu0 %v5219_v0  ;;  %v5292_v1 = vld [vmem:[%s6403_s1 + $0x28] sm:$0xff]  ;;  %v5297_v2 = vld [vmem:[%s6403_s1 + $0x20] sm:$0xff]  ;;  %4427 = vmatprep.mubr.msk.f32.mxu0 %vm5220_vm0, %v5219_v0  ;;  %v5307_v3 = vld [vmem:[%s6403_s1 + $0x18] sm:$0xff]  ;;  %s5223_s14 = smov 112   ;;  %s5224_s15 = smov 48   ;;  %vm900_vm3 = vcmask 261120  }
   0x2   :  { %4416 = vmatpush3.msra.mxu0 %v5292_v1  ;;  %4430 = vmatprep.subr.mxu1 %v5219_v0  ;;  %v5316_v4 = vld [vmem:[%s6403_s1 + $0x10] sm:$0xff]  ;;  %v5325_v5 = vld [vmem:[%s6403_s1 + $0x8] sm:$0xff]  ;;  %v5330_v6 = vld [vmem:[%s6404_s0] sm:$0x3]  ;;  %s5225_s16 = smov 96   ;;  %s5226_s17 = smov 80  }
   0x3   :  { %4417 = vmatprep.subr.mxu0 %v5219_v0  ;;  %4431 = vmatpush3.msra.mxu1 %v5292_v1  ;;  %v5339_v7 = vld [vmem:[%s6403_s1] sm:$0xff]  ;;  %v47_v8 = vsel %vm46_vm1, %v5330_v6, 0.0  ;;  %vm908_vm4 = vcmask 523264   ;;  %s5227_s20 = smov 16   ;;  %vm3523_vm5 = vcmask 123904   ;;  %vm3603_vm6 = vcmask 255104  }
   0x4   :  { %4418 = vmatpush3.msra.mxu0 %v5297_v2  ;;  %4432 = vmatprep.subr.mxu1 %v5219_v0  ;;  %v5373_v9 = vld [vmem:[%s6405_s2] ss:$0 sm:$0xff]  ;;  %vm3683_vm7 = vcmask 386304   ;;  %vm3763_vm8 = vcmask 517504   ;;  %vm3843_vm9 = vcmask 648704   ;;  %vm3923_vm10 = vcmask 779904  }
   0x5   :  { %4419 = vmatprep.subr.mxu0 %v5219_v0  ;;  %4433 = vmatpush3.msra.mxu1 %v5297_v2  ;;  %vm4003_vm11 = vcmask 911104   ;;  %vm4084_vm12 = vcmask 1042304  }
   0x6   :  { %4420 = vmatpush3.msra.mxu0 %v5307_v3  ;;  %4434 = vmatprep.subr.mxu1 %v5219_v0 }
   0x7   :  { %4421 = vmatprep.subr.mxu0 %v5219_v0  ;;  %4435 = vmatpush3.msra.mxu1 %v5307_v3 }
   0x8   :  { %4422 = vmatpush3.msra.mxu0 %v5316_v4  ;;  %4436 = vmatprep.subr.mxu1 %v5219_v0 }
   0x9   :  { %4423 = vmatprep.subr.mxu0 %v5219_v0  ;;  %4437 = vmatpush3.msra.mxu1 %v5316_v4 }
   0xa   :  { %4424 = vmatpush3.msra.mxu0 %v5325_v5  ;;  %4438 = vmatprep.subr.mxu1 %v5219_v0 }
   0xb   :  { %4425 = vmatprep.subr.mxu0 %v5219_v0  ;;  %4439 = vmatpush3.msra.mxu1 %v5325_v5 }
   0xc   :  { %4426 = vmatpush3.msra.mxu0 %v5339_v7  ;;  %4440 = vmatprep.subr.mxu1 %v5219_v0 }
   0xd   :  { %4428 = vmatmul.mubr.msk.f32.vlgmr.msra.gmra.mxu0 %vm54_vm2, %v47_v8  ;;  %4441 = vmatpush3.msra.mxu1 %v5339_v7 }
   0xe   :  { %4442 = vmatprep.mubr.msk.f32.mxu1 %vm5220_vm0, %v5219_v0  ;;  %4445 = vmatprep.subr.mxu0 %v5219_v0 }
   0xf   :  { %4446 = vmatpush3.msra.mxu0 %v5292_v1  ;;  %4457 = vmatprep.mubr.msk.f32.mxu0 %vm5220_vm0, %v5219_v0 }
  0x10   :  { %4447 = vmatprep.subr.mxu0 %v5219_v0  ;;  %4460 = vmatprep.subr.mxu1 %v5219_v0 }
  0x11   :  { %4448 = vmatpush3.msra.mxu0 %v5297_v2 }
  0x12   :  { %4449 = vmatprep.subr.mxu0 %v5219_v0 }
  0x13   :  { %4450 = vmatpush3.msra.mxu0 %v5307_v3 }
  0x14   :  { %4451 = vmatprep.subr.mxu0 %v5219_v0 }
  0x15   :  { %4452 = vmatpush3.msra.mxu0 %v5316_v4 }
  0x16   :  { %4453 = vmatprep.subr.mxu0 %v5219_v0 }
  0x17   :  { %4454 = vmatpush3.msra.mxu0 %v5325_v5 }
  0x18   :  { %4455 = vmatprep.subr.mxu0 %v5219_v0 }
  0x19   :  { %4456 = vmatpush3.msra.mxu0 %v5339_v7 }
  0x1a   :  { %4475 = vmatprep.subr.mxu0 %v5219_v0 }
  0xcd   :  { %v124_v10 = vpop.f32.mrf.mxu0 }
  0xce   :  { %v125_v11 = vadd.f32 %v5373_v9, %v124_v10 }
  0xcf   :  { %v4429_v12 = vpop.f32.mrf.mxu0 }
  0xd0   :  { %4960 = vtanh.f32 %v125_v11  ;;  %v4092_v14 = vmul.f32 -1.442695, %v125_v11 }
  0xd2   :  { %4962 = vpow2.f32 %v4092_v14 }
  0xdd   :  { %v4961_v13 = vpop.eup %4960 }
  0xde   :  { %137 = vrot.lane.b32.xlu0 %v4961_v13, %s5221_s12 }
  0xdf   :  { %v4963_v15 = vpop.eup %4962 }
  0xe0   :  { %v131_v16 = vadd.f32 1.0, %v4963_v15 }
  0xe2   :  { %4964 = vrcp.f32 %v131_v16 }
  0xef   :  { %v4965_v17 = vpop.eup %4964 }
  0xf0   :  { %v135_v20 = vmul.f32 0.0, %v4965_v17 }
 0x150   :  { %v138_v18 = vpop.permute.xlu0 %137 }
 0x151   :  { %v140_v19 = vmul.f32 %v4965_v17, %v138_v18 }
 0x153   :  { %142 = vrot.lane.b32.xlu0 %v140_v19, %s5222_s13 }
 0x1c5   :  { %v143_v21 = vpop.permute.xlu0 %142 }
 0x1c6   :  { %v145_v22 = vadd.f32 %v143_v21, %v135_v20 }
 0x1c8   :  { %4966 = vtanh.f32 %v145_v22 }
 0x1d5   :  { %v4967_v23 = vpop.eup %4966 }
 0x1d6   :  { %148 = vrot.lane.b32.xlu1 %v4967_v23, %s5221_s12 }
 0x1da   :  { %153 = vrot.lane.b32.xlu1 %v5330_v6, %s5223_s14 }
 0x248   :  { %v149_v24 = vpop.permute.xlu1 %148 }
 0x249   :  { %v5381_v25 = vmul.f32 %v4965_v17, %v149_v24 }
 0x24b   :  { %157 = vrot.lane.b32.xlu0 %v5381_v25, %s5224_s15 }
 0x24c   :  { %v154_v26 = vpop.permute.xlu1 %153 }
 0x2bd   :  { %v158_v27 = vpop.permute.xlu0 %157 }
 0x2be   :  { %v160_v28 = vsel %vm46_vm1, %v154_v26, %v158_v27 }
 0x2bf   :  { %4443 = vmatmul.mubr.msk.f32.vlgmr.msra.gmra.mxu1 %vm54_vm2, %v160_v28 }
 0x2c0   :  { %4461 = vmatpush3.msra.mxu1 %v5292_v1  ;;  %4472 = vmatprep.mubr.msk.f32.mxu1 %vm5220_vm0, %v5219_v0 }
 0x2c1   :  { %4462 = vmatprep.subr.mxu1 %v5219_v0 }
 0x2c2   :  { %4463 = vmatpush3.msra.mxu1 %v5297_v2 }
 0x2c3   :  { %4464 = vmatprep.subr.mxu1 %v5219_v0 }
 0x2c4   :  { %4465 = vmatpush3.msra.mxu1 %v5307_v3 }
 0x2c5   :  { %4466 = vmatprep.subr.mxu1 %v5219_v0 }
 0x2c6   :  { %4467 = vmatpush3.msra.mxu1 %v5316_v4 }
 0x2c7   :  { %4468 = vmatprep.subr.mxu1 %v5219_v0 }
 0x2c8   :  { %4469 = vmatpush3.msra.mxu1 %v5325_v5 }
 0x2c9   :  { %4470 = vmatprep.subr.mxu1 %v5219_v0 }
 0x2ca   :  { %4471 = vmatpush3.msra.mxu1 %v5339_v7 }
 0x2cb   :  { %4490 = vmatprep.subr.mxu1 %v5219_v0 }
 0x37f   :  { %v230_v29 = vpop.f32.mrf.mxu1 }
 0x380   :  { %v231_v30 = vadd.f32 %v5373_v9, %v230_v29 }
 0x381   :  { %v4444_v31 = vpop.f32.mrf.mxu1 }
 0x382   :  { %4968 = vtanh.f32 %v231_v30  ;;  %v4094_v33 = vmul.f32 -1.442695, %v231_v30 }
 0x384   :  { %4970 = vpow2.f32 %v4094_v33 }
 0x38f   :  { %v4969_v32 = vpop.eup %4968 }
 0x390   :  { %243 = vrot.lane.b32.xlu1 %v4969_v32, %s5221_s12 }
 0x391   :  { %v4971_v34 = vpop.eup %4970 }
 0x392   :  { %v237_v35 = vadd.f32 1.0, %v4971_v34 }
 0x394   :  { %4972 = vrcp.f32 %v237_v35 }
 0x3a1   :  { %v4973_v36 = vpop.eup %4972 }
 0x3a2   :  { %v241_v39 = vmul.f32 %v4973_v36, %v145_v22 }
 0x402   :  { %v244_v37 = vpop.permute.xlu1 %243 }
 0x403   :  { %v246_v38 = vmul.f32 %v4973_v36, %v244_v37 }
 0x405   :  { %248 = vrot.lane.b32.xlu0 %v246_v38, %s5222_s13 }
 0x409   :  { %258 = vrot.lane.b32.xlu0 %v5330_v6, %s5225_s16 }
 0x477   :  { %v249_v40 = vpop.permute.xlu0 %248 }
 0x478   :  { %v251_v41 = vadd.f32 %v249_v40, %v241_v39 }
 0x47a   :  { %4974 = vtanh.f32 %v251_v41 }
 0x47b   :  { %v259_v45 = vpop.permute.xlu0 %258 }
 0x487   :  { %v4975_v42 = vpop.eup %4974 }
 0x488   :  { %254 = vrot.lane.b32.xlu1 %v4975_v42, %s5221_s12 }
 0x4fa   :  { %v255_v43 = vpop.permute.xlu1 %254 }
 0x4fb   :  { %v5407_v44 = vmul.f32 %v4973_v36, %v255_v43 }
 0x4fd   :  { %262 = vrot.lane.b32.xlu1 %v5407_v44, %s5224_s15 }
 0x56f   :  { %v263_v46 = vpop.permute.xlu1 %262 }
 0x570   :  { %v265_v47 = vsel %vm46_vm1, %v259_v45, %v263_v46 }
 0x571   :  { %4458 = vmatmul.mubr.msk.f32.vlgmr.msra.gmra.mxu0 %vm54_vm2, %v265_v47 }
 0x572   :  { %4476 = vmatpush3.msra.mxu0 %v5292_v1  ;;  %4487 = vmatprep.mubr.msk.f32.mxu0 %vm5220_vm0, %v5219_v0 }
 0x573   :  { %4477 = vmatprep.subr.mxu0 %v5219_v0 }
 0x574   :  { %4478 = vmatpush3.msra.mxu0 %v5297_v2 }
 0x575   :  { %4479 = vmatprep.subr.mxu0 %v5219_v0 }
 0x576   :  { %4480 = vmatpush3.msra.mxu0 %v5307_v3 }
 0x577   :  { %4481 = vmatprep.subr.mxu0 %v5219_v0 }
 0x578   :  { %4482 = vmatpush3.msra.mxu0 %v5316_v4 }
 0x579   :  { %4483 = vmatprep.subr.mxu0 %v5219_v0 }
 0x57a   :  { %4484 = vmatpush3.msra.mxu0 %v5325_v5 }
 0x57b   :  { %4485 = vmatprep.subr.mxu0 %v5219_v0 }
 0x57c   :  { %4486 = vmatpush3.msra.mxu0 %v5339_v7 }
 0x57d   :  { %4505 = vmatprep.subr.mxu0 %v5219_v0 }
 0x631   :  { %v335_v48 = vpop.f32.mrf.mxu0 }
 0x632   :  { %v336_v49 = vadd.f32 %v5373_v9, %v335_v48 }
 0x633   :  { %v4459_v50 = vpop.f32.mrf.mxu0 }
 0x634   :  { %4976 = vtanh.f32 %v336_v49  ;;  %v4096_v52 = vmul.f32 -1.442695, %v336_v49 }
 0x636   :  { %4978 = vpow2.f32 %v4096_v52 }
 0x641   :  { %v4977_v51 = vpop.eup %4976 }
 0x642   :  { %348 = vrot.lane.b32.xlu0 %v4977_v51, %s5221_s12 }
 0x643   :  { %v4979_v53 = vpop.eup %4978 }
 0x644   :  { %v342_v54 = vadd.f32 1.0, %v4979_v53 }
 0x646   :  { %4980 = vrcp.f32 %v342_v54 }
 0x653   :  { %v4981_v55 = vpop.eup %4980 }
 0x654   :  { %v346_v58 = vmul.f32 %v4981_v55, %v251_v41 }
 0x6b4   :  { %v349_v56 = vpop.permute.xlu0 %348 }
 0x6b5   :  { %v351_v57 = vmul.f32 %v4981_v55, %v349_v56 }
 0x6b7   :  { %353 = vrot.lane.b32.xlu1 %v351_v57, %s5222_s13 }
 0x6bb   :  { %363 = vrot.lane.b32.xlu1 %v5330_v6, %s5226_s17 }
 0x729   :  { %v354_v59 = vpop.permute.xlu1 %353 }
 0x72a   :  { %v356_v60 = vadd.f32 %v354_v59, %v346_v58 }
 0x72c   :  { %4982 = vtanh.f32 %v356_v60 }
 0x72d   :  { %v364_v8 = vpop.permute.xlu1 %363 }
 0x739   :  { %v4983_v61 = vpop.eup %4982 }
 0x73a   :  { %359 = vrot.lane.b32.xlu0 %v4983_v61, %s5221_s12 }
 0x7ac   :  { %v360_v62 = vpop.permute.xlu0 %359 }
 0x7ad   :  { %v5433_v63 = vmul.f32 %v4981_v55, %v360_v62 }
 0x7af   :  { %367 = vrot.lane.b32.xlu0 %v5433_v63, %s5224_s15 }
 0x821   :  { %v368_v10 = vpop.permute.xlu0 %367 }
 0x822   :  { %v370_v11 = vsel %vm46_vm1, %v364_v8, %v368_v10 }
 0x823   :  { %4473 = vmatmul.mubr.msk.f32.vlgmr.msra.gmra.mxu1 %vm54_vm2, %v370_v11  ;;  %v5530_v11 = vld [vmem:[%s6406_s3 + $0x30] sm:$0xff] }
 0x824   :  { %4491 = vmatpush3.msra.mxu1 %v5292_v1  ;;  %4502 = vmatprep.mubr.msk.f32.mxu1 %vm5220_vm0, %v5219_v0 }
 0x825   :  { %4492 = vmatprep.subr.mxu1 %v5219_v0 }
 0x826   :  { %4493 = vmatpush3.msra.mxu1 %v5297_v2 }
 0x827   :  { %4494 = vmatprep.subr.mxu1 %v5219_v0 }
 0x828   :  { %4495 = vmatpush3.msra.mxu1 %v5307_v3 }
 0x829   :  { %4496 = vmatprep.subr.mxu1 %v5219_v0 }
 0x82a   :  { %4497 = vmatpush3.msra.mxu1 %v5316_v4 }
 0x82b   :  { %4498 = vmatprep.subr.mxu1 %v5219_v0 }
 0x82c   :  { %4499 = vmatpush3.msra.mxu1 %v5325_v5 }
 0x82d   :  { %4500 = vmatprep.subr.mxu1 %v5219_v0 }
 0x82e   :  { %4501 = vmatpush3.msra.mxu1 %v5339_v7 }
 0x82f   :  { %4520 = vmatprep.subr.mxu1 %v5219_v0 }
 0x8e3   :  { %v440_v12 = vpop.f32.mrf.mxu1 }
 0x8e4   :  { %v441_v13 = vadd.f32 %v5373_v9, %v440_v12  ;;  %v5539_v12 = vld [vmem:[%s6406_s3 + $0x28] sm:$0xff] }
 0x8e5   :  { %v4474_v14 = vpop.f32.mrf.mxu1 }
 0x8e6   :  { %4984 = vtanh.f32 %v441_v13  ;;  %v4098_v16 = vmul.f32 -1.442695, %v441_v13  ;;  %v5546_v13 = vld [vmem:[%s6406_s3 + $0x20] sm:$0xff]  ;;  %v5553_v14 = vld [vmem:[%s6406_s3 + $0x18] sm:$0xff] }
 0x8e8   :  { %4986 = vpow2.f32 %v4098_v16  ;;  %v5567_v16 = vld [vmem:[%s6406_s3 + $0x8] sm:$0xff] }
 0x8f3   :  { %v4985_v15 = vpop.eup %4984 }
 0x8f4   :  { %453 = vrot.lane.b32.xlu1 %v4985_v15, %s5221_s12  ;;  %v5560_v15 = vld [vmem:[%s6406_s3 + $0x10] sm:$0xff] }
 0x8f5   :  { %v4987_v17 = vpop.eup %4986 }
 0x8f6   :  { %v447_v18 = vadd.f32 1.0, %v4987_v17 }
 0x8f8   :  { %4988 = vrcp.f32 %v447_v18  ;;  %v5574_v18 = vld [vmem:[%s6406_s3] sm:$0xff] }
 0x905   :  { %v4989_v19 = vpop.eup %4988 }
 0x906   :  { %v451_v22 = vmul.f32 %v4989_v19, %v356_v60 }
 0x966   :  { %v454_v20 = vpop.permute.xlu1 %453 }
 0x967   :  { %v456_v21 = vmul.f32 %v4989_v19, %v454_v20 }
 0x969   :  { %458 = vrot.lane.b32.xlu0 %v456_v21, %s5222_s13 }
 0x96d   :  { %468 = vrot.lane.b32.xlu0 %v5330_v6, %s5221_s12 }
 0x9db   :  { %v459_v23 = vpop.permute.xlu0 %458 }
 0x9dc   :  { %v461_v24 = vadd.f32 %v459_v23, %v451_v22  ;;  %v5604_v23 = vld [vmem:[%s6407_s4] ss:$0 sm:$0xff] }
 0x9de   :  { %4990 = vtanh.f32 %v461_v24 }
 0x9df   :  { %v469_v29 = vpop.permute.xlu0 %468 }
 0x9eb   :  { %v4991_v26 = vpop.eup %4990 }
 0x9ec   :  { %464 = vrot.lane.b32.xlu1 %v4991_v26, %s5221_s12 }
 0xa5e   :  { %v465_v27 = vpop.permute.xlu1 %464 }
 0xa5f   :  { %v5459_v28 = vmul.f32 %v4989_v19, %v465_v27 }
 0xa61   :  { %472 = vrot.lane.b32.xlu1 %v5459_v28, %s5224_s15 }
 0xad3   :  { %v473_v30 = vpop.permute.xlu1 %472 }
 0xad4   :  { %v475_v31 = vsel %vm46_vm1, %v469_v29, %v473_v30 }
 0xad5   :  { %4488 = vmatmul.mubr.msk.f32.vlgmr.msra.gmra.mxu0 %vm54_vm2, %v475_v31 }
 0xad6   :  { %4506 = vmatpush3.msra.mxu0 %v5292_v1  ;;  %4517 = vmatprep.mubr.msk.f32.mxu0 %vm5220_vm0, %v5219_v0 }
 0xad7   :  { %4507 = vmatprep.subr.mxu0 %v5219_v0 }
 0xad8   :  { %4508 = vmatpush3.msra.mxu0 %v5297_v2 }
 0xad9   :  { %4509 = vmatprep.subr.mxu0 %v5219_v0 }
 0xada   :  { %4510 = vmatpush3.msra.mxu0 %v5307_v3 }
 0xadb   :  { %4511 = vmatprep.subr.mxu0 %v5219_v0 }
 0xadc   :  { %4512 = vmatpush3.msra.mxu0 %v5316_v4 }
 0xadd   :  { %4513 = vmatprep.subr.mxu0 %v5219_v0 }
 0xade   :  { %4514 = vmatpush3.msra.mxu0 %v5325_v5 }
 0xadf   :  { %4515 = vmatprep.subr.mxu0 %v5219_v0 }
 0xae0   :  { %4516 = vmatpush3.msra.mxu0 %v5339_v7 }
 0xae1   :  { %4535 = vmatprep.subr.mxu0 %v5219_v0 }
 0xb95   :  { %v545_v32 = vpop.f32.mrf.mxu0 }
 0xb96   :  { %v546_v33 = vadd.f32 %v5373_v9, %v545_v32 }
 0xb97   :  { %v4489_v34 = vpop.f32.mrf.mxu0 }
 0xb98   :  { %4992 = vtanh.f32 %v546_v33  ;;  %v4100_v36 = vmul.f32 -1.442695, %v546_v33 }
 0xb9a   :  { %4994 = vpow2.f32 %v4100_v36 }
 0xba5   :  { %v4993_v35 = vpop.eup %4992 }
 0xba6   :  { %558 = vrot.lane.b32.xlu0 %v4993_v35, %s5221_s12 }
 0xba7   :  { %v4995_v37 = vpop.eup %4994 }
 0xba8   :  { %v552_v38 = vadd.f32 1.0, %v4995_v37 }
 0xbaa   :  { %4996 = vrcp.f32 %v552_v38 }
 0xbb7   :  { %v4997_v39 = vpop.eup %4996 }
 0xbb8   :  { %v556_v42 = vmul.f32 %v4997_v39, %v461_v24 }
 0xc18   :  { %v559_v40 = vpop.permute.xlu0 %558 }
 0xc19   :  { %v561_v41 = vmul.f32 %v4997_v39, %v559_v40 }
 0xc1b   :  { %563 = vrot.lane.b32.xlu1 %v561_v41, %s5222_s13 }
 0xc1f   :  { %573 = vrot.lane.b32.xlu1 %v5330_v6, %s5224_s15 }
 0xc8d   :  { %v564_v43 = vpop.permute.xlu1 %563 }
 0xc8e   :  { %v566_v45 = vadd.f32 %v564_v43, %v556_v42 }
 0xc90   :  { %4998 = vtanh.f32 %v566_v45 }
 0xc91   :  { %v574_v49 = vpop.permute.xlu1 %573 }
 0xc9d   :  { %v4999_v46 = vpop.eup %4998 }
 0xc9e   :  { %569 = vrot.lane.b32.xlu0 %v4999_v46, %s5221_s12 }
 0xd10   :  { %v570_v47 = vpop.permute.xlu0 %569 }
 0xd11   :  { %v5485_v48 = vmul.f32 %v4997_v39, %v570_v47 }
 0xd13   :  { %577 = vrot.lane.b32.xlu0 %v5485_v48, %s5224_s15 }
 0xd85   :  { %v578_v50 = vpop.permute.xlu0 %577 }
 0xd86   :  { %v580_v51 = vsel %vm46_vm1, %v574_v49, %v578_v50 }
 0xd87   :  { %4503 = vmatmul.mubr.msk.f32.vlgmr.msra.gmra.mxu1 %vm54_vm2, %v580_v51 }
 0xd88   :  { %4521 = vmatpush3.msra.mxu1 %v5292_v1  ;;  %4532 = vmatprep.mubr.msk.f32.mxu1 %vm5220_vm0, %v5219_v0 }
 0xd89   :  { %4522 = vmatprep.subr.mxu1 %v5219_v0 }
 0xd8a   :  { %4523 = vmatpush3.msra.mxu1 %v5297_v2 }
 0xd8b   :  { %4524 = vmatprep.subr.mxu1 %v5219_v0 }
 0xd8c   :  { %4525 = vmatpush3.msra.mxu1 %v5307_v3 }
 0xd8d   :  { %4526 = vmatprep.subr.mxu1 %v5219_v0 }
 0xd8e   :  { %4527 = vmatpush3.msra.mxu1 %v5316_v4 }
 0xd8f   :  { %4528 = vmatprep.subr.mxu1 %v5219_v0 }
 0xd90   :  { %4529 = vmatpush3.msra.mxu1 %v5325_v5 }
 0xd91   :  { %4530 = vmatprep.subr.mxu1 %v5219_v0 }
 0xd92   :  { %4531 = vmatpush3.msra.mxu1 %v5339_v7 }
 0xd93   :  { %4554 = vmatprep.subr.mxu1 %v5219_v0 }
 0xe47   :  { %v650_v1 = vpop.f32.mrf.mxu1 }
 0xe48   :  { %v651_v2 = vadd.f32 %v5373_v9, %v650_v1 }
 0xe49   :  { %v4504_v52 = vpop.f32.mrf.mxu1 }
 0xe4a   :  { %5000 = vtanh.f32 %v651_v2  ;;  %v4102_v53 = vmul.f32 -1.442695, %v651_v2 }
 0xe4c   :  { %5002 = vpow2.f32 %v4102_v53 }
 0xe57   :  { %v5001_v3 = vpop.eup %5000 }
 0xe58   :  { %663 = vrot.lane.b32.xlu1 %v5001_v3, %s5221_s12 }
 0xe59   :  { %v5003_v4 = vpop.eup %5002 }
 0xe5a   :  { %v657_v54 = vadd.f32 1.0, %v5003_v4 }
 0xe5c   :  { %5004 = vrcp.f32 %v657_v54 }
 0xe69   :  { %v5005_v5 = vpop.eup %5004 }
 0xe6a   :  { %v661_v7 = vmul.f32 %v5005_v5, %v566_v45 }
 0xeca   :  { %v664_v55 = vpop.permute.xlu1 %663 }
 0xecb   :  { %v666_v56 = vmul.f32 %v5005_v5, %v664_v55 }
 0xecd   :  { %668 = vrot.lane.b32.xlu0 %v666_v56, %s5222_s13 }
 0xed1   :  { %678 = vrot.lane.b32.xlu0 %v5330_v6, %s5222_s13 }
 0xed5   :  { %897 = vrot.lane.b32.xlu0 %v5381_v25, %s5222_s13  ;;  %v5523_v25 = vld [vmem:[%s6406_s3 + $0x38] sm:$0xff] }
 0xf3f   :  { %v669_v57 = vpop.permute.xlu0 %668 }
 0xf40   :  { %v5512_v58 = vadd.f32 %v669_v57, %v661_v7 }
 0xf42   :  { %5006 = vtanh.f32 %v5512_v58 }
 0xf43   :  { %v679_v62 = vpop.permute.xlu0 %678 }
 0xf47   :  { %v898_v17 = vpop.permute.xlu0 %897 }
 0xf48   :  { %v901_v19 = vsel %vm900_vm3, %v898_v17, 0.0 }
 0xf4f   :  { %v5007_v59 = vpop.eup %5006 }
 0xf50   :  { %674 = vrot.lane.b32.xlu1 %v5007_v59, %s5221_s12 }
 0xfc2   :  { %v675_v60 = vpop.permute.xlu1 %674 }
 0xfc3   :  { %v5516_v61 = vmul.f32 %v5005_v5, %v675_v60 }
 0xfc5   :  { %682 = vrot.lane.b32.xlu1 %v5516_v61, %s5224_s15 }
0x1037   :  { %v683_v8 = vpop.permute.xlu1 %682 }
0x1038   :  { %v685_v10 = vsel %vm46_vm1, %v679_v62, %v683_v8 }
0x1039   :  { %4518 = vmatmul.mubr.msk.f32.vlgmr.msra.gmra.mxu0 %vm54_vm2, %v685_v10 }
0x103a   :  { %4536 = vmatpush3.msra.mxu0 %v5523_v25  ;;  %4551 = vmatprep.mubr.msk.f32.mxu0 %vm5220_vm0, %v5219_v0 }
0x103b   :  { %4537 = vmatprep.subr.mxu0 %v5219_v0 }
0x103c   :  { %4538 = vmatpush3.msra.mxu0 %v5530_v11 }
0x103d   :  { %4539 = vmatprep.subr.mxu0 %v5219_v0 }
0x103e   :  { %4540 = vmatpush3.msra.mxu0 %v5539_v12 }
0x103f   :  { %4541 = vmatprep.subr.mxu0 %v5219_v0 }
0x1040   :  { %4542 = vmatpush3.msra.mxu0 %v5546_v13 }
0x1041   :  { %4543 = vmatprep.subr.mxu0 %v5219_v0 }
0x1042   :  { %4544 = vmatpush3.msra.mxu0 %v5553_v14 }
0x1043   :  { %4545 = vmatprep.subr.mxu0 %v5219_v0 }
0x1044   :  { %4546 = vmatpush3.msra.mxu0 %v5560_v15 }
0x1045   :  { %4547 = vmatprep.subr.mxu0 %v5219_v0 }
0x1046   :  { %4548 = vmatpush3.msra.mxu0 %v5567_v16 }
0x1047   :  { %4549 = vmatprep.subr.mxu0 %v5219_v0 }
0x1048   :  { %4550 = vmatpush3.msra.mxu0 %v5574_v18 }
0x1049   :  { %4552 = vmatmul.mubr.msk.f32.vlgmr.msra.gmra.mxu0 %vm908_vm4, %v901_v19  ;;  %4573 = vmatprep.subr.mxu0 %v5219_v0 }
0x104a   :  { %4574 = vmatpush3.msra.mxu0 %v5523_v25  ;;  %4589 = vmatprep.mubr.msk.f32.mxu0 %vm5220_vm0, %v5219_v0 }
0x104b   :  { %4575 = vmatprep.subr.mxu0 %v5219_v0 }
0x104c   :  { %4576 = vmatpush3.msra.mxu0 %v5530_v11 }
0x104d   :  { %4577 = vmatprep.subr.mxu0 %v5219_v0 }
0x104e   :  { %4578 = vmatpush3.msra.mxu0 %v5539_v12 }
0x104f   :  { %4579 = vmatprep.subr.mxu0 %v5219_v0 }
0x1050   :  { %4580 = vmatpush3.msra.mxu0 %v5546_v13 }
0x1051   :  { %4581 = vmatprep.subr.mxu0 %v5219_v0 }
0x1052   :  { %4582 = vmatpush3.msra.mxu0 %v5553_v14 }
0x1053   :  { %4583 = vmatprep.subr.mxu0 %v5219_v0 }
0x1054   :  { %4584 = vmatpush3.msra.mxu0 %v5560_v15 }
0x1055   :  { %4585 = vmatprep.subr.mxu0 %v5219_v0 }
0x1056   :  { %4586 = vmatpush3.msra.mxu0 %v5567_v16 }
0x1057   :  { %4587 = vmatprep.subr.mxu0 %v5219_v0 }
0x1058   :  { %4588 = vmatpush3.msra.mxu0 %v5574_v18 }
0x1059   :  { %4611 = vmatprep.subr.mxu0 %v5219_v0 }
0x10f9   :  { %v755_v20 = vpop.f32.mrf.mxu0 }
0x10fa   :  { %v756_v21 = vadd.f32 %v5373_v9, %v755_v20 }
0x10fb   :  { %v4519_v22 = vpop.f32.mrf.mxu0 }
0x10fc   :  { %5008 = vtanh.f32 %v756_v21  ;;  %v4104_v31 = vmul.f32 -1.442695, %v756_v21 }
0x1109   :  { %v5009_v24 = vpop.eup %5008  ;;  %v978_v26 = vpop.f32.mrf.mxu0 }
0x110a   :  { %v979_v27 = vadd.f32 %v5604_v23, %v978_v26  ;;  %768 = vrot.lane.b32.xlu1 %v5009_v24, %s5221_s12 }
0x110b   :  { %v4553_v29 = vpop.f32.mrf.mxu0 }
0x110c   :  { %5010 = vtanh.f32 %v979_v27  ;;  %v4109_v9 = vmul.f32 -1.442695, %v979_v27 }
0x110d   :  { %5012 = vpow2.f32 %v4104_v31 }
0x110e   :  { %5014 = vpow2.f32 %v4109_v9 }
0x1119   :  { %v5011_v30 = vpop.eup %5010 }
0x111a   :  { %991 = vrot.lane.b32.xlu0 %v5011_v30, %s5221_s12  ;;  %v5013_v32 = vpop.eup %5012 }
0x111b   :  { %v762_v33 = vadd.f32 1.0, %v5013_v32  ;;  %v5015_v34 = vpop.eup %5014 }
0x111c   :  { %v985_v35 = vadd.f32 1.0, %v5015_v34 }
0x111d   :  { %5016 = vrcp.f32 %v762_v33 }
0x111e   :  { %5018 = vrcp.f32 %v985_v35 }
0x112a   :  { %v5017_v36 = vpop.eup %5016 }
0x112b   :  { %v5019_v39 = vpop.eup %5018  ;;  %v766_v42 = vmul.f32 %v5017_v36, %v5512_v58 }
0x112c   :  { %v989_v46 = vmul.f32 0.0, %v5019_v39 }
0x117c   :  { %v769_v37 = vpop.permute.xlu1 %768 }
0x117d   :  { %v771_v38 = vmul.f32 %v5017_v36, %v769_v37 }
0x117f   :  { %773 = vrot.lane.b32.xlu1 %v771_v38, %s5222_s13 }
0x118c   :  { %v992_v40 = vpop.permute.xlu0 %991 }
0x118d   :  { %v994_v41 = vmul.f32 %v5019_v39, %v992_v40 }
0x118f   :  { %996 = vrot.lane.b32.xlu0 %v994_v41, %s5222_s13 }
0x11f1   :  { %v774_v43 = vpop.permute.xlu1 %773 }
0x11f2   :  { %v5612_v45 = vadd.f32 %v774_v43, %v766_v42 }
0x11f4   :  { %5020 = vtanh.f32 %v5612_v45 }
0x1201   :  { %v5021_v47 = vpop.eup %5020  ;;  %v997_v49 = vpop.permute.xlu0 %996 }
0x1202   :  { %v5615_v50 = vadd.f32 %v997_v49, %v989_v46  ;;  %779 = vrot.lane.b32.xlu1 %v5021_v47, %s5221_s12 }
0x1204   :  { %5022 = vtanh.f32 %v5615_v50 }
0x1206   :  { %783 = vrot.lane.b32.xlu1 %v5330_v6, %s5227_s20 }
0x120a   :  { %1006 = vrot.lane.b32.xlu1 %v5407_v44, %s5222_s13 }
0x1211   :  { %v5023_v51 = vpop.eup %5022 }
0x1212   :  { %1002 = vrot.lane.b32.xlu0 %v5023_v51, %s5221_s12 }
0x1274   :  { %v780_v1 = vpop.permute.xlu1 %779 }
0x1275   :  { %v5624_v2 = vmul.f32 %v5017_v36, %v780_v1 }
0x1277   :  { %787 = vrot.lane.b32.xlu0 %v5624_v2, %s5224_s15 }
0x1278   :  { %v784_v53 = vpop.permute.xlu1 %783 }
0x127c   :  { %v1007_v44 = vpop.permute.xlu1 %1006 }
0x1284   :  { %v1003_v52 = vpop.permute.xlu0 %1002 }
0x1285   :  { %v5628_v3 = vmul.f32 %v5019_v39, %v1003_v52 }
0x1287   :  { %1010 = vrot.lane.b32.xlu0 %v5628_v3, %s5221_s12 }
0x12e9   :  { %v788_v6 = vpop.permute.xlu0 %787 }
0x12ea   :  { %v790_v4 = vsel %vm46_vm1, %v784_v53, %v788_v6 }
0x12eb   :  { %4533 = vmatmul.mubr.msk.f32.vlgmr.msra.gmra.mxu1 %vm54_vm2, %v790_v4 }
0x12ec   :  { %4555 = vmatpush3.msra.mxu1 %v5523_v25  ;;  %4570 = vmatprep.mubr.msk.f32.mxu1 %vm5220_vm0, %v5219_v0 }
0x12ed   :  { %4556 = vmatprep.subr.mxu1 %v5219_v0 }
0x12ee   :  { %4557 = vmatpush3.msra.mxu1 %v5530_v11 }
0x12ef   :  { %4558 = vmatprep.subr.mxu1 %v5219_v0 }
0x12f0   :  { %4559 = vmatpush3.msra.mxu1 %v5539_v12 }
0x12f1   :  { %4560 = vmatprep.subr.mxu1 %v5219_v0 }
0x12f2   :  { %4561 = vmatpush3.msra.mxu1 %v5546_v13 }
0x12f3   :  { %4562 = vmatprep.subr.mxu1 %v5219_v0 }
0x12f4   :  { %4563 = vmatpush3.msra.mxu1 %v5553_v14 }
0x12f5   :  { %4564 = vmatprep.subr.mxu1 %v5219_v0 }
0x12f6   :  { %4565 = vmatpush3.msra.mxu1 %v5560_v15 }
0x12f7   :  { %4566 = vmatprep.subr.mxu1 %v5219_v0 }
0x12f8   :  { %4567 = vmatpush3.msra.mxu1 %v5567_v16 }
0x12f9   :  { %4568 = vmatprep.subr.mxu1 %v5219_v0  ;;  %v1011_v54 = vpop.permute.xlu0 %1010 }
0x12fa   :  { %v1013_v5 = vsel %vm900_vm3, %v1007_v44, %v1011_v54  ;;  %4569 = vmatpush3.msra.mxu1 %v5574_v18 }
0x12fb   :  { %4571 = vmatmul.mubr.msk.f32.vlgmr.msra.gmra.mxu1 %vm908_vm4, %v1013_v5  ;;  %4592 = vmatprep.subr.mxu1 %v5219_v0 }
0x12fc   :  { %4593 = vmatpush3.msra.mxu1 %v5523_v25  ;;  %4608 = vmatprep.mubr.msk.f32.mxu1 %vm5220_vm0, %v5219_v0 }
0x12fd   :  { %4594 = vmatprep.subr.mxu1 %v5219_v0 }
0x12fe   :  { %4595 = vmatpush3.msra.mxu1 %v5530_v11 }
0x12ff   :  { %4596 = vmatprep.subr.mxu1 %v5219_v0 }
0x1300   :  { %4597 = vmatpush3.msra.mxu1 %v5539_v12 }
0x1301   :  { %4598 = vmatprep.subr.mxu1 %v5219_v0 }
0x1302   :  { %4599 = vmatpush3.msra.mxu1 %v5546_v13 }
0x1303   :  { %4600 = vmatprep.subr.mxu1 %v5219_v0 }
0x1304   :  { %4601 = vmatpush3.msra.mxu1 %v5553_v14 }
0x1305   :  { %4602 = vmatprep.subr.mxu1 %v5219_v0 }
0x1306   :  { %4603 = vmatpush3.msra.mxu1 %v5560_v15 }
0x1307   :  { %4604 = vmatprep.subr.mxu1 %v5219_v0 }
0x1308   :  { %4605 = vmatpush3.msra.mxu1 %v5567_v16 }
0x1309   :  { %4606 = vmatprep.subr.mxu1 %v5219_v0 }
0x130a   :  { %4607 = vmatpush3.msra.mxu1 %v5574_v18 }
0x130b   :  { %4630 = vmatprep.subr.mxu1 %v5219_v0 }
0x13ab   :  { %v5672_v55 = vpop.f32.mrf.mxu1 }
0x13ad   :  { %v4534_v56 = vpop.f32.mrf.mxu1 }
0x13bb   :  { %v1083_v7 = vpop.f32.mrf.mxu1 }
0x13bc   :  { %v1084_v57 = vadd.f32 %v5604_v23, %v1083_v7 }
0x13bd   :  { %v4572_v58 = vpop.f32.mrf.mxu1 }
0x13be   :  { %5024 = vtanh.f32 %v1084_v57  ;;  %v4111_v60 = vmul.f32 -1.442695, %v1084_v57 }
0x13c0   :  { %5026 = vpow2.f32 %v4111_v60 }
0x13cb   :  { %v5025_v59 = vpop.eup %5024 }
0x13cc   :  { %1096 = vrot.lane.b32.xlu1 %v5025_v59, %s5221_s12 }
0x13cd   :  { %v5027_v62 = vpop.eup %5026 }
0x13ce   :  { %v1090_v8 = vadd.f32 1.0, %v5027_v62 }
0x13d0   :  { %5028 = vrcp.f32 %v1090_v8 }
0x13dd   :  { %v5029_v10 = vpop.eup %5028 }
0x13de   :  { %v1094_v20 = vmul.f32 %v5029_v10, %v5615_v50 }
0x143e   :  { %v1097_v17 = vpop.permute.xlu1 %1096 }
0x143f   :  { %v1099_v19 = vmul.f32 %v5029_v10, %v1097_v17 }
0x1441   :  { %1101 = vrot.lane.b32.xlu0 %v1099_v19, %s5222_s13 }
0x1445   :  { %1111 = vrot.lane.b32.xlu0 %v5433_v63, %s5222_s13 }
0x14b3   :  { %v1102_v21 = vpop.permute.xlu0 %1101 }
0x14b4   :  { %v1104_v22 = vadd.f32 %v1102_v21, %v1094_v20 }
0x14b6   :  { %5030 = vtanh.f32 %v1104_v22 }
0x14b7   :  { %v1112_v29 = vpop.permute.xlu0 %1111 }
0x14c3   :  { %v5031_v24 = vpop.eup %5030 }
0x14c4   :  { %1107 = vrot.lane.b32.xlu1 %v5031_v24, %s5221_s12 }
0x1536   :  { %v1108_v26 = vpop.permute.xlu1 %1107 }
0x1537   :  { %v5681_v27 = vmul.f32 %v5029_v10, %v1108_v26 }
0x1539   :  { %1115 = vrot.lane.b32.xlu1 %v5681_v27, %s5221_s12 }
0x15ab   :  { %v1116_v30 = vpop.permute.xlu1 %1115 }
0x15ac   :  { %v1118_v31 = vsel %vm900_vm3, %v1112_v29, %v1116_v30 }
0x15ad   :  { %4590 = vmatmul.mubr.msk.f32.vlgmr.msra.gmra.mxu0 %vm908_vm4, %v1118_v31 }
0x15ae   :  { %4612 = vmatpush3.msra.mxu0 %v5523_v25  ;;  %4627 = vmatprep.mubr.msk.f32.mxu0 %vm5220_vm0, %v5219_v0 }
0x15af   :  { %4613 = vmatprep.subr.mxu0 %v5219_v0 }
0x15b0   :  { %4614 = vmatpush3.msra.mxu0 %v5530_v11 }
0x15b1   :  { %4615 = vmatprep.subr.mxu0 %v5219_v0 }
0x15b2   :  { %4616 = vmatpush3.msra.mxu0 %v5539_v12 }
0x15b3   :  { %4617 = vmatprep.subr.mxu0 %v5219_v0 }
0x15b4   :  { %4618 = vmatpush3.msra.mxu0 %v5546_v13 }
0x15b5   :  { %4619 = vmatprep.subr.mxu0 %v5219_v0 }
0x15b6   :  { %4620 = vmatpush3.msra.mxu0 %v5553_v14 }
0x15b7   :  { %4621 = vmatprep.subr.mxu0 %v5219_v0 }
0x15b8   :  { %4622 = vmatpush3.msra.mxu0 %v5560_v15 }
0x15b9   :  { %4623 = vmatprep.subr.mxu0 %v5219_v0 }
0x15ba   :  { %4624 = vmatpush3.msra.mxu0 %v5567_v16 }
0x15bb   :  { %4625 = vmatprep.subr.mxu0 %v5219_v0 }
0x15bc   :  { %4626 = vmatpush3.msra.mxu0 %v5574_v18 }
0x15bd   :  { %4649 = vmatprep.subr.mxu0 %v5219_v0 }
0x166d   :  { %v1188_v63 = vpop.f32.mrf.mxu0 }
0x166e   :  { %v1189_v9 = vadd.f32 %v5604_v23, %v1188_v63 }
0x166f   :  { %v4591_v32 = vpop.f32.mrf.mxu0 }
0x1670   :  { %5032 = vtanh.f32 %v1189_v9  ;;  %v4113_v34 = vmul.f32 -1.442695, %v1189_v9 }
0x1672   :  { %5034 = vpow2.f32 %v4113_v34 }
0x167d   :  { %v5033_v33 = vpop.eup %5032 }
0x167e   :  { %1201 = vrot.lane.b32.xlu0 %v5033_v33, %s5221_s12 }
0x167f   :  { %v5035_v35 = vpop.eup %5034 }
0x1680   :  { %v1195_v36 = vadd.f32 1.0, %v5035_v35 }
0x1682   :  { %5036 = vrcp.f32 %v1195_v36 }
0x168f   :  { %v5037_v37 = vpop.eup %5036 }
0x1690   :  { %v1199_v40 = vmul.f32 %v5037_v37, %v1104_v22 }
0x16f0   :  { %v1202_v38 = vpop.permute.xlu0 %1201 }
0x16f1   :  { %v1204_v39 = vmul.f32 %v5037_v37, %v1202_v38 }
0x16f3   :  { %1206 = vrot.lane.b32.xlu1 %v1204_v39, %s5222_s13 }
0x16f7   :  { %1216 = vrot.lane.b32.xlu1 %v5459_v28, %s5222_s13 }
0x1765   :  { %v1207_v41 = vpop.permute.xlu1 %1206 }
0x1766   :  { %v1209_v42 = vadd.f32 %v1207_v41, %v1199_v40 }
0x1768   :  { %5038 = vtanh.f32 %v1209_v42 }
0x1769   :  { %v1217_v49 = vpop.permute.xlu1 %1216 }
0x1775   :  { %v5039_v43 = vpop.eup %5038 }
0x1776   :  { %1212 = vrot.lane.b32.xlu0 %v5039_v43, %s5221_s12 }
0x17e8   :  { %v1213_v46 = vpop.permute.xlu0 %1212 }
0x17e9   :  { %v5711_v47 = vmul.f32 %v5037_v37, %v1213_v46  ;;  %v5216_v46 = vld [vmem:[%s6405_s2] ss:$0 sm:$0xff] }
0x17eb   :  { %1220 = vrot.lane.b32.xlu0 %v5711_v47, %s5221_s12 }
0x185d   :  { %v1221_v50 = vpop.permute.xlu0 %1220 }
0x185e   :  { %v1223_v51 = vsel %vm900_vm3, %v1217_v49, %v1221_v50  ;;  %v861_v49 = vadd.f32 %v5216_v46, %v5672_v55  ;;  %v5825_v55 = vld [vmem:[%s6408_s5 + $0x20] sm:$0xff] }
0x185f   :  { %4609 = vmatmul.mubr.msk.f32.vlgmr.msra.gmra.mxu1 %vm908_vm4, %v1223_v51 }
0x1860   :  { %4631 = vmatpush3.msra.mxu1 %v5523_v25  ;;  %4646 = vmatprep.mubr.msk.f32.mxu1 %vm5220_vm0, %v5219_v0 }
0x1861   :  { %4632 = vmatprep.subr.mxu1 %v5219_v0 }
0x1862   :  { %4633 = vmatpush3.msra.mxu1 %v5530_v11 }
0x1863   :  { %4634 = vmatprep.subr.mxu1 %v5219_v0 }
0x1864   :  { %4635 = vmatpush3.msra.mxu1 %v5539_v12 }
0x1865   :  { %4636 = vmatprep.subr.mxu1 %v5219_v0 }
0x1866   :  { %4637 = vmatpush3.msra.mxu1 %v5546_v13 }
0x1867   :  { %4638 = vmatprep.subr.mxu1 %v5219_v0 }
0x1868   :  { %4639 = vmatpush3.msra.mxu1 %v5553_v14 }
0x1869   :  { %4640 = vmatprep.subr.mxu1 %v5219_v0 }
0x186a   :  { %4641 = vmatpush3.msra.mxu1 %v5560_v15 }
0x186b   :  { %4642 = vmatprep.subr.mxu1 %v5219_v0 }
0x186c   :  { %4643 = vmatpush3.msra.mxu1 %v5567_v16 }
0x186d   :  { %4644 = vmatprep.subr.mxu1 %v5219_v0 }
0x186e   :  { %4645 = vmatpush3.msra.mxu1 %v5574_v18 }
0x186f   :  { %4668 = vmatprep.subr.mxu1 %v5219_v0 }
0x191f   :  { %v1293_v28 = vpop.f32.mrf.mxu1 }
0x1920   :  { %v1294_v1 = vadd.f32 %v5604_v23, %v1293_v28 }
0x1921   :  { %v4610_v52 = vpop.f32.mrf.mxu1 }
0x1922   :  { %5040 = vtanh.f32 %v1294_v1  ;;  %v4115_v6 = vmul.f32 -1.442695, %v1294_v1  ;;  %v5818_v1 = vld [vmem:[%s6408_s5 + $0x28] sm:$0xff] }
0x1924   :  { %5042 = vpow2.f32 %v4115_v6  ;;  %v5841_v6 = vld [vmem:[%s6408_s5 + $0x10] sm:$0xff] }
0x192f   :  { %v5041_v53 = vpop.eup %5040 }
0x1930   :  { %1306 = vrot.lane.b32.xlu1 %v5041_v53, %s5221_s12  ;;  %v5834_v53 = vld [vmem:[%s6408_s5 + $0x18] sm:$0xff] }
0x1931   :  { %v5043_v4 = vpop.eup %5042 }
0x1932   :  { %v1300_v44 = vadd.f32 1.0, %v5043_v4  ;;  %v5848_v4 = vld [vmem:[%s6408_s5 + $0x8] sm:$0xff] }
0x1934   :  { %5044 = vrcp.f32 %v1300_v44 }
0x1941   :  { %v5045_v54 = vpop.eup %5044 }
0x1942   :  { %v1304_v7 = vmul.f32 %v5045_v54, %v1209_v42 }
0x19a2   :  { %v1307_v5 = vpop.permute.xlu1 %1306 }
0x19a3   :  { %v1309_v56 = vmul.f32 %v5045_v54, %v1307_v5 }
0x19a5   :  { %1311 = vrot.lane.b32.xlu0 %v1309_v56, %s5222_s13  ;;  %v4106_v56 = vmul.f32 -1.442695, %v861_v49 }
0x19a9   :  { %1321 = vrot.lane.b32.xlu0 %v5485_v48, %s5222_s13 }
0x1a17   :  { %v1312_v57 = vpop.permute.xlu0 %1311 }
0x1a18   :  { %v1314_v58 = vadd.f32 %v1312_v57, %v1304_v7 }
0x1a1a   :  { %5046 = vtanh.f32 %v1314_v58 }
0x1a1b   :  { %v1322_v8 = vpop.permute.xlu0 %1321 }
0x1a27   :  { %v5047_v59 = vpop.eup %5046 }
0x1a28   :  { %1317 = vrot.lane.b32.xlu1 %v5047_v59, %s5221_s12 }
0x1a9a   :  { %v1318_v60 = vpop.permute.xlu1 %1317 }
0x1a9b   :  { %v5741_v62 = vmul.f32 %v5045_v54, %v1318_v60  ;;  %v5855_v54 = vld [vmem:[%s6408_s5] sm:$0xff] }
0x1a9d   :  { %1325 = vrot.lane.b32.xlu1 %v5741_v62, %s5221_s12 }
0x1b0f   :  { %v1326_v10 = vpop.permute.xlu1 %1325 }
0x1b10   :  { %v1328_v17 = vsel %vm900_vm3, %v1322_v8, %v1326_v10  ;;  %v5881_v8 = vld [vmem:[%s6409_s6] ss:$0 sm:$0xff] }
0x1b11   :  { %4628 = vmatmul.mubr.msk.f32.vlgmr.msra.gmra.mxu0 %vm908_vm4, %v1328_v17 }
0x1b12   :  { %4650 = vmatpush3.msra.mxu0 %v5523_v25  ;;  %4665 = vmatprep.mubr.msk.f32.mxu0 %vm5220_vm0, %v5219_v0 }
0x1b13   :  { %4651 = vmatprep.subr.mxu0 %v5219_v0 }
0x1b14   :  { %4652 = vmatpush3.msra.mxu0 %v5530_v11 }
0x1b15   :  { %4653 = vmatprep.subr.mxu0 %v5219_v0 }
0x1b16   :  { %4654 = vmatpush3.msra.mxu0 %v5539_v12 }
0x1b17   :  { %4655 = vmatprep.subr.mxu0 %v5219_v0 }
0x1b18   :  { %4656 = vmatpush3.msra.mxu0 %v5546_v13 }
0x1b19   :  { %4657 = vmatprep.subr.mxu0 %v5219_v0 }
0x1b1a   :  { %4658 = vmatpush3.msra.mxu0 %v5553_v14 }
0x1b1b   :  { %4659 = vmatprep.subr.mxu0 %v5219_v0 }
0x1b1c   :  { %4660 = vmatpush3.msra.mxu0 %v5560_v15 }
0x1b1d   :  { %4661 = vmatprep.subr.mxu0 %v5219_v0 }
0x1b1e   :  { %4662 = vmatpush3.msra.mxu0 %v5567_v16 }
0x1b1f   :  { %4663 = vmatprep.subr.mxu0 %v5219_v0 }
0x1b20   :  { %4664 = vmatpush3.msra.mxu0 %v5574_v18 }
0x1b21   :  { %4687 = vmatprep.subr.mxu0 %v5219_v0 }
0x1bd1   :  { %v1398_v48 = vpop.f32.mrf.mxu0 }
0x1bd2   :  { %v1399_v19 = vadd.f32 %v5604_v23, %v1398_v48 }
0x1bd3   :  { %v4629_v20 = vpop.f32.mrf.mxu0 }
0x1bd4   :  { %5048 = vtanh.f32 %v1399_v19  ;;  %v4117_v22 = vmul.f32 -1.442695, %v1399_v19 }
0x1bd6   :  { %5050 = vpow2.f32 %v4117_v22 }
0x1be1   :  { %v5049_v21 = vpop.eup %5048 }
0x1be2   :  { %1411 = vrot.lane.b32.xlu0 %v5049_v21, %s5221_s12 }
0x1be3   :  { %v5051_v24 = vpop.eup %5050 }
0x1be4   :  { %v1405_v26 = vadd.f32 1.0, %v5051_v24 }
0x1be6   :  { %5052 = vrcp.f32 %v1405_v26 }
0x1bf3   :  { %v5053_v29 = vpop.eup %5052 }
0x1bf4   :  { %v1409_v63 = vmul.f32 %v5053_v29, %v1314_v58 }
0x1c54   :  { %v1412_v30 = vpop.permute.xlu0 %1411 }
0x1c55   :  { %v1414_v31 = vmul.f32 %v5053_v29, %v1412_v30 }
0x1c57   :  { %1416 = vrot.lane.b32.xlu1 %v1414_v31, %s5222_s13 }
0x1c5b   :  { %1426 = vrot.lane.b32.xlu1 %v5516_v61, %s5222_s13 }
0x1cc9   :  { %v1417_v9 = vpop.permute.xlu1 %1416 }
0x1cca   :  { %v1419_v32 = vadd.f32 %v1417_v9, %v1409_v63 }
0x1ccc   :  { %5054 = vtanh.f32 %v1419_v32 }
0x1ccd   :  { %v1427_v36 = vpop.permute.xlu1 %1426 }
0x1cd9   :  { %v5055_v33 = vpop.eup %5054 }
0x1cda   :  { %1422 = vrot.lane.b32.xlu0 %v5055_v33, %s5221_s12 }
0x1d4c   :  { %v1423_v34 = vpop.permute.xlu0 %1422 }
0x1d4d   :  { %v5771_v35 = vmul.f32 %v5053_v29, %v1423_v34 }
0x1d4f   :  { %1430 = vrot.lane.b32.xlu0 %v5771_v35, %s5221_s12 }
0x1dc1   :  { %v1431_v37 = vpop.permute.xlu0 %1430 }
0x1dc2   :  { %v1433_v38 = vsel %vm900_vm3, %v1427_v36, %v1431_v37 }
0x1dc3   :  { %4647 = vmatmul.mubr.msk.f32.vlgmr.msra.gmra.mxu1 %vm908_vm4, %v1433_v38 }
0x1dc4   :  { %4669 = vmatpush3.msra.mxu1 %v5523_v25  ;;  %4684 = vmatprep.mubr.msk.f32.mxu1 %vm5220_vm0, %v5219_v0 }
0x1dc5   :  { %4670 = vmatprep.subr.mxu1 %v5219_v0 }
0x1dc6   :  { %4671 = vmatpush3.msra.mxu1 %v5530_v11 }
0x1dc7   :  { %4672 = vmatprep.subr.mxu1 %v5219_v0 }
0x1dc8   :  { %4673 = vmatpush3.msra.mxu1 %v5539_v12 }
0x1dc9   :  { %4674 = vmatprep.subr.mxu1 %v5219_v0 }
0x1dca   :  { %4675 = vmatpush3.msra.mxu1 %v5546_v13 }
0x1dcb   :  { %4676 = vmatprep.subr.mxu1 %v5219_v0 }
0x1dcc   :  { %4677 = vmatpush3.msra.mxu1 %v5553_v14 }
0x1dcd   :  { %4678 = vmatprep.subr.mxu1 %v5219_v0 }
0x1dce   :  { %4679 = vmatpush3.msra.mxu1 %v5560_v15 }
0x1dcf   :  { %4680 = vmatprep.subr.mxu1 %v5219_v0 }
0x1dd0   :  { %4681 = vmatpush3.msra.mxu1 %v5567_v16 }
0x1dd1   :  { %4682 = vmatprep.subr.mxu1 %v5219_v0 }
0x1dd2   :  { %4683 = vmatpush3.msra.mxu1 %v5574_v18 }
0x1dd3   :  { %4702 = vmatprep.subr.mxu1 %v5219_v0 }
0x1e83   :  { %v1503_v61 = vpop.f32.mrf.mxu1 }
0x1e84   :  { %v1504_v25 = vadd.f32 %v5604_v23, %v1503_v61 }
0x1e85   :  { %v4648_v11 = vpop.f32.mrf.mxu1 }
0x1e86   :  { %5056 = vtanh.f32 %v1504_v25  ;;  %v4119_v13 = vmul.f32 -1.442695, %v1504_v25 }
0x1e88   :  { %5058 = vpow2.f32 %v4119_v13 }
0x1e93   :  { %v5057_v12 = vpop.eup %5056 }
0x1e94   :  { %1516 = vrot.lane.b32.xlu1 %v5057_v12, %s5221_s12 }
0x1e95   :  { %v5059_v14 = vpop.eup %5058 }
0x1e96   :  { %v1510_v15 = vadd.f32 1.0, %v5059_v14 }
0x1e98   :  { %5060 = vrcp.f32 %v1510_v15 }
0x1ea5   :  { %v5061_v16 = vpop.eup %5060 }
0x1ea6   :  { %v1514_v18 = vmul.f32 %v5061_v16, %v1419_v32 }
0x1f06   :  { %v1517_v39 = vpop.permute.xlu1 %1516 }
0x1f07   :  { %v1519_v40 = vmul.f32 %v5061_v16, %v1517_v39 }
0x1f09   :  { %1521 = vrot.lane.b32.xlu0 %v1519_v40, %s5222_s13 }
0x1f0d   :  { %1531 = vrot.lane.b32.xlu0 %v5624_v2, %s5222_s13 }
0x1f11   :  { %1749 = vrot.lane.b32.xlu0 %v5628_v3, %s5222_s13 }
0x1f7b   :  { %v1522_v41 = vpop.permute.xlu0 %1521 }
0x1f7c   :  { %v5802_v42 = vadd.f32 %v1522_v41, %v1514_v18 }
0x1f7e   :  { %5062 = vtanh.f32 %v5802_v42 }
0x1f7f   :  { %5064 = vtanh.f32 %v861_v49  ;;  %v1532_v51 = vpop.permute.xlu0 %1531 }
0x1f80   :  { %5066 = vpow2.f32 %v4106_v56 }
0x1f83   :  { %v1750_v44 = vpop.permute.xlu0 %1749 }
0x1f84   :  { %v1752_v5 = vsel %vm900_vm3, %v1750_v44, 0.0 }
0x1f8b   :  { %v5063_v43 = vpop.eup %5062 }
0x1f8c   :  { %1527 = vrot.lane.b32.xlu1 %v5063_v43, %s5221_s12  ;;  %v5065_v3 = vpop.eup %5064 }
0x1f8d   :  { %v5067_v7 = vpop.eup %5066 }
0x1f8e   :  { %v867_v58 = vadd.f32 1.0, %v5067_v7 }
0x1ffe   :  { %v1528_v2 = vpop.permute.xlu1 %1527 }
0x1fff   :  { %v5810_v50 = vmul.f32 %v5061_v16, %v1528_v2 }
0x2001   :  { %1535 = vrot.lane.b32.xlu1 %v5810_v50, %s5221_s12 }
0x2005   :  { %873 = vrot.lane.b32.xlu1 %v5065_v3, %s5221_s12 }
0x2073   :  { %v1536_v28 = vpop.permute.xlu1 %1535 }
0x2074   :  { %v1538_v52 = vsel %vm900_vm3, %v1532_v51, %v1536_v28 }
0x2075   :  { %4666 = vmatmul.mubr.msk.f32.vlgmr.msra.gmra.mxu0 %vm908_vm4, %v1538_v52 }
0x2076   :  { %4688 = vmatpush3.msra.mxu0 %v5818_v1  ;;  %4699 = vmatprep.mubr.msk.f32.mxu0 %vm5220_vm0, %v5219_v0 }
0x2077   :  { %4689 = vmatprep.subr.mxu0 %v5219_v0  ;;  %v874_v20 = vpop.permute.xlu1 %873 }
0x2078   :  { %4690 = vmatpush3.msra.mxu0 %v5825_v55 }
0x2079   :  { %4691 = vmatprep.subr.mxu0 %v5219_v0 }
0x207a   :  { %4692 = vmatpush3.msra.mxu0 %v5834_v53 }
0x207b   :  { %4693 = vmatprep.subr.mxu0 %v5219_v0 }
0x207c   :  { %4694 = vmatpush3.msra.mxu0 %v5841_v6 }
0x207d   :  { %4695 = vmatprep.subr.mxu0 %v5219_v0 }
0x207e   :  { %4696 = vmatpush3.msra.mxu0 %v5848_v4 }
0x207f   :  { %4697 = vmatprep.subr.mxu0 %v5219_v0 }
0x2080   :  { %4698 = vmatpush3.msra.mxu0 %v5855_v54 }
0x2081   :  { %4700 = vmatmul.mubr.msk.f32.vlgmr.msra.gmra.mxu0 %vm54_vm2, %v1752_v5  ;;  %4717 = vmatprep.subr.mxu0 %v5219_v0 }
0x2082   :  { %4718 = vmatpush3.msra.mxu0 %v5818_v1  ;;  %4729 = vmatprep.mubr.msk.f32.mxu0 %vm5220_vm0, %v5219_v0 }
0x2083   :  { %4719 = vmatprep.subr.mxu0 %v5219_v0 }
0x2084   :  { %4720 = vmatpush3.msra.mxu0 %v5825_v55 }
0x2085   :  { %4721 = vmatprep.subr.mxu0 %v5219_v0 }
0x2086   :  { %4722 = vmatpush3.msra.mxu0 %v5834_v53 }
0x2087   :  { %4723 = vmatprep.subr.mxu0 %v5219_v0 }
0x2088   :  { %4724 = vmatpush3.msra.mxu0 %v5841_v6 }
0x2089   :  { %4725 = vmatprep.subr.mxu0 %v5219_v0 }
0x208a   :  { %4726 = vmatpush3.msra.mxu0 %v5848_v4 }
0x208b   :  { %4727 = vmatprep.subr.mxu0 %v5219_v0 }
0x208c   :  { %4728 = vmatpush3.msra.mxu0 %v5855_v54 }
0x208d   :  { %4747 = vmatprep.subr.mxu0 %v5219_v0 }
0x2135   :  { %v1608_v57 = vpop.f32.mrf.mxu0 }
0x2136   :  { %v1609_v59 = vadd.f32 %v5604_v23, %v1608_v57 }
0x2137   :  { %v4667_v60 = vpop.f32.mrf.mxu0 }
0x2138   :  { %5068 = vtanh.f32 %v1609_v59  ;;  %v4121_v24 = vmul.f32 -1.442695, %v1609_v59 }
0x2139   :  { %5070 = vrcp.f32 %v867_v58 }
0x2141   :  { %v1828_v10 = vpop.f32.mrf.mxu0 }
0x2142   :  { %v1829_v17 = vadd.f32 %v5881_v8, %v1828_v10 }
0x2143   :  { %v4701_v48 = vpop.f32.mrf.mxu0 }
0x2144   :  { %5072 = vtanh.f32 %v1829_v17  ;;  %v4126_v26 = vmul.f32 -1.442695, %v1829_v17 }
0x2145   :  { %v5069_v19 = vpop.eup %5068  ;;  %5074 = vpow2.f32 %v4121_v24 }
0x2146   :  { %1621 = vrot.lane.b32.xlu0 %v5069_v19, %s5221_s12  ;;  %v5071_v21 = vpop.eup %5070  ;;  %5076 = vpow2.f32 %v4126_v26 }
0x2147   :  { %v876_v22 = vmul.f32 %v5071_v21, %v874_v20  ;;  %v871_v34 = vmul.f32 %v5071_v21, %v5612_v45 }
0x214a   :  { %878 = vrot.lane.b32.xlu0 %v876_v22, %s5222_s13 }
0x2151   :  { %v5073_v23 = vpop.eup %5072 }
0x2152   :  { %1841 = vrot.lane.b32.xlu1 %v5073_v23, %s5225_s16  ;;  %v5075_v29 = vpop.eup %5074 }
0x2153   :  { %v1615_v30 = vadd.f32 1.0, %v5075_v29  ;;  %v5077_v31 = vpop.eup %5076 }
0x2154   :  { %v1835_v63 = vadd.f32 1.0, %v5077_v31 }
0x2155   :  { %5078 = vrcp.f32 %v1615_v30 }
0x2156   :  { %5080 = vrcp.f32 %v1835_v63 }
0x2162   :  { %v5079_v9 = vpop.eup %5078 }
0x2163   :  { %v5081_v38 = vpop.eup %5080  ;;  %v1619_v12 = vmul.f32 %v5079_v9, %v5802_v42 }
0x2164   :  { %v1839_v15 = vmul.f32 0.0, %v5081_v38 }
0x21b8   :  { %v1622_v32 = vpop.permute.xlu0 %1621 }
0x21b9   :  { %v1624_v33 = vmul.f32 %v5079_v9, %v1622_v32 }
0x21bb   :  { %1626 = vrot.lane.b32.xlu1 %v1624_v33, %s5222_s13 }
0x21bc   :  { %v879_v36 = vpop.permute.xlu0 %878 }
0x21bd   :  { %v881_v37 = vadd.f32 %v879_v36, %v871_v34 }
0x21bf   :  { %5082 = vtanh.f32 %v881_v37 }
0x21c4   :  { %v1842_v61 = vpop.permute.xlu1 %1841 }
0x21c5   :  { %v1844_v25 = vmul.f32 %v5081_v38, %v1842_v61 }
0x21c7   :  { %1846 = vrot.lane.b32.xlu0 %v1844_v25, %s5227_s20 }
0x21cc   :  { %v5083_v11 = vpop.eup %5082 }
0x21cd   :  { %884 = vrot.lane.b32.xlu1 %v5083_v11, %s5221_s12 }
0x222d   :  { %v1627_v13 = vpop.permute.xlu1 %1626 }
0x222e   :  { %v5892_v14 = vadd.f32 %v1627_v13, %v1619_v12 }
0x2230   :  { %5084 = vtanh.f32 %v5892_v14 }
0x2239   :  { %v1847_v45 = vpop.permute.xlu0 %1846 }
0x223a   :  { %v5895_v16 = vadd.f32 %v1847_v45, %v1839_v15 }
0x223c   :  { %5086 = vtanh.f32 %v5895_v16 }
0x223d   :  { %v5085_v39 = vpop.eup %5084 }
0x223e   :  { %1632 = vrot.lane.b32.xlu0 %v5085_v39, %s5221_s12 }
0x223f   :  { %v885_v40 = vpop.permute.xlu1 %884 }
0x2240   :  { %v887_v18 = vmul.f32 %v5071_v21, %v885_v40 }
0x2242   :  { %1637 = vrot.lane.b32.xlu0 %v887_v18, %s5222_s13 }
0x2246   :  { %1856 = vrot.lane.b32.xlu0 %v5681_v27, %s5222_s13 }
0x2249   :  { %v5087_v41 = vpop.eup %5086 }
0x224a   :  { %1852 = vrot.lane.b32.xlu1 %v5087_v41, %s5222_s13 }
0x22b0   :  { %v1633_v42 = vpop.permute.xlu0 %1632 }
0x22b1   :  { %v5903_v43 = vmul.f32 %v5079_v9, %v1633_v42 }
0x22b3   :  { %1641 = vrot.lane.b32.xlu1 %v5903_v43, %s5221_s12 }
0x22b4   :  { %v1638_v2 = vpop.permute.xlu0 %1637 }
0x22b8   :  { %v1857_v27 = vpop.permute.xlu0 %1856 }
0x22bc   :  { %v1853_v46 = vpop.permute.xlu1 %1852 }
0x22bd   :  { %v5907_v49 = vmul.f32 %v5081_v38, %v1853_v46 }
0x22bf   :  { %1860 = vrot.lane.b32.xlu1 %v5907_v49, %s5223_s14 }
0x2325   :  { %v1642_v3 = vpop.permute.xlu1 %1641 }
0x2326   :  { %v1644_v51 = vsel %vm900_vm3, %v1638_v2, %v1642_v3 }
0x2327   :  { %4685 = vmatmul.mubr.msk.f32.vlgmr.msra.gmra.mxu1 %vm908_vm4, %v1644_v51 }
0x2328   :  { %4703 = vmatpush3.msra.mxu1 %v5818_v1  ;;  %4714 = vmatprep.mubr.msk.f32.mxu1 %vm5220_vm0, %v5219_v0 }
0x2329   :  { %4704 = vmatprep.subr.mxu1 %v5219_v0 }
0x232a   :  { %4705 = vmatpush3.msra.mxu1 %v5825_v55 }
0x232b   :  { %4706 = vmatprep.subr.mxu1 %v5219_v0 }
0x232c   :  { %4707 = vmatpush3.msra.mxu1 %v5834_v53 }
0x232d   :  { %4708 = vmatprep.subr.mxu1 %v5219_v0 }
0x232e   :  { %4709 = vmatpush3.msra.mxu1 %v5841_v6 }
0x232f   :  { %4710 = vmatprep.subr.mxu1 %v5219_v0 }
0x2330   :  { %4711 = vmatpush3.msra.mxu1 %v5848_v4 }
0x2331   :  { %4712 = vmatprep.subr.mxu1 %v5219_v0  ;;  %v1861_v28 = vpop.permute.xlu1 %1860 }
0x2332   :  { %v1863_v52 = vsel %vm900_vm3, %v1857_v27, %v1861_v28  ;;  %4713 = vmatpush3.msra.mxu1 %v5855_v54 }
0x2333   :  { %4715 = vmatmul.mubr.msk.f32.vlgmr.msra.gmra.mxu1 %vm54_vm2, %v1863_v52  ;;  %4732 = vmatprep.subr.mxu1 %v5219_v0 }
0x2334   :  { %4733 = vmatpush3.msra.mxu1 %v5818_v1  ;;  %4744 = vmatprep.mubr.msk.f32.mxu1 %vm5220_vm0, %v5219_v0 }
0x2335   :  { %4734 = vmatprep.subr.mxu1 %v5219_v0 }
0x2336   :  { %4735 = vmatpush3.msra.mxu1 %v5825_v55 }
0x2337   :  { %4736 = vmatprep.subr.mxu1 %v5219_v0 }
0x2338   :  { %4737 = vmatpush3.msra.mxu1 %v5834_v53 }
0x2339   :  { %4738 = vmatprep.subr.mxu1 %v5219_v0 }
0x233a   :  { %4739 = vmatpush3.msra.mxu1 %v5841_v6 }
0x233b   :  { %4740 = vmatprep.subr.mxu1 %v5219_v0 }
0x233c   :  { %4741 = vmatpush3.msra.mxu1 %v5848_v4 }
0x233d   :  { %4742 = vmatprep.subr.mxu1 %v5219_v0 }
0x233e   :  { %4743 = vmatpush3.msra.mxu1 %v5855_v54 }
0x233f   :  { %4762 = vmatprep.subr.mxu1 %v5219_v0 }
0x23e7   :  { %v5943_v44 = vpop.f32.mrf.mxu1 }
0x23e9   :  { %v4686_v5 = vpop.f32.mrf.mxu1 }
0x23f3   :  { %v1933_v56 = vpop.f32.mrf.mxu1 }
0x23f4   :  { %v1934_v7 = vadd.f32 %v5881_v8, %v1933_v56 }
0x23f5   :  { %v4716_v57 = vpop.f32.mrf.mxu1 }
0x23f6   :  { %5088 = vtanh.f32 %v1934_v7  ;;  %v4128_v59 = vmul.f32 -1.442695, %v1934_v7 }
0x23f8   :  { %5090 = vpow2.f32 %v4128_v59 }
0x2403   :  { %v5089_v58 = vpop.eup %5088 }
0x2404   :  { %1946 = vrot.lane.b32.xlu0 %v5089_v58, %s5225_s16 }
0x2405   :  { %v5091_v60 = vpop.eup %5090 }
0x2406   :  { %v1940_v10 = vadd.f32 1.0, %v5091_v60 }
0x2408   :  { %5092 = vrcp.f32 %v1940_v10 }
0x2415   :  { %v5093_v17 = vpop.eup %5092 }
0x2416   :  { %v1944_v20 = vmul.f32 %v5093_v17, %v5895_v16 }
0x2476   :  { %v1947_v48 = vpop.permute.xlu0 %1946 }
0x2477   :  { %v1949_v19 = vmul.f32 %v5093_v17, %v1947_v48 }
0x2479   :  { %1951 = vrot.lane.b32.xlu1 %v1949_v19, %s5227_s20 }
0x247d   :  { %1961 = vrot.lane.b32.xlu1 %v5711_v47, %s5222_s13 }
0x24eb   :  { %v1952_v21 = vpop.permute.xlu1 %1951 }
0x24ec   :  { %v1954_v22 = vadd.f32 %v1952_v21, %v1944_v20 }
0x24ee   :  { %5094 = vtanh.f32 %v1954_v22 }
0x24ef   :  { %v1962_v29 = vpop.permute.xlu1 %1961 }
0x24fb   :  { %v5095_v23 = vpop.eup %5094 }
0x24fc   :  { %1957 = vrot.lane.b32.xlu0 %v5095_v23, %s5222_s13 }
0x256e   :  { %v1958_v24 = vpop.permute.xlu0 %1957 }
0x256f   :  { %v5952_v26 = vmul.f32 %v5093_v17, %v1958_v24 }
0x2571   :  { %1965 = vrot.lane.b32.xlu0 %v5952_v26, %s5223_s14 }
0x25e3   :  { %v1966_v30 = vpop.permute.xlu0 %1965 }
0x25e4   :  { %v1968_v31 = vsel %vm900_vm3, %v1962_v29, %v1966_v30 }
0x25e5   :  { %4730 = vmatmul.mubr.msk.f32.vlgmr.msra.gmra.mxu0 %vm54_vm2, %v1968_v31 }
0x25e6   :  { %4748 = vmatpush3.msra.mxu0 %v5818_v1  ;;  %4759 = vmatprep.mubr.msk.f32.mxu0 %vm5220_vm0, %v5219_v0 }
0x25e7   :  { %4749 = vmatprep.subr.mxu0 %v5219_v0 }
0x25e8   :  { %4750 = vmatpush3.msra.mxu0 %v5825_v55 }
0x25e9   :  { %4751 = vmatprep.subr.mxu0 %v5219_v0 }
0x25ea   :  { %4752 = vmatpush3.msra.mxu0 %v5834_v53 }
0x25eb   :  { %4753 = vmatprep.subr.mxu0 %v5219_v0 }
0x25ec   :  { %4754 = vmatpush3.msra.mxu0 %v5841_v6 }
0x25ed   :  { %4755 = vmatprep.subr.mxu0 %v5219_v0 }
0x25ee   :  { %4756 = vmatpush3.msra.mxu0 %v5848_v4 }
0x25ef   :  { %4757 = vmatprep.subr.mxu0 %v5219_v0 }
0x25f0   :  { %4758 = vmatpush3.msra.mxu0 %v5855_v54 }
0x25f1   :  { %4777 = vmatprep.subr.mxu0 %v5219_v0 }
0x26a5   :  { %v2038_v47 = vpop.f32.mrf.mxu0 }
0x26a6   :  { %v2039_v63 = vadd.f32 %v5881_v8, %v2038_v47 }
0x26a7   :  { %v4731_v9 = vpop.f32.mrf.mxu0 }
0x26a8   :  { %5096 = vtanh.f32 %v2039_v63  ;;  %v4130_v33 = vmul.f32 -1.442695, %v2039_v63 }
0x26aa   :  { %5098 = vpow2.f32 %v4130_v33 }
0x26b5   :  { %v5097_v32 = vpop.eup %5096 }
0x26b6   :  { %2051 = vrot.lane.b32.xlu1 %v5097_v32, %s5225_s16 }
0x26b7   :  { %v5099_v34 = vpop.eup %5098 }
0x26b8   :  { %v2045_v36 = vadd.f32 1.0, %v5099_v34 }
0x26ba   :  { %5100 = vrcp.f32 %v2045_v36 }
0x26c7   :  { %v5101_v37 = vpop.eup %5100 }
0x26c8   :  { %v2049_v25 = vmul.f32 %v5101_v37, %v1954_v22 }
0x2728   :  { %v2052_v38 = vpop.permute.xlu1 %2051 }
0x2729   :  { %v2054_v61 = vmul.f32 %v5101_v37, %v2052_v38 }
0x272b   :  { %2056 = vrot.lane.b32.xlu0 %v2054_v61, %s5227_s20 }
0x272f   :  { %2066 = vrot.lane.b32.xlu0 %v5741_v62, %s5222_s13 }
0x279d   :  { %v2057_v11 = vpop.permute.xlu0 %2056 }
0x279e   :  { %v2059_v12 = vadd.f32 %v2057_v11, %v2049_v25 }
0x27a0   :  { %5102 = vtanh.f32 %v2059_v12 }
0x27a1   :  { %v2067_v16 = vpop.permute.xlu0 %2066 }
0x27ad   :  { %v5103_v13 = vpop.eup %5102 }
0x27ae   :  { %2062 = vrot.lane.b32.xlu1 %v5103_v13, %s5222_s13 }
0x2820   :  { %v2063_v15 = vpop.permute.xlu1 %2062 }
0x2821   :  { %v5978_v45 = vmul.f32 %v5101_v37, %v2063_v15  ;;  %v5217_v15 = vld [vmem:[%s6407_s4] ss:$0 sm:$0xff] }
0x2823   :  { %2070 = vrot.lane.b32.xlu1 %v5978_v45, %s5223_s14 }
0x2895   :  { %v2071_v39 = vpop.permute.xlu1 %2070 }
0x2896   :  { %v2073_v40 = vsel %vm900_vm3, %v2067_v16, %v2071_v39  ;;  %v1715_v16 = vadd.f32 %v5217_v15, %v5943_v44  ;;  %v6080_v44 = vld [vmem:[%s6410_s7 + $0x10] sm:$0xff] }
0x2897   :  { %4745 = vmatmul.mubr.msk.f32.vlgmr.msra.gmra.mxu1 %vm54_vm2, %v2073_v40 }
0x2898   :  { %4763 = vmatpush3.msra.mxu1 %v5818_v1  ;;  %4774 = vmatprep.mubr.msk.f32.mxu1 %vm5220_vm0, %v5219_v0 }
0x2899   :  { %4764 = vmatprep.subr.mxu1 %v5219_v0 }
0x289a   :  { %4765 = vmatpush3.msra.mxu1 %v5825_v55 }
0x289b   :  { %4766 = vmatprep.subr.mxu1 %v5219_v0 }
0x289c   :  { %4767 = vmatpush3.msra.mxu1 %v5834_v53 }
0x289d   :  { %4768 = vmatprep.subr.mxu1 %v5219_v0 }
0x289e   :  { %4769 = vmatpush3.msra.mxu1 %v5841_v6 }
0x289f   :  { %4770 = vmatprep.subr.mxu1 %v5219_v0 }
0x28a0   :  { %4771 = vmatpush3.msra.mxu1 %v5848_v4 }
0x28a1   :  { %4772 = vmatprep.subr.mxu1 %v5219_v0 }
0x28a2   :  { %4773 = vmatpush3.msra.mxu1 %v5855_v54 }
0x28a3   :  { %4792 = vmatprep.subr.mxu1 %v5219_v0 }
0x2957   :  { %v2143_v62 = vpop.f32.mrf.mxu1 }
0x2958   :  { %v2144_v18 = vadd.f32 %v5881_v8, %v2143_v62 }
0x2959   :  { %v4746_v41 = vpop.f32.mrf.mxu1 }
0x295a   :  { %5104 = vtanh.f32 %v2144_v18  ;;  %v4132_v46 = vmul.f32 -1.442695, %v2144_v18  ;;  %v6073_v18 = vld [vmem:[%s6410_s7 + $0x18] sm:$0xff] }
0x295c   :  { %5106 = vpow2.f32 %v4132_v46 }
0x2967   :  { %v5105_v42 = vpop.eup %5104 }
0x2968   :  { %2156 = vrot.lane.b32.xlu0 %v5105_v42, %s5225_s16  ;;  %v6089_v42 = vld [vmem:[%s6410_s7 + $0x8] sm:$0xff] }
0x2969   :  { %v5107_v2 = vpop.eup %5106 }
0x296a   :  { %v2150_v3 = vadd.f32 1.0, %v5107_v2  ;;  %v6096_v2 = vld [vmem:[%s6410_s7] sm:$0xff] }
0x296c   :  { %5108 = vrcp.f32 %v2150_v3 }
0x2979   :  { %v5109_v51 = vpop.eup %5108 }
0x297a   :  { %v2154_v52 = vmul.f32 %v5109_v51, %v2059_v12 }
0x29da   :  { %v2157_v27 = vpop.permute.xlu0 %2156 }
0x29db   :  { %v2159_v28 = vmul.f32 %v5109_v51, %v2157_v27 }
0x29dd   :  { %2161 = vrot.lane.b32.xlu1 %v2159_v28, %s5227_s20 }
0x29e1   :  { %2171 = vrot.lane.b32.xlu1 %v5771_v35, %s5222_s13 }
0x2a4f   :  { %v2162_v5 = vpop.permute.xlu1 %2161 }
0x2a50   :  { %v2164_v56 = vadd.f32 %v2162_v5, %v2154_v52 }
0x2a52   :  { %5110 = vtanh.f32 %v2164_v56 }
0x2a53   :  { %v2172_v59 = vpop.permute.xlu1 %2171 }
0x2a5f   :  { %v5111_v7 = vpop.eup %5110 }
0x2a60   :  { %2167 = vrot.lane.b32.xlu0 %v5111_v7, %s5222_s13  ;;  %v6118_v7 = vld [vmem:[%s6411_s8] ss:$0 sm:$0xff] }
0x2ad2   :  { %v2168_v57 = vpop.permute.xlu0 %2167 }
0x2ad3   :  { %v6004_v58 = vmul.f32 %v5109_v51, %v2168_v57  ;;  %v4123_v51 = vmul.f32 -1.442695, %v1715_v16 }
0x2ad5   :  { %2175 = vrot.lane.b32.xlu0 %v6004_v58, %s5223_s14 }
0x2b47   :  { %v2176_v60 = vpop.permute.xlu0 %2175 }
0x2b48   :  { %v2178_v10 = vsel %vm900_vm3, %v2172_v59, %v2176_v60 }
0x2b49   :  { %4760 = vmatmul.mubr.msk.f32.vlgmr.msra.gmra.mxu0 %vm54_vm2, %v2178_v10 }
0x2b4a   :  { %4778 = vmatpush3.msra.mxu0 %v5818_v1  ;;  %4789 = vmatprep.mubr.msk.f32.mxu0 %vm5220_vm0, %v5219_v0 }
0x2b4b   :  { %4779 = vmatprep.subr.mxu0 %v5219_v0 }
0x2b4c   :  { %4780 = vmatpush3.msra.mxu0 %v5825_v55 }
0x2b4d   :  { %4781 = vmatprep.subr.mxu0 %v5219_v0 }
0x2b4e   :  { %4782 = vmatpush3.msra.mxu0 %v5834_v53 }
0x2b4f   :  { %4783 = vmatprep.subr.mxu0 %v5219_v0 }
0x2b50   :  { %4784 = vmatpush3.msra.mxu0 %v5841_v6 }
0x2b51   :  { %4785 = vmatprep.subr.mxu0 %v5219_v0 }
0x2b52   :  { %4786 = vmatpush3.msra.mxu0 %v5848_v4 }
0x2b53   :  { %4787 = vmatprep.subr.mxu0 %v5219_v0 }
0x2b54   :  { %4788 = vmatpush3.msra.mxu0 %v5855_v54 }
0x2b55   :  { %4807 = vmatprep.subr.mxu0 %v5219_v0 }
0x2c09   :  { %v2248_v35 = vpop.f32.mrf.mxu0 }
0x2c0a   :  { %v2249_v17 = vadd.f32 %v5881_v8, %v2248_v35 }
0x2c0b   :  { %v4761_v48 = vpop.f32.mrf.mxu0 }
0x2c0c   :  { %5112 = vtanh.f32 %v2249_v17  ;;  %v4134_v20 = vmul.f32 -1.442695, %v2249_v17 }
0x2c0e   :  { %5114 = vpow2.f32 %v4134_v20 }
0x2c19   :  { %v5113_v19 = vpop.eup %5112 }
0x2c1a   :  { %2261 = vrot.lane.b32.xlu1 %v5113_v19, %s5225_s16 }
0x2c1b   :  { %v5115_v21 = vpop.eup %5114 }
0x2c1c   :  { %v2255_v22 = vadd.f32 1.0, %v5115_v21 }
0x2c1e   :  { %5116 = vrcp.f32 %v2255_v22 }
0x2c2b   :  { %v5117_v23 = vpop.eup %5116 }
0x2c2c   :  { %v2259_v30 = vmul.f32 %v5117_v23, %v2164_v56 }
0x2c8c   :  { %v2262_v24 = vpop.permute.xlu1 %2261 }
0x2c8d   :  { %v2264_v29 = vmul.f32 %v5117_v23, %v2262_v24 }
0x2c8f   :  { %2266 = vrot.lane.b32.xlu0 %v2264_v29, %s5227_s20 }
0x2c93   :  { %2276 = vrot.lane.b32.xlu0 %v5810_v50, %s5222_s13 }
0x2d01   :  { %v2267_v31 = vpop.permute.xlu0 %2266 }
0x2d02   :  { %v2269_v47 = vadd.f32 %v2267_v31, %v2259_v30 }
0x2d04   :  { %5118 = vtanh.f32 %v2269_v47 }
0x2d05   :  { %v2277_v33 = vpop.permute.xlu0 %2276 }
0x2d11   :  { %v5119_v63 = vpop.eup %5118 }
0x2d12   :  { %2272 = vrot.lane.b32.xlu1 %v5119_v63, %s5222_s13 }
0x2d84   :  { %v2273_v9 = vpop.permute.xlu1 %2272 }
0x2d85   :  { %v6030_v32 = vmul.f32 %v5117_v23, %v2273_v9 }
0x2d87   :  { %2280 = vrot.lane.b32.xlu1 %v6030_v32, %s5223_s14 }
0x2df9   :  { %v2281_v34 = vpop.permute.xlu1 %2280 }
0x2dfa   :  { %v2283_v36 = vsel %vm900_vm3, %v2277_v33, %v2281_v34 }
0x2dfb   :  { %4775 = vmatmul.mubr.msk.f32.vlgmr.msra.gmra.mxu1 %vm54_vm2, %v2283_v36 }
0x2dfc   :  { %4793 = vmatpush3.msra.mxu1 %v5818_v1  ;;  %4804 = vmatprep.mubr.msk.f32.mxu1 %vm5220_vm0, %v5219_v0 }
0x2dfd   :  { %4794 = vmatprep.subr.mxu1 %v5219_v0 }
0x2dfe   :  { %4795 = vmatpush3.msra.mxu1 %v5825_v55 }
0x2dff   :  { %4796 = vmatprep.subr.mxu1 %v5219_v0 }
0x2e00   :  { %4797 = vmatpush3.msra.mxu1 %v5834_v53 }
0x2e01   :  { %4798 = vmatprep.subr.mxu1 %v5219_v0 }
0x2e02   :  { %4799 = vmatpush3.msra.mxu1 %v5841_v6 }
0x2e03   :  { %4800 = vmatprep.subr.mxu1 %v5219_v0 }
0x2e04   :  { %4801 = vmatpush3.msra.mxu1 %v5848_v4 }
0x2e05   :  { %4802 = vmatprep.subr.mxu1 %v5219_v0 }
0x2e06   :  { %4803 = vmatpush3.msra.mxu1 %v5855_v54 }
0x2e07   :  { %4818 = vmatprep.subr.mxu1 %v5219_v0 }
0x2ebb   :  { %v2353_v50 = vpop.f32.mrf.mxu1 }
0x2ebc   :  { %v2354_v1 = vadd.f32 %v5881_v8, %v2353_v50 }
0x2ebd   :  { %v4776_v55 = vpop.f32.mrf.mxu1 }
0x2ebe   :  { %5120 = vtanh.f32 %v2354_v1  ;;  %v4136_v37 = vmul.f32 -1.442695, %v2354_v1 }
0x2ec0   :  { %5122 = vpow2.f32 %v4136_v37 }
0x2ecb   :  { %v5121_v53 = vpop.eup %5120 }
0x2ecc   :  { %2366 = vrot.lane.b32.xlu0 %v5121_v53, %s5225_s16 }
0x2ecd   :  { %v5123_v6 = vpop.eup %5122 }
0x2ece   :  { %v2360_v38 = vadd.f32 1.0, %v5123_v6 }
0x2ed0   :  { %5124 = vrcp.f32 %v2360_v38 }
0x2edd   :  { %v5125_v4 = vpop.eup %5124 }
0x2ede   :  { %v2364_v54 = vmul.f32 %v5125_v4, %v2269_v47 }
0x2f3e   :  { %v2367_v61 = vpop.permute.xlu0 %2366 }
0x2f3f   :  { %v2369_v25 = vmul.f32 %v5125_v4, %v2367_v61 }
0x2f41   :  { %2371 = vrot.lane.b32.xlu1 %v2369_v25, %s5227_s20 }
0x2f45   :  { %2381 = vrot.lane.b32.xlu1 %v5903_v43, %s5222_s13 }
0x2f49   :  { %2597 = vrot.lane.b32.xlu1 %v5907_v49, %s5226_s17 }
0x2fb3   :  { %v2372_v11 = vpop.permute.xlu1 %2371 }
0x2fb4   :  { %v6057_v12 = vadd.f32 %v2372_v11, %v2364_v54 }
0x2fb6   :  { %5126 = vtanh.f32 %v6057_v12 }
0x2fb7   :  { %5128 = vtanh.f32 %v1715_v16  ;;  %v2382_v40 = vpop.permute.xlu1 %2381 }
0x2fb8   :  { %5130 = vpow2.f32 %v4123_v51 }
0x2fbb   :  { %v2598_v46 = vpop.permute.xlu1 %2597 }
0x2fbc   :  { %v2600_v3 = vsel %vm46_vm1, %v2598_v46, 0.0 }
0x2fc3   :  { %v5127_v13 = vpop.eup %5126 }
0x2fc4   :  { %2377 = vrot.lane.b32.xlu0 %v5127_v13, %s5222_s13  ;;  %v5129_v49 = vpop.eup %5128 }
0x2fc5   :  { %v5131_v27 = vpop.eup %5130 }
0x2fc6   :  { %v1721_v52 = vadd.f32 1.0, %v5131_v27 }
0x3036   :  { %v2378_v43 = vpop.permute.xlu0 %2377 }
0x3037   :  { %v6065_v39 = vmul.f32 %v5125_v4, %v2378_v43 }
0x3039   :  { %2385 = vrot.lane.b32.xlu0 %v6065_v39, %s5223_s14 }
0x303d   :  { %1727 = vrot.lane.b32.xlu0 %v5129_v49, %s5221_s12 }
0x30ab   :  { %v2386_v62 = vpop.permute.xlu0 %2385 }
0x30ac   :  { %v2388_v41 = vsel %vm900_vm3, %v2382_v40, %v2386_v62 }
0x30ad   :  { %4790 = vmatmul.mubr.msk.f32.vlgmr.msra.gmra.mxu0 %vm54_vm2, %v2388_v41 }
0x30ae   :  { %4808 = vmatpush3.msra.mxu0 %v6073_v18  ;;  %4815 = vmatprep.mubr.msk.f32.mxu0 %vm5220_vm0, %v5219_v0 }
0x30af   :  { %4809 = vmatprep.subr.mxu0 %v5219_v0  ;;  %v1728_v35 = vpop.permute.xlu0 %1727 }
0x30b0   :  { %4810 = vmatpush3.msra.mxu0 %v6080_v44 }
0x30b1   :  { %4811 = vmatprep.subr.mxu0 %v5219_v0 }
0x30b2   :  { %4812 = vmatpush3.msra.mxu0 %v6089_v42 }
0x30b3   :  { %4813 = vmatprep.subr.mxu0 %v5219_v0 }
0x30b4   :  { %4814 = vmatpush3.msra.mxu0 %v6096_v2 }
0x30b5   :  { %4816 = vmatmul.mubr.msk.f32.vlgmr.msra.gmra.mxu0 %vm900_vm3, %v2600_v3  ;;  %4829 = vmatprep.subr.mxu0 %v5219_v0 }
0x30b6   :  { %4830 = vmatpush3.msra.mxu0 %v6073_v18  ;;  %4837 = vmatprep.mubr.msk.f32.mxu0 %vm5220_vm0, %v5219_v0 }
0x30b7   :  { %4831 = vmatprep.subr.mxu0 %v5219_v0 }
0x30b8   :  { %4832 = vmatpush3.msra.mxu0 %v6080_v44 }
0x30b9   :  { %4833 = vmatprep.subr.mxu0 %v5219_v0 }
0x30ba   :  { %4834 = vmatpush3.msra.mxu0 %v6089_v42 }
0x30bb   :  { %4835 = vmatprep.subr.mxu0 %v5219_v0 }
0x30bc   :  { %4836 = vmatpush3.msra.mxu0 %v6096_v2 }
0x30bd   :  { %4851 = vmatprep.subr.mxu0 %v5219_v0 }
0x316d   :  { %v2458_v28 = vpop.f32.mrf.mxu0 }
0x316e   :  { %v2459_v5 = vadd.f32 %v5881_v8, %v2458_v28 }
0x316f   :  { %v4791_v56 = vpop.f32.mrf.mxu0 }
0x3170   :  { %5132 = vtanh.f32 %v2459_v5  ;;  %v4138_v19 = vmul.f32 -1.442695, %v2459_v5 }
0x3171   :  { %5134 = vrcp.f32 %v1721_v52 }
0x3175   :  { %v2676_v57 = vpop.f32.mrf.mxu0 }
0x3176   :  { %v2677_v59 = vadd.f32 %v6118_v7, %v2676_v57 }
0x3177   :  { %v4817_v60 = vpop.f32.mrf.mxu0 }
0x3178   :  { %5136 = vtanh.f32 %v2677_v59  ;;  %v4143_v20 = vmul.f32 -1.442695, %v2677_v59 }
0x3179   :  { %5138 = vpow2.f32 %v4138_v19 }
0x317a   :  { %5140 = vpow2.f32 %v4143_v20 }
0x317d   :  { %v5133_v10 = vpop.eup %5132 }
0x317e   :  { %2471 = vrot.lane.b32.xlu1 %v5133_v10, %s5225_s16  ;;  %v5135_v17 = vpop.eup %5134 }
0x317f   :  { %v1730_v48 = vmul.f32 %v5135_v17, %v1728_v35  ;;  %v1725_v47 = vmul.f32 %v5135_v17, %v5892_v14 }
0x3182   :  { %1732 = vrot.lane.b32.xlu1 %v1730_v48, %s5222_s13 }
0x3185   :  { %v5137_v8 = vpop.eup %5136 }
0x3186   :  { %2689 = vrot.lane.b32.xlu0 %v5137_v8, %s5225_s16  ;;  %v5139_v21 = vpop.eup %5138 }
0x3187   :  { %v2465_v22 = vadd.f32 1.0, %v5139_v21  ;;  %v5141_v23 = vpop.eup %5140 }
0x3188   :  { %v2683_v24 = vadd.f32 1.0, %v5141_v23 }
0x3189   :  { %5142 = vrcp.f32 %v2465_v22 }
0x318a   :  { %5144 = vrcp.f32 %v2683_v24 }
0x3196   :  { %v5143_v29 = vpop.eup %5142 }
0x3197   :  { %v5145_v33 = vpop.eup %5144  ;;  %v2469_v1 = vmul.f32 %v5143_v29, %v6057_v12 }
0x3198   :  { %v2687_v37 = vmul.f32 0.0, %v5145_v33 }
0x31f0   :  { %v2472_v30 = vpop.permute.xlu1 %2471 }
0x31f1   :  { %v2474_v31 = vmul.f32 %v5143_v29, %v2472_v30 }
0x31f3   :  { %2476 = vrot.lane.b32.xlu0 %v2474_v31, %s5227_s20 }
0x31f4   :  { %v1733_v63 = vpop.permute.xlu1 %1732 }
0x31f5   :  { %v1735_v9 = vadd.f32 %v1733_v63, %v1725_v47 }
0x31f7   :  { %5146 = vtanh.f32 %v1735_v9 }
0x31f8   :  { %v2690_v34 = vpop.permute.xlu0 %2689 }
0x31f9   :  { %v2692_v36 = vmul.f32 %v5145_v33, %v2690_v34 }
0x31fb   :  { %2694 = vrot.lane.b32.xlu1 %v2692_v36, %s5227_s20 }
0x3204   :  { %v5147_v50 = vpop.eup %5146 }
0x3205   :  { %1738 = vrot.lane.b32.xlu0 %v5147_v50, %s5221_s12 }
0x3265   :  { %v2477_v55 = vpop.permute.xlu0 %2476 }
0x3266   :  { %v6129_v53 = vadd.f32 %v2477_v55, %v2469_v1 }
0x3268   :  { %5148 = vtanh.f32 %v6129_v53 }
0x326d   :  { %v2695_v14 = vpop.permute.xlu1 %2694 }
0x326e   :  { %v2697_v6 = vadd.f32 %v2695_v14, %v2687_v37 }
0x3270   :  { %5150 = vtanh.f32 %v2697_v6 }
0x3275   :  { %v5149_v38 = vpop.eup %5148 }
0x3276   :  { %2482 = vrot.lane.b32.xlu1 %v5149_v38, %s5222_s13 }
0x3277   :  { %v1739_v4 = vpop.permute.xlu0 %1738 }
0x3278   :  { %v1741_v61 = vmul.f32 %v5135_v17, %v1739_v4 }
0x327a   :  { %2487 = vrot.lane.b32.xlu1 %v1741_v61, %s5222_s13 }
0x327d   :  { %v5151_v25 = vpop.eup %5150 }
0x327e   :  { %2700 = vrot.lane.b32.xlu0 %v5151_v25, %s5222_s13  ;;  %2704 = vrot.lane.b32.xlu1 %v5952_v26, %s5226_s17 }
0x32e8   :  { %v2483_v54 = vpop.permute.xlu1 %2482 }
0x32e9   :  { %v6137_v11 = vmul.f32 %v5143_v29, %v2483_v54 }
0x32eb   :  { %2491 = vrot.lane.b32.xlu0 %v6137_v11, %s5223_s14 }
0x32ec   :  { %v2488_v15 = vpop.permute.xlu1 %2487 }
0x32f0   :  { %v2701_v12 = vpop.permute.xlu0 %2700  ;;  %v2705_v26 = vpop.permute.xlu1 %2704 }
0x32f1   :  { %v6141_v13 = vmul.f32 %v5145_v33, %v2701_v12 }
0x32f3   :  { %2708 = vrot.lane.b32.xlu0 %v6141_v13, %s5225_s16 }
0x335d   :  { %v2492_v16 = vpop.permute.xlu0 %2491 }
0x335e   :  { %v2494_v43 = vsel %vm900_vm3, %v2488_v15, %v2492_v16 }
0x335f   :  { %4805 = vmatmul.mubr.msk.f32.vlgmr.msra.gmra.mxu1 %vm54_vm2, %v2494_v43 }
0x3360   :  { %4819 = vmatpush3.msra.mxu1 %v6073_v18  ;;  %4826 = vmatprep.mubr.msk.f32.mxu1 %vm5220_vm0, %v5219_v0 }
0x3361   :  { %4820 = vmatprep.subr.mxu1 %v5219_v0 }
0x3362   :  { %4821 = vmatpush3.msra.mxu1 %v6080_v44 }
0x3363   :  { %4822 = vmatprep.subr.mxu1 %v5219_v0 }
0x3364   :  { %4823 = vmatpush3.msra.mxu1 %v6089_v42 }
0x3365   :  { %4824 = vmatprep.subr.mxu1 %v5219_v0  ;;  %v2709_v49 = vpop.permute.xlu0 %2708 }
0x3366   :  { %v2711_v40 = vsel %vm46_vm1, %v2705_v26, %v2709_v49  ;;  %4825 = vmatpush3.msra.mxu1 %v6096_v2 }
0x3367   :  { %4827 = vmatmul.mubr.msk.f32.vlgmr.msra.gmra.mxu1 %vm900_vm3, %v2711_v40  ;;  %4840 = vmatprep.subr.mxu1 %v5219_v0 }
0x3368   :  { %4841 = vmatpush3.msra.mxu1 %v6073_v18  ;;  %4848 = vmatprep.mubr.msk.f32.mxu1 %vm5220_vm0, %v5219_v0 }
0x3369   :  { %4842 = vmatprep.subr.mxu1 %v5219_v0 }
0x336a   :  { %4843 = vmatpush3.msra.mxu1 %v6080_v44 }
0x336b   :  { %4844 = vmatprep.subr.mxu1 %v5219_v0 }
0x336c   :  { %4845 = vmatpush3.msra.mxu1 %v6089_v42 }
0x336d   :  { %4846 = vmatprep.subr.mxu1 %v5219_v0 }
0x336e   :  { %4847 = vmatpush3.msra.mxu1 %v6096_v2 }
0x336f   :  { %4862 = vmatprep.subr.mxu1 %v5219_v0 }
0x341f   :  { %v6169_v62 = vpop.f32.mrf.mxu1 }
0x3421   :  { %v4806_v41 = vpop.f32.mrf.mxu1 }
0x3427   :  { %v2781_v46 = vpop.f32.mrf.mxu1 }
0x3428   :  { %v2782_v3 = vadd.f32 %v6118_v7, %v2781_v46 }
0x3429   :  { %v4828_v51 = vpop.f32.mrf.mxu1 }
0x342a   :  { %5152 = vtanh.f32 %v2782_v3  ;;  %v4145_v28 = vmul.f32 -1.442695, %v2782_v3 }
0x342c   :  { %5154 = vpow2.f32 %v4145_v28 }
0x3437   :  { %v5153_v27 = vpop.eup %5152 }
0x3438   :  { %2794 = vrot.lane.b32.xlu1 %v5153_v27, %s5225_s16 }
0x3439   :  { %v5155_v52 = vpop.eup %5154 }
0x343a   :  { %v2788_v5 = vadd.f32 1.0, %v5155_v52 }
0x343c   :  { %5156 = vrcp.f32 %v2788_v5 }
0x3449   :  { %v5157_v56 = vpop.eup %5156 }
0x344a   :  { %v2792_v60 = vmul.f32 %v5157_v56, %v2697_v6 }
0x34aa   :  { %v2795_v57 = vpop.permute.xlu1 %2794 }
0x34ab   :  { %v2797_v59 = vmul.f32 %v5157_v56, %v2795_v57 }
0x34ad   :  { %2799 = vrot.lane.b32.xlu0 %v2797_v59, %s5227_s20 }
0x34b1   :  { %2809 = vrot.lane.b32.xlu0 %v5978_v45, %s5226_s17 }
0x351f   :  { %v2800_v10 = vpop.permute.xlu0 %2799 }
0x3520   :  { %v2802_v35 = vadd.f32 %v2800_v10, %v2792_v60 }
0x3522   :  { %5158 = vtanh.f32 %v2802_v35 }
0x3523   :  { %v2810_v19 = vpop.permute.xlu0 %2809 }
0x352f   :  { %v5159_v17 = vpop.eup %5158 }
0x3530   :  { %2805 = vrot.lane.b32.xlu1 %v5159_v17, %s5222_s13 }
0x35a2   :  { %v2806_v48 = vpop.permute.xlu1 %2805 }
0x35a3   :  { %v6177_v8 = vmul.f32 %v5157_v56, %v2806_v48 }
0x35a5   :  { %2813 = vrot.lane.b32.xlu1 %v6177_v8, %s5225_s16 }
0x3617   :  { %v2814_v20 = vpop.permute.xlu1 %2813 }
0x3618   :  { %v2816_v21 = vsel %vm46_vm1, %v2810_v19, %v2814_v20 }
0x3619   :  { %4838 = vmatmul.mubr.msk.f32.vlgmr.msra.gmra.mxu0 %vm900_vm3, %v2816_v21 }
0x361a   :  { %4852 = vmatpush3.msra.mxu0 %v6073_v18  ;;  %4859 = vmatprep.mubr.msk.f32.mxu0 %vm5220_vm0, %v5219_v0 }
0x361b   :  { %4853 = vmatprep.subr.mxu0 %v5219_v0 }
0x361c   :  { %4854 = vmatpush3.msra.mxu0 %v6080_v44 }
0x361d   :  { %4855 = vmatprep.subr.mxu0 %v5219_v0 }
0x361e   :  { %4856 = vmatpush3.msra.mxu0 %v6089_v42 }
0x361f   :  { %4857 = vmatprep.subr.mxu0 %v5219_v0 }
0x3620   :  { %4858 = vmatpush3.msra.mxu0 %v6096_v2 }
0x3621   :  { %4873 = vmatprep.subr.mxu0 %v5219_v0 }
0x36d9   :  { %v2886_v45 = vpop.f32.mrf.mxu0 }
0x36da   :  { %v2887_v22 = vadd.f32 %v6118_v7, %v2886_v45 }
0x36db   :  { %v4839_v23 = vpop.f32.mrf.mxu0 }
0x36dc   :  { %5160 = vtanh.f32 %v2887_v22  ;;  %v4147_v29 = vmul.f32 -1.442695, %v2887_v22 }
0x36de   :  { %5162 = vpow2.f32 %v4147_v29 }
0x36e9   :  { %v5161_v24 = vpop.eup %5160 }
0x36ea   :  { %2899 = vrot.lane.b32.xlu0 %v5161_v24, %s5225_s16 }
0x36eb   :  { %v5163_v30 = vpop.eup %5162 }
0x36ec   :  { %v2893_v31 = vadd.f32 1.0, %v5163_v30 }
0x36ee   :  { %5164 = vrcp.f32 %v2893_v31 }
0x36fb   :  { %v5165_v47 = vpop.eup %5164 }
0x36fc   :  { %v2897_v33 = vmul.f32 %v5165_v47, %v2802_v35 }
0x375c   :  { %v2900_v63 = vpop.permute.xlu0 %2899 }
0x375d   :  { %v2902_v9 = vmul.f32 %v5165_v47, %v2900_v63 }
0x375f   :  { %2904 = vrot.lane.b32.xlu1 %v2902_v9, %s5227_s20 }
0x3763   :  { %2914 = vrot.lane.b32.xlu1 %v6004_v58, %s5226_s17 }
0x37d1   :  { %v2905_v34 = vpop.permute.xlu1 %2904 }
0x37d2   :  { %v2907_v36 = vadd.f32 %v2905_v34, %v2897_v33 }
0x37d4   :  { %5166 = vtanh.f32 %v2907_v36 }
0x37d5   :  { %v2915_v37 = vpop.permute.xlu1 %2914 }
0x37e1   :  { %v5167_v50 = vpop.eup %5166 }
0x37e2   :  { %2910 = vrot.lane.b32.xlu0 %v5167_v50, %s5222_s13 }
0x3854   :  { %v2911_v1 = vpop.permute.xlu0 %2910 }
0x3855   :  { %v6199_v55 = vmul.f32 %v5165_v47, %v2911_v1 }
0x3857   :  { %2918 = vrot.lane.b32.xlu0 %v6199_v55, %s5225_s16 }
0x38c9   :  { %v2919_v14 = vpop.permute.xlu0 %2918 }
0x38ca   :  { %v2921_v6 = vsel %vm46_vm1, %v2915_v37, %v2919_v14 }
0x38cb   :  { %4849 = vmatmul.mubr.msk.f32.vlgmr.msra.gmra.mxu1 %vm900_vm3, %v2921_v6 }
0x38cc   :  { %4863 = vmatpush3.msra.mxu1 %v6073_v18  ;;  %4870 = vmatprep.mubr.msk.f32.mxu1 %vm5220_vm0, %v5219_v0 }
0x38cd   :  { %4864 = vmatprep.subr.mxu1 %v5219_v0 }
0x38ce   :  { %4865 = vmatpush3.msra.mxu1 %v6080_v44 }
0x38cf   :  { %4866 = vmatprep.subr.mxu1 %v5219_v0 }
0x38d0   :  { %4867 = vmatpush3.msra.mxu1 %v6089_v42 }
0x38d1   :  { %4868 = vmatprep.subr.mxu1 %v5219_v0 }
0x38d2   :  { %4869 = vmatpush3.msra.mxu1 %v6096_v2 }
0x38d3   :  { %4884 = vmatprep.subr.mxu1 %v5219_v0 }
0x398b   :  { %v2991_v58 = vpop.f32.mrf.mxu1 }
0x398c   :  { %v2992_v38 = vadd.f32 %v6118_v7, %v2991_v58 }
0x398d   :  { %v4850_v4 = vpop.f32.mrf.mxu1 }
0x398e   :  { %5168 = vtanh.f32 %v2992_v38  ;;  %v4149_v25 = vmul.f32 -1.442695, %v2992_v38 }
0x3990   :  { %5170 = vpow2.f32 %v4149_v25 }
0x399b   :  { %v5169_v61 = vpop.eup %5168 }
0x399c   :  { %3004 = vrot.lane.b32.xlu1 %v5169_v61, %s5225_s16 }
0x399d   :  { %v5171_v54 = vpop.eup %5170 }
0x399e   :  { %v2998_v12 = vadd.f32 1.0, %v5171_v54 }
0x39a0   :  { %5172 = vrcp.f32 %v2998_v12 }
0x39ad   :  { %v5173_v15 = vpop.eup %5172 }
0x39ae   :  { %v3002_v26 = vmul.f32 %v5173_v15, %v2907_v36 }
0x3a0e   :  { %v3005_v16 = vpop.permute.xlu1 %3004 }
0x3a0f   :  { %v3007_v43 = vmul.f32 %v5173_v15, %v3005_v16 }
0x3a11   :  { %3009 = vrot.lane.b32.xlu0 %v3007_v43, %s5227_s20 }
0x3a15   :  { %3019 = vrot.lane.b32.xlu0 %v6030_v32, %s5226_s17 }
0x3a83   :  { %v3010_v49 = vpop.permute.xlu0 %3009 }
0x3a84   :  { %v3012_v40 = vadd.f32 %v3010_v49, %v3002_v26 }
0x3a86   :  { %5174 = vtanh.f32 %v3012_v40 }
0x3a87   :  { %v3020_v51 = vpop.permute.xlu0 %3019 }
0x3a93   :  { %v5175_v41 = vpop.eup %5174 }
0x3a94   :  { %3015 = vrot.lane.b32.xlu1 %v5175_v41, %s5222_s13 }
0x3b06   :  { %v3016_v46 = vpop.permute.xlu1 %3015 }
0x3b07   :  { %v6221_v3 = vmul.f32 %v5173_v15, %v3016_v46 }
0x3b09   :  { %3023 = vrot.lane.b32.xlu1 %v6221_v3, %s5225_s16 }
0x3b7b   :  { %v3024_v27 = vpop.permute.xlu1 %3023 }
0x3b7c   :  { %v3026_v28 = vsel %vm46_vm1, %v3020_v51, %v3024_v27 }
0x3b7d   :  { %4860 = vmatmul.mubr.msk.f32.vlgmr.msra.gmra.mxu0 %vm900_vm3, %v3026_v28 }
0x3b7e   :  { %4874 = vmatpush3.msra.mxu0 %v6073_v18  ;;  %4881 = vmatprep.mubr.msk.f32.mxu0 %vm5220_vm0, %v5219_v0 }
0x3b7f   :  { %4875 = vmatprep.subr.mxu0 %v5219_v0 }
0x3b80   :  { %4876 = vmatpush3.msra.mxu0 %v6080_v44 }
0x3b81   :  { %4877 = vmatprep.subr.mxu0 %v5219_v0 }
0x3b82   :  { %4878 = vmatpush3.msra.mxu0 %v6089_v42 }
0x3b83   :  { %4879 = vmatprep.subr.mxu0 %v5219_v0 }
0x3b84   :  { %4880 = vmatpush3.msra.mxu0 %v6096_v2 }
0x3b85   :  { %4895 = vmatprep.subr.mxu0 %v5219_v0 }
0x3c3d   :  { %v3096_v32 = vpop.f32.mrf.mxu0 }
0x3c3e   :  { %v3097_v52 = vadd.f32 %v6118_v7, %v3096_v32 }
0x3c3f   :  { %v4861_v5 = vpop.f32.mrf.mxu0 }
0x3c40   :  { %5176 = vtanh.f32 %v3097_v52  ;;  %v4151_v57 = vmul.f32 -1.442695, %v3097_v52 }
0x3c42   :  { %5178 = vpow2.f32 %v4151_v57 }
0x3c4d   :  { %v5177_v56 = vpop.eup %5176 }
0x3c4e   :  { %3109 = vrot.lane.b32.xlu0 %v5177_v56, %s5225_s16 }
0x3c4f   :  { %v5179_v59 = vpop.eup %5178 }
0x3c50   :  { %v3103_v60 = vadd.f32 1.0, %v5179_v59 }
0x3c52   :  { %5180 = vrcp.f32 %v3103_v60 }
0x3c5f   :  { %v5181_v10 = vpop.eup %5180 }
0x3c60   :  { %v3107_v48 = vmul.f32 %v5181_v10, %v3012_v40 }
0x3cc0   :  { %v3110_v35 = vpop.permute.xlu0 %3109 }
0x3cc1   :  { %v3112_v17 = vmul.f32 %v5181_v10, %v3110_v35 }
0x3cc3   :  { %3114 = vrot.lane.b32.xlu1 %v3112_v17, %s5227_s20 }
0x3cc7   :  { %3124 = vrot.lane.b32.xlu1 %v6065_v39, %s5226_s17 }
0x3d35   :  { %v3115_v19 = vpop.permute.xlu1 %3114 }
0x3d36   :  { %v3117_v20 = vadd.f32 %v3115_v19, %v3107_v48 }
0x3d38   :  { %5182 = vtanh.f32 %v3117_v20 }
0x3d39   :  { %v3125_v23 = vpop.permute.xlu1 %3124 }
0x3d45   :  { %v5183_v21 = vpop.eup %5182 }
0x3d46   :  { %3120 = vrot.lane.b32.xlu0 %v5183_v21, %s5222_s13 }
0x3db8   :  { %v3121_v45 = vpop.permute.xlu0 %3120 }
0x3db9   :  { %v6243_v22 = vmul.f32 %v5181_v10, %v3121_v45 }
0x3dbb   :  { %3128 = vrot.lane.b32.xlu0 %v6243_v22, %s5225_s16 }
0x3e2d   :  { %v3129_v24 = vpop.permute.xlu0 %3128 }
0x3e2e   :  { %v3131_v29 = vsel %vm46_vm1, %v3125_v23, %v3129_v24 }
0x3e2f   :  { %4871 = vmatmul.mubr.msk.f32.vlgmr.msra.gmra.mxu1 %vm900_vm3, %v3131_v29 }
0x3e30   :  { %4885 = vmatpush3.msra.mxu1 %v6073_v18  ;;  %4892 = vmatprep.mubr.msk.f32.mxu1 %vm5220_vm0, %v5219_v0 }
0x3e31   :  { %4886 = vmatprep.subr.mxu1 %v5219_v0 }
0x3e32   :  { %4887 = vmatpush3.msra.mxu1 %v6080_v44 }
0x3e33   :  { %4888 = vmatprep.subr.mxu1 %v5219_v0 }
0x3e34   :  { %4889 = vmatpush3.msra.mxu1 %v6089_v42  ;;  %v5218_v42 = vld [vmem:[%s6409_s6] ss:$0 sm:$0xff] }
0x3e35   :  { %4890 = vmatprep.subr.mxu1 %v5219_v0 }
0x3e36   :  { %4891 = vmatpush3.msra.mxu1 %v6096_v2  ;;  %v2565_v2 = vadd.f32 %v5218_v42, %v6169_v62 }
0x3e37   :  { %4902 = vmatprep.subr.mxu1 %v5219_v0 }
0x3e38   :  { %v4140_v50 = vmul.f32 -1.442695, %v2565_v2 }
0x3eef   :  { %v3201_v39 = vpop.f32.mrf.mxu1 }
0x3ef0   :  { %v3202_v18 = vadd.f32 %v6118_v7, %v3201_v39 }
0x3ef1   :  { %v4872_v30 = vpop.f32.mrf.mxu1 }
0x3ef2   :  { %5184 = vtanh.f32 %v3202_v18  ;;  %v4153_v47 = vmul.f32 -1.442695, %v3202_v18 }
0x3ef4   :  { %5186 = vpow2.f32 %v4153_v47 }
0x3eff   :  { %v5185_v31 = vpop.eup %5184 }
0x3f00   :  { %3214 = vrot.lane.b32.xlu1 %v5185_v31, %s5225_s16  ;;  %v6296_v31 = vld [vmem:[%s6412_s9 + $0x8] sm:$0xff] }
0x3f01   :  { %v5187_v44 = vpop.eup %5186 }
0x3f02   :  { %v3208_v63 = vadd.f32 1.0, %v5187_v44 }
0x3f04   :  { %5188 = vrcp.f32 %v3208_v63 }
0x3f05   :  { %5190 = vtanh.f32 %v2565_v2 }
0x3f06   :  { %5192 = vpow2.f32 %v4140_v50 }
0x3f11   :  { %v5189_v9 = vpop.eup %5188 }
0x3f12   :  { %v5191_v36 = vpop.eup %5190  ;;  %v3212_v14 = vmul.f32 %v5189_v9, %v3117_v20 }
0x3f13   :  { %v5193_v1 = vpop.eup %5192 }
0x3f14   :  { %v2571_v37 = vadd.f32 1.0, %v5193_v1 }
0x3f16   :  { %5194 = vrcp.f32 %v2571_v37  ;;  %v4158_v37 = vld [vmem:[%s6413_s10] ss:$0 sm:$0xff] }
0x3f23   :  { %v5195_v38 = vpop.eup %5194 }
0x3f72   :  { %v3215_v33 = vpop.permute.xlu1 %3214 }
0x3f73   :  { %v3217_v34 = vmul.f32 %v5189_v9, %v3215_v33 }
0x3f75   :  { %3219 = vrot.lane.b32.xlu0 %v3217_v34, %s5227_s20 }
0x3f79   :  { %3229 = vrot.lane.b32.xlu0 %v6137_v11, %s5226_s17  ;;  %v2575_v11 = vmul.f32 %v5195_v38, %v6129_v53 }
0x3f7d   :  { %2577 = vrot.lane.b32.xlu0 %v5191_v36, %s5225_s16 }
0x3fe7   :  { %v3220_v6 = vpop.permute.xlu0 %3219 }
0x3fe8   :  { %v3222_v62 = vadd.f32 %v3220_v6, %v3212_v14 }
0x3fea   :  { %5196 = vtanh.f32 %v3222_v62 }
0x3feb   :  { %v3230_v58 = vpop.permute.xlu0 %3229 }
0x3fef   :  { %v2578_v4 = vpop.permute.xlu0 %2577 }
0x3ff0   :  { %v2580_v61 = vmul.f32 %v5195_v38, %v2578_v4 }
0x3ff2   :  { %2582 = vrot.lane.b32.xlu0 %v2580_v61, %s5227_s20 }
0x3ff7   :  { %v5197_v25 = vpop.eup %5196 }
0x3ff8   :  { %3225 = vrot.lane.b32.xlu1 %v5197_v25, %s5222_s13 }
0x4064   :  { %v2583_v54 = vpop.permute.xlu0 %2582 }
0x4065   :  { %v2585_v12 = vadd.f32 %v2583_v54, %v2575_v11 }
0x4067   :  { %5198 = vtanh.f32 %v2585_v12 }
0x406a   :  { %v3226_v15 = vpop.permute.xlu1 %3225 }
0x406b   :  { %v6272_v16 = vmul.f32 %v5189_v9, %v3226_v15 }
0x406d   :  { %3233 = vrot.lane.b32.xlu1 %v6272_v16, %s5225_s16 }
0x4074   :  { %v5199_v43 = vpop.eup %5198 }
0x4075   :  { %2588 = vrot.lane.b32.xlu0 %v5199_v43, %s5222_s13 }
0x40df   :  { %v3234_v26 = vpop.permute.xlu1 %3233 }
0x40e0   :  { %v3236_v49 = vsel %vm46_vm1, %v3230_v58, %v3234_v26 }
0x40e1   :  { %4882 = vmatmul.mubr.msk.f32.vlgmr.msra.gmra.mxu0 %vm900_vm3, %v3236_v49 }
0x40e2   :  { %4899 = vmatprep.mubr.msk.f32.mxu0 %vm5220_vm0, %v5219_v0  ;;  %4896 = vmatpush3.msra.mxu0 %v6296_v31 }
0x40e3   :  { %4897 = vmatprep.subr.mxu0 %v5219_v0 }
0x40e7   :  { %v2589_v53 = vpop.permute.xlu0 %2588 }
0x40e8   :  { %v2591_v40 = vmul.f32 %v5195_v38, %v2589_v53 }
0x40ea   :  { %3335 = vrot.lane.b32.xlu0 %v2591_v40, %s5226_s17 }
0x415c   :  { %v3336_v19 = vpop.permute.xlu0 %3335 }
0x41a1   :  { %v3306_v41 = vpop.f32.mrf.mxu0 }
0x41a2   :  { %v3307_v46 = vadd.f32 %v6118_v7, %v3306_v41 }
0x41a3   :  { %v4883_v51 = vpop.f32.mrf.mxu0 }
0x41a4   :  { %5200 = vtanh.f32 %v3307_v46  ;;  %v4155_v28 = vmul.f32 -1.442695, %v3307_v46 }
0x41a6   :  { %5202 = vpow2.f32 %v4155_v28 }
0x41b1   :  { %v5201_v27 = vpop.eup %5200 }
0x41b2   :  { %3319 = vrot.lane.b32.xlu1 %v5201_v27, %s5225_s16 }
0x41b3   :  { %v5203_v32 = vpop.eup %5202 }
0x41b4   :  { %v3313_v52 = vadd.f32 1.0, %v5203_v32 }
0x41b6   :  { %5204 = vrcp.f32 %v3313_v52 }
0x41c3   :  { %v5205_v5 = vpop.eup %5204 }
0x41c4   :  { %v3317_v59 = vmul.f32 %v5205_v5, %v3222_v62 }
0x4224   :  { %v3320_v56 = vpop.permute.xlu1 %3319 }
0x4225   :  { %v3322_v57 = vmul.f32 %v5205_v5, %v3320_v56 }
0x4227   :  { %3324 = vrot.lane.b32.xlu1 %v3322_v57, %s5227_s20 }
0x4299   :  { %v3325_v60 = vpop.permute.xlu1 %3324 }
0x429a   :  { %v3327_v10 = vadd.f32 %v3325_v60, %v3317_v59 }
0x429c   :  { %5206 = vtanh.f32 %v3327_v10 }
0x42a9   :  { %v5207_v35 = vpop.eup %5206 }
0x42aa   :  { %3330 = vrot.lane.b32.xlu1 %v5207_v35, %s5222_s13 }
0x431c   :  { %v3331_v17 = vpop.permute.xlu1 %3330 }
0x431d   :  { %v3333_v48 = vmul.f32 %v5205_v5, %v3331_v17 }
0x431f   :  { %3339 = vrot.lane.b32.xlu1 %v3333_v48, %s5225_s16 }
0x4391   :  { %v3340_v20 = vpop.permute.xlu1 %3339 }
0x4392   :  { %v3342_v21 = vsel %vm46_vm1, %v3336_v19, %v3340_v20 }
0x4393   :  { %4893 = vmatmul.mubr.msk.f32.vlgmr.msra.gmra.mxu1 %vm900_vm3, %v3342_v21 }
0x4394   :  { %4906 = vmatprep.mubr.msk.f32.mxu1 %vm5220_vm0, %v5219_v0  ;;  %4903 = vmatpush3.msra.mxu1 %v6296_v31 }
0x4395   :  { %4904 = vmatprep.subr.mxu1 %v5219_v0 }
0x4453   :  { %v3412_v45 = vpop.f32.mrf.mxu1 }
0x4454   :  { %v3413_v23 = vadd.f32 %v6118_v7, %v3412_v45  ;;  %v6304_v7 = vld [vmem:[%s6412_s9] sm:$0xff] }
0x4455   :  { %v4894_v24 = vpop.f32.mrf.mxu1  ;;  %4898 = vmatpush3.msra.mxu0 %v6304_v7  ;;  %4905 = vmatpush3.msra.mxu1 %v6304_v7 }
0x4456   :  { %5208 = vtanh.f32 %v3413_v23  ;;  %v4157_v39 = vmul.f32 -1.442695, %v3413_v23  ;;  %4909 = vmatprep.subr.mxu0 %v5219_v0  ;;  %4916 = vmatprep.subr.mxu1 %v5219_v0 }
0x4458   :  { %5210 = vpow2.f32 %v4157_v39 }
0x4463   :  { %v5209_v29 = vpop.eup %5208 }
0x4464   :  { %3425 = vrot.lane.b32.xlu0 %v5209_v29, %s5225_s16 }
0x4465   :  { %v5211_v18 = vpop.eup %5210 }
0x4466   :  { %v3419_v30 = vadd.f32 1.0, %v5211_v18 }
0x4468   :  { %5212 = vrcp.f32 %v3419_v30 }
0x4475   :  { %v5213_v47 = vpop.eup %5212 }
0x4476   :  { %v3423_v42 = vmul.f32 %v5213_v47, %v3327_v10 }
0x44d6   :  { %v3426_v44 = vpop.permute.xlu0 %3425 }
0x44d7   :  { %v3428_v63 = vmul.f32 %v5213_v47, %v3426_v44 }
0x44d9   :  { %3430 = vrot.lane.b32.xlu1 %v3428_v63, %s5227_s20 }
0x44dd   :  { %3449 = vrot.lane.b32.xlu1 %v6141_v13, %s5226_s17 }
0x44e1   :  { %3605 = vrot.lane.b32.xlu1 %v6199_v55, %s5226_s17 }
0x44e5   :  { %3765 = vrot.lane.b32.xlu1 %v6243_v22, %s5226_s17 }
0x44e9   :  { %3925 = vrot.lane.b32.xlu1 %v3333_v48, %s5226_s17 }
0x454b   :  { %v3431_v2 = vpop.permute.xlu1 %3430 }
0x454c   :  { %v3433_v9 = vadd.f32 %v3431_v2, %v3423_v42 }
0x454e   :  { %5214 = vtanh.f32 %v3433_v9 }
0x454f   :  { %v3450_v33 = vpop.permute.xlu1 %3449 }
0x4550   :  { %4900 = vmatmul.mubr.msk.f32.vlgmr.msra.gmra.mxu0 %vm46_vm1, %v3450_v33 }
0x4551   :  { %4910 = vmatpush3.msra.mxu0 %v6296_v31  ;;  %4913 = vmatprep.mubr.msk.f32.mxu0 %vm5220_vm0, %v5219_v0 }
0x4552   :  { %4911 = vmatprep.subr.mxu0 %v5219_v0 }
0x4553   :  { %4912 = vmatpush3.msra.mxu0 %v6304_v7  ;;  %v3606_v13 = vpop.permute.xlu1 %3605 }
0x4554   :  { %4914 = vmatmul.mubr.msk.f32.vlgmr.msra.gmra.mxu0 %vm46_vm1, %v3606_v13  ;;  %4923 = vmatprep.subr.mxu0 %v5219_v0 }
0x4555   :  { %4924 = vmatpush3.msra.mxu0 %v6296_v31  ;;  %4927 = vmatprep.mubr.msk.f32.mxu0 %vm5220_vm0, %v5219_v0 }
0x4556   :  { %4925 = vmatprep.subr.mxu0 %v5219_v0 }
0x4557   :  { %4926 = vmatpush3.msra.mxu0 %v6304_v7  ;;  %v3766_v55 = vpop.permute.xlu1 %3765 }
0x4558   :  { %4928 = vmatmul.mubr.msk.f32.vlgmr.msra.gmra.mxu0 %vm46_vm1, %v3766_v55  ;;  %4937 = vmatprep.subr.mxu0 %v5219_v0 }
0x4559   :  { %4938 = vmatpush3.msra.mxu0 %v6296_v31  ;;  %4941 = vmatprep.mubr.msk.f32.mxu0 %vm5220_vm0, %v5219_v0 }
0x455a   :  { %4939 = vmatprep.subr.mxu0 %v5219_v0 }
0x455b   :  { %v5215_v22 = vpop.eup %5214  ;;  %4940 = vmatpush3.msra.mxu0 %v6304_v7  ;;  %v3926_v34 = vpop.permute.xlu1 %3925 }
0x455c   :  { %4942 = vmatmul.mubr.msk.f32.vlgmr.msra.gmra.mxu0 %vm46_vm1, %v3926_v34  ;;  %3436 = vrot.lane.b32.xlu0 %v5215_v22, %s5222_s13 }
0x4560   :  { %3525 = vrot.lane.b32.xlu0 %v6177_v8, %s5226_s17 }
0x4564   :  { %3685 = vrot.lane.b32.xlu0 %v6221_v3, %s5226_s17 }
0x4568   :  { %3845 = vrot.lane.b32.xlu0 %v6272_v16, %s5226_s17 }
0x45ce   :  { %v3437_v36 = vpop.permute.xlu0 %3436 }
0x45cf   :  { %v3439_v50 = vmul.f32 %v5213_v47, %v3437_v36 }
0x45d1   :  { %4006 = vrot.lane.b32.xlu0 %v3439_v50, %s5226_s17 }
0x45d2   :  { %v3526_v1 = vpop.permute.xlu0 %3525 }
0x45d3   :  { %4907 = vmatmul.mubr.msk.f32.vlgmr.msra.gmra.mxu1 %vm46_vm1, %v3526_v1 }
0x45d4   :  { %4917 = vmatpush3.msra.mxu1 %v6296_v31  ;;  %4920 = vmatprep.mubr.msk.f32.mxu1 %vm5220_vm0, %v5219_v0 }
0x45d5   :  { %4918 = vmatprep.subr.mxu1 %v5219_v0 }
0x45d6   :  { %4919 = vmatpush3.msra.mxu1 %v6304_v7  ;;  %v3686_v8 = vpop.permute.xlu0 %3685 }
0x45d7   :  { %4921 = vmatmul.mubr.msk.f32.vlgmr.msra.gmra.mxu1 %vm46_vm1, %v3686_v8  ;;  %4930 = vmatprep.subr.mxu1 %v5219_v0 }
0x45d8   :  { %4931 = vmatpush3.msra.mxu1 %v6296_v31  ;;  %4934 = vmatprep.mubr.msk.f32.mxu1 %vm5220_vm0, %v5219_v0 }
0x45d9   :  { %4932 = vmatprep.subr.mxu1 %v5219_v0 }
0x45da   :  { %4933 = vmatpush3.msra.mxu1 %v6304_v7  ;;  %v3846_v3 = vpop.permute.xlu0 %3845 }
0x45db   :  { %4935 = vmatmul.mubr.msk.f32.vlgmr.msra.gmra.mxu1 %vm46_vm1, %v3846_v3  ;;  %4944 = vmatprep.subr.mxu1 %v5219_v0 }
0x45dc   :  { %4945 = vmatpush3.msra.mxu1 %v6296_v31  ;;  %4948 = vmatprep.mubr.msk.f32.mxu1 %vm5220_vm0, %v5219_v0 }
0x45dd   :  { %4946 = vmatprep.subr.mxu1 %v5219_v0 }
0x45de   :  { %4947 = vmatpush3.msra.mxu1 %v6304_v7 }
0x4610   :  { %v3519_v14 = vpop.f32.mrf.mxu0 }
0x4611   :  { %v3520_v6 = vadd.f32 %v4158_v37, %v3519_v14 }
0x4612   :  { %v4901_v62 = vpop.f32.mrf.mxu0 }
0x4613   :  { %3524 = vst.msk [vmem:[%s6414_s11] sm:$0x3] %vm3523_vm5, %v3520_v6 }
0x4614   :  { %v3675_v58 = vpop.f32.mrf.mxu0 }
0x4615   :  { %v3676_v38 = vadd.f32 %v4158_v37, %v3675_v58 }
0x4616   :  { %v4915_v4 = vpop.f32.mrf.mxu0 }
0x4617   :  { %3680 = vrot.lane.b32.xlu0 %v3676_v38, %s5222_s13 }
0x4618   :  { %v3835_v0 = vpop.f32.mrf.mxu0 }
0x4619   :  { %v3836_v61 = vadd.f32 %v4158_v37, %v3835_v0 }
0x461a   :  { %v4929_v25 = vpop.f32.mrf.mxu0 }
0x461b   :  { %3840 = vrot.lane.b32.xlu0 %v3836_v61, %s5221_s12 }
0x461c   :  { %v3995_v11 = vpop.f32.mrf.mxu0 }
0x461d   :  { %v3996_v54 = vadd.f32 %v4158_v37, %v3995_v11 }
0x461e   :  { %v4943_v12 = vpop.f32.mrf.mxu0 }
0x461f   :  { %4000 = vrot.lane.b32.xlu0 %v3996_v54, %s5225_s16 }
0x4643   :  { %v4007_v15 = vpop.permute.xlu0 %4006 }
0x4644   :  { %4949 = vmatmul.mubr.msk.f32.vlgmr.msra.gmra.mxu1 %vm46_vm1, %v4007_v15 }
0x4689   :  { %v3681_v28 = vpop.permute.xlu0 %3680 }
0x468d   :  { %v3841_v56 = vpop.permute.xlu0 %3840 }
0x4691   :  { %v4001_v60 = vpop.permute.xlu0 %4000 }
0x4693   :  { %v3595_v16 = vpop.f32.mrf.mxu1 }
0x4694   :  { %v3596_v43 = vadd.f32 %v4158_v37, %v3595_v16 }
0x4695   :  { %v4908_v26 = vpop.f32.mrf.mxu1 }
0x4696   :  { %3600 = vrot.lane.b32.xlu1 %v3596_v43, %s5227_s20 }
0x4697   :  { %v3755_v49 = vpop.f32.mrf.mxu1 }
0x4698   :  { %v3756_v53 = vadd.f32 %v4158_v37, %v3755_v49 }
0x4699   :  { %v4922_v40 = vpop.f32.mrf.mxu1 }
0x469a   :  { %3760 = vrot.lane.b32.xlu1 %v3756_v53, %s5224_s15 }
0x469b   :  { %v3915_v41 = vpop.f32.mrf.mxu1 }
0x469c   :  { %v3916_v46 = vadd.f32 %v4158_v37, %v3915_v41 }
0x469d   :  { %v4936_v51 = vpop.f32.mrf.mxu1 }
0x469e   :  { %3920 = vrot.lane.b32.xlu1 %v3916_v46, %s5226_s17 }
0x4704   :  { %v4076_v27 = vpop.f32.mrf.mxu1 }
0x4705   :  { %v4077_v32 = vadd.f32 %v4158_v37, %v4076_v27 }
0x4706   :  { %v4950_v52 = vpop.f32.mrf.mxu1 }
0x4707   :  { %4081 = vrot.lane.b32.xlu1 %v4077_v32, %s5223_s14 }
0x4708   :  { %v3601_v5 = vpop.permute.xlu1 %3600 }
0x4709   :  { %3604 = vst.msk [vmem:[%s6414_s11] sm:$0x3] %vm3603_vm6, %v3601_v5 }
0x470a   :  { %3684 = vst.msk [vmem:[%s6414_s11] sm:$0x3] %vm3683_vm7, %v3681_v28 }
0x470c   :  { %v3761_v57 = vpop.permute.xlu1 %3760 }
0x470d   :  { %3764 = vst.msk [vmem:[%s6414_s11] sm:$0x3] %vm3763_vm8, %v3761_v57 }
0x470e   :  { %3844 = vst.msk [vmem:[%s6414_s11] sm:$0x3] %vm3843_vm9, %v3841_v56 }
0x4710   :  { %v3921_v59 = vpop.permute.xlu1 %3920 }
0x4711   :  { %3924 = vst.msk [vmem:[%s6414_s11] sm:$0x3] %vm3923_vm10, %v3921_v59 }
0x4712   :  { %4004 = vst.msk [vmem:[%s6414_s11] sm:$0x3] %vm4003_vm11, %v4001_v60 }
0x4779   :  { %v4082_v10 = vpop.permute.xlu1 %4081 }
0x477a   :  { %4085 = vst.msk [vmem:[%s6414_s11] sm:$0x3] %vm4084_vm12, %v4082_v10 }

</bundles_post_ra>
